<compile_context>
chip_gen: v5e
topology: v5e:2x2
jax: 0.10.0
libtpu: 0.0.40
codegen_flags: <defaults>
</compile_context>

<pallas_src>
import functools

import jax
import jax.numpy as jnp
from jax.experimental import pallas as pl
from jax.experimental.pallas import tpu as pltpu


# ----------------------------------------------------------------------------
# Kernel 1: fused [expand 1x1 conv + BN + SiLU] -> [depthwise KxK conv + BN +
#           SiLU] (+ fused SE global average pool).  Grid = (N, row_tiles).
# ----------------------------------------------------------------------------
def _fused_expand_dw_kernel(*refs, K, stride, pad, H, W, Hout, Wout, tr,
                            has_expand, use_se):
    it = iter(refs)
    x_ref = next(it)                              # (1, Hp, Wp_al, Cin) padded input
    if has_expand:
        wexp_ref = next(it)                       # (Cin, Cexp) BN scale folded
        bexp_ref = next(it)                       # (1, Cexp) f32
    wdw_ref = next(it)                            # (K*K, Cexp) BN scale folded
    bdw_ref = next(it)                            # (1, Cexp) f32
    o_ref = next(it)                              # (1, tr, Wout, Cexp)
    pool_ref = next(it) if use_se else None       # (1, 1, Cexp) f32
    hp_ref = next(it)                             # (win, Wp_al, Cexp) scratch
    pool_acc_ref = next(it) if use_se else None   # (1, Cexp) f32 scratch

    r = pl.program_id(1)
    win, Wp_al, Cexp = hp_ref.shape
    row0 = r * (tr * stride)                      # window start (padded coords)

    # ---- fused expand: 1x1 conv (BN scale folded) + bias + SiLU -------------
    xwin = x_ref[0, pl.ds(row0, win), :, :]       # (win, Wp_al, Cin)
    if has_expand:
        e = jnp.dot(xwin.reshape(win * Wp_al, xwin.shape[-1]), wexp_ref[...],
                    preferred_element_type=jnp.float32)
        e = e + bexp_ref[...]
        e = e * jax.nn.sigmoid(e)                 # SiLU
        e = e.reshape(win, Wp_al, Cexp)
    else:
        e = xwin.astype(jnp.float32)              # no expand layer (Cexp == Cin)

    # Exact zeros at spatial pad positions of the *expanded* activation
    # (SiLU(bias) != 0 there otherwise).  Replaces the old full-scratch memset.
    rows = row0 + jax.lax.broadcasted_iota(jnp.int32, (win, 1, 1), 0)
    cols = jax.lax.broadcasted_iota(jnp.int32, (1, Wp_al, 1), 1)
    valid = (rows >= pad) & (rows < pad + H) & (cols >= pad) & (cols < pad + W)
    hp_ref[...] = jnp.where(valid, e, 0.0).astype(hp_ref.dtype)

    # ---- depthwise KxK conv: direct strided tap accumulation ----------------
    hpv = hp_ref[...]                             # storage dtype (bf16 or f32)
    wdw = wdw_ref[...]
    span_w = (Wout - 1) * stride + 1
    span_h = (tr - 1) * stride + 1
    acc = jnp.zeros((tr, Wout, Cexp), jnp.float32)
    for kx in range(K):                           # one sublane shift per kx,
        hx = hpv[:, kx:kx + span_w:stride, :]     # reused across the K row taps
        for ky in range(K):
            tap = hx[ky:ky + span_h:stride, :, :] * wdw[ky * K + kx, :]
            acc = acc + tap.astype(jnp.float32)

    y = acc + bdw_ref[...]                        # folded-BN bias
    y = y * jax.nn.sigmoid(y)                     # SiLU
    o_ref[0] = y.astype(o_ref.dtype)

    # ---- fused SE squeeze (global avg pool), masked for partial row tiles ---
    if use_se:
        @pl.when(r == 0)
        def _init():
            pool_acc_ref[...] = jnp.zeros_like(pool_acc_ref)

        orow = r * tr + jax.lax.broadcasted_iota(jnp.int32, (tr, 1, 1), 0)
        contrib = jnp.where(orow < Hout, y, 0.0)
        pool_acc_ref[...] += jnp.sum(contrib, axis=(0, 1)).reshape(1, Cexp)

        @pl.when(r == pl.num_programs(1) - 1)
        def _fin():
            pool_ref[...] = (pool_acc_ref[...] *
                             (1.0 / (Hout * Wout))).reshape(1, 1, Cexp)


def fused_expand_dwconv(x_nhwc, w_exp, b_exp, w_dw, b_dw, *, K, stride,
                        has_expand, use_se, tile_rows=16,
                        vmem_limit_bytes=None):
    """x_nhwc: (N,H,W,Cin).  Returns (h: (N,Hout,Wout,Cexp), pooled|None)."""
    N, H, W, Cin = x_nhwc.shape
    assert K % 2 == 1, "only odd ('same'-padded) depthwise kernels supported"
    assert stride in (1, 2)
    pad = (K - 1) // 2
    Cexp = w_dw.shape[-1]
    Hout = (H + 2 * pad - K) // stride + 1
    Wout = (W + 2 * pad - K) // stride + 1
    tr = min(tile_rows, Hout)                     # output rows per grid step
    RT = pl.cdiv(Hout, tr)
    win = (tr - 1) * stride + K                   # input rows needed per tile
    Wp = W + 2 * pad
    Wp_al = ((Wp + 7) // 8) * 8                   # sublane-align -> cheap reshapes
    Hp = max(H + 2 * pad, (RT - 1) * tr * stride + win)

    # Spatially pre-pad the *raw* (Cin-wide) input once; the kernel masks the
    # expanded activation so pad positions are exact zeros.
    x_pad = jnp.zeros((N, Hp, Wp_al, Cin), x_nhwc.dtype)
    x_pad = x_pad.at[:, pad:pad + H, pad:pad + W, :].set(x_nhwc)

    dt = x_nhwc.dtype
    inputs = [x_pad]
    in_specs = [pl.BlockSpec((1, Hp, Wp_al, Cin), lambda n, r: (n, 0, 0, 0))]
    if has_expand:
        inputs += [w_exp, b_exp]
        in_specs += [pl.BlockSpec((Cin, Cexp), lambda n, r: (0, 0)),
                     pl.BlockSpec((1, Cexp), lambda n, r: (0, 0))]
    inputs += [w_dw, b_dw]
    in_specs += [pl.BlockSpec((K * K, Cexp), lambda n, r: (0, 0)),
                 pl.BlockSpec((1, Cexp), lambda n, r: (0, 0))]

    out_shape = [jax.ShapeDtypeStruct((N, Hout, Wout, Cexp), dt)]
    out_specs = [pl.BlockSpec((1, tr, Wout, Cexp), lambda n, r: (n, r, 0, 0))]
    if use_se:
        out_shape.append(jax.ShapeDtypeStruct((N, 1, Cexp), jnp.float32))
        out_specs.append(pl.BlockSpec((1, 1, Cexp), lambda n, r: (n, 0, 0)))

    scratch = [pltpu.VMEM((win, Wp_al, Cexp), dt)]
    if use_se:
        scratch.append(pltpu.VMEM((1, Cexp), jnp.float32))

    kern = functools.partial(_fused_expand_dw_kernel, K=K, stride=stride,
                             pad=pad, H=H, W=W, Hout=Hout, Wout=Wout, tr=tr,
                             has_expand=has_expand, use_se=use_se)
    out = pl.pallas_call(
        kern,
        out_shape=tuple(out_shape) if use_se else out_shape[0],
        grid=(N, RT),
        in_specs=in_specs,
        out_specs=tuple(out_specs) if use_se else out_specs[0],
        scratch_shapes=scratch,
        compiler_params=pltpu.CompilerParams(
            # n is independent (megacore split); r carries the resident input
            # block and the SE pool accumulator -> "arbitrary".
            dimension_semantics=("parallel", "arbitrary"),
            vmem_limit_bytes=vmem_limit_bytes),
    )(*inputs)
    if use_se:
        return out
    return out, None


# ----------------------------------------------------------------------------
# Kernel 2: fused [SE FC micro-net (at m==0)] -> [SE rescale] -> [project 1x1
#           conv + BN] (+ residual add).  Grid = (N, M-tiles).
# ----------------------------------------------------------------------------
def _project_kernel(*refs, use_se, residual):
    it = iter(refs)
    h_ref = next(it)                              # (1, tm, Cexp)
    if use_se:
        pool_ref = next(it)                       # (1, 1, Cexp) f32
        w1_ref = next(it)                         # (Cexp, Csq)
        b1_ref = next(it)                         # (1, Csq)
        w2_ref = next(it)                         # (Csq, Cexp)
        b2_ref = next(it)                         # (1, Cexp)
    w_ref = next(it)                              # (Cexp, Cout) BN scale folded
    bias_ref = next(it)                           # (1, Cout) f32
    res_ref = next(it) if residual else None      # (1, tm, Cout)
    o_ref = next(it)                              # (1, tm, Cout)
    scale_ref = next(it) if use_se else None      # (1, Cexp) f32 scratch

    h = h_ref[0]
    if use_se:
        # SE FC micro-net fused in: computed once per image (m == 0), cached in
        # a VMEM scratch across this image's m tiles (no extra pallas_call, no
        # HBM hop for pooled/scale).
        @pl.when(pl.program_id(1) == 0)
        def _():
            z = jnp.dot(pool_ref[0], w1_ref[...],
                        preferred_element_type=jnp.float32) + b1_ref[...]
            z = z * jax.nn.sigmoid(z)             # SiLU
            z = jnp.dot(z, w2_ref[...],
                        preferred_element_type=jnp.float32) + b2_ref[...]
            scale_ref[...] = jax.nn.sigmoid(z)
        # TODO(synk): fold the scale into W_proj rows instead (needs one
        # lane->sublane relayout of the (Cexp,) scale) to skip this VPU pass.
        h = h * scale_ref[...].astype(h.dtype)

    y = jnp.dot(h, w_ref[...], preferred_element_type=jnp.float32)
    y = y + bias_ref[...]
    if residual:
        y = y + res_ref[0].astype(jnp.float32)
    # TODO(synk): lane-dense reshaped output slab for Cout < 128 (masked vst).
    o_ref[0] = y.astype(o_ref.dtype)


def fused_se_project(h3, pooled, se_params, w_proj, bias_proj, residual3=None,
                     *, use_se, tm=512, vmem_limit_bytes=None):
    """h3: (N, P, Cexp); pooled: (N, 1, Cexp)|None; residual3: (N, P, Cout)|None."""
    N, P, Cexp = h3.shape
    Cout = w_proj.shape[-1]
    tm = min(tm, P)
    inputs = [h3]
    in_specs = [pl.BlockSpec((1, tm, Cexp), lambda n, m: (n, m, 0))]
    if use_se:
        w1, b1, w2, b2 = se_params
        Csq = w1.shape[-1]
        inputs += [pooled, w1, b1, w2, b2]
        in_specs += [pl.BlockSpec((1, 1, Cexp), lambda n, m: (n, 0, 0)),
                     pl.BlockSpec((Cexp, Csq), lambda n, m: (0, 0)),
                     pl.BlockSpec((1, Csq), lambda n, m: (0, 0)),
                     pl.BlockSpec((Csq, Cexp), lambda n, m: (0, 0)),
                     pl.BlockSpec((1, Cexp), lambda n, m: (0, 0))]
    inputs += [w_proj, bias_proj]
    in_specs += [pl.BlockSpec((Cexp, Cout), lambda n, m: (0, 0)),
                 pl.BlockSpec((1, Cout), lambda n, m: (0, 0))]
    if residual3 is not None:
        inputs.append(residual3)
        in_specs.append(pl.BlockSpec((1, tm, Cout), lambda n, m: (n, m, 0)))
    scratch = [pltpu.VMEM((1, Cexp), jnp.float32)] if use_se else []
    kern = functools.partial(_project_kernel, use_se=use_se,
                             residual=residual3 is not None)
    return pl.pallas_call(
        kern,
        out_shape=jax.ShapeDtypeStruct((N, P, Cout), h3.dtype),
        grid=(N, pl.cdiv(P, tm)),
        in_specs=in_specs,
        out_specs=pl.BlockSpec((1, tm, Cout), lambda n, m: (n, m, 0)),
        scratch_shapes=scratch,
        compiler_params=pltpu.CompilerParams(
            dimension_semantics=("parallel",
                                 "arbitrary" if use_se else "parallel"),
            vmem_limit_bytes=vmem_limit_bytes),
    )(*inputs)


# ----------------------------------------------------------------------------
# InvertedResidual forward (inference semantics).
# ----------------------------------------------------------------------------
def inverted_residual(x_nchw, p, *, K, stride, use_se, use_res_connect,
                      has_expand, dw_tile_rows=16, proj_tile_m=512):
    N, Cin, H, W = x_nchw.shape
    dt = x_nchw.dtype
    # NOTE: NCHW <-> NHWC kept at the boundary so external semantics match the
    # PyTorch module; drop these transposes if the surrounding model is NHWC.
    x_nhwc = jnp.transpose(x_nchw, (0, 2, 3, 1))

    # Fold BN scale into conv weights ahead of time (bias stays in epilogue).
    # Weights follow the activation dtype (bf16 hits the v6e/v7x MXU peak).
    w_dw = (p["w_dw"] * p["scale_dw"]).astype(dt)
    w_proj = (p["w_proj"] * p["scale_proj"]).astype(dt)
    w_exp = (p["w_exp"] * p["scale_exp"]).astype(dt) if has_expand else None
    b_exp = p["bias_exp"] if has_expand else None

    # Fused expand(1x1)+BN+SiLU -> depthwise KxK+BN+SiLU (+ SE average pool).
    h, pooled = fused_expand_dwconv(
        x_nhwc, w_exp, b_exp, w_dw, p["bias_dw"], K=K, stride=stride,
        has_expand=has_expand, use_se=use_se, tile_rows=dw_tile_rows)
    _, Ho, Wo, Cexp = h.shape
    P = Ho * Wo

    # Fused SE-FC -> SE rescale -> project 1x1 + BN (+ residual add).
    residual3 = x_nhwc.reshape(N, H * W, Cin) if use_res_connect else None
    se_params = (p["w_se1"], p["b_se1"], p["w_se2"], p["b_se2"]) if use_se else None
    out3 = fused_se_project(h.reshape(N, P, Cexp), pooled, se_params, w_proj,
                            p["bias_proj"], residual3, use_se=use_se,
                            tm=proj_tile_m)
    # TODO(synk): DropPath (stochastic depth) is training-mode RNG; identity
    # here (drop_prob=0 / eval), matching PyTorch eval semantics.
    Cout = out3.shape[-1]
    return jnp.transpose(out3.reshape(N, Ho, Wo, Cout), (0, 3, 1, 2))


# ----------------------------------------------------------------------------
# Pure-JAX reference (same folded-BN inference semantics) for validation.
# ----------------------------------------------------------------------------
def ref_forward(x_nchw, p, *, K, stride, use_se, use_res_connect, has_expand):
    x = jnp.transpose(x_nchw, (0, 2, 3, 1))
    h = x
    if has_expand:
        h = jnp.einsum("nhwc,cd->nhwd", h, p["w_exp"]) * p["scale_exp"] + p["bias_exp"]
        h = h * jax.nn.sigmoid(h)
    C = h.shape[-1]
    pad = (K - 1) // 2
    w_hwio = p["w_dw"].reshape(K, K, 1, C)
    h = jax.lax.conv_general_dilated(
        h, w_hwio, window_strides=(stride, stride),
        padding=((pad, pad), (pad, pad)),
        dimension_numbers=("NHWC", "HWIO", "NHWC"), feature_group_count=C)
    h = h * p["scale_dw"] + p["bias_dw"]
    h = h * jax.nn.sigmoid(h)
    if use_se:
        pooled = jnp.mean(h, axis=(1, 2), keepdims=True)
        s = jnp.einsum("nxyc,cd->nxyd", pooled, p["w_se1"]) + p["b_se1"]
        s = s * jax.nn.sigmoid(s)
        s = jnp.einsum("nxyc,cd->nxyd", s, p["w_se2"]) + p["b_se2"]
        h = h * jax.nn.sigmoid(s)
    h = jnp.einsum("nhwc,cd->nhwd", h, p["w_proj"]) * p["scale_proj"] + p["bias_proj"]
    if use_res_connect:
        h = h + x
    return jnp.transpose(h, (0, 3, 1, 2))


# ----------------------------------------------------------------------------
# Deterministic parameter construction (BN in inference form: scale, bias).
# ----------------------------------------------------------------------------
def _bn_fold(keys, C, eps):
    gamma = 1.0 + 0.1 * jax.random.normal(keys[0], (C,), jnp.float32)
    beta = 0.1 * jax.random.normal(keys[1], (C,), jnp.float32)
    mean = 0.1 * jax.random.normal(keys[2], (C,), jnp.float32)
    var = jnp.abs(jax.random.normal(keys[3], (C,), jnp.float32)) * 0.1 + 0.5
    scale = gamma / jnp.sqrt(var + eps)
    bias = beta - mean * scale
    return scale[None, :], bias[None, :]


def make_params(key, Cin, Cexp, Cout, K, Csq, eps=1e-3):
    ks = jax.random.split(key, 20)
    p = {}
    p["w_exp"] = 0.1 * jax.random.normal(ks[0], (Cin, Cexp), jnp.float32)
    p["scale_exp"], p["bias_exp"] = _bn_fold(ks[1:5], Cexp, eps)
    p["w_dw"] = 0.1 * jax.random.normal(ks[5], (K * K, Cexp), jnp.float32)
    p["scale_dw"], p["bias_dw"] = _bn_fold(ks[6:10], Cexp, eps)
    p["w_se1"] = 0.1 * jax.random.normal(ks[10], (Cexp, Csq), jnp.float32)
    p["b_se1"] = 0.1 * jax.random.normal(ks[11], (1, Csq), jnp.float32)
    p["w_se2"] = 0.1 * jax.random.normal(ks[12], (Csq, Cexp), jnp.float32)
    p["b_se2"] = 0.1 * jax.random.normal(ks[13], (1, Cexp), jnp.float32)
    p["w_proj"] = 0.1 * jax.random.normal(ks[14], (Cexp, Cout), jnp.float32)
    p["scale_proj"], p["bias_proj"] = _bn_fold(ks[15:19], Cout, eps)
    return p


if __name__ == "__main__":
    # InvertedResidualConfig(kernel=3, input_c=16, out_c=16, expanded_ratio=4,
    #                        stride=1, use_se=True, drop_rate=0.2, width=1.0)
    K, Cin, Cout, ratio, stride, use_se = 3, 16, 16, 4, 1, True
    Cexp = Cin * ratio                # 64
    Csq = Cin // 4                    # SqueezeExcitation squeeze channels
    use_res_connect = (stride == 1 and Cin == Cout)
    has_expand = (Cexp != Cin)

    N, H, W = 2, 16, 16
    key = jax.random.PRNGKey(0)
    kx_, kp = jax.random.split(key)
    x = jax.random.normal(kx_, (N, Cin, H, W), jnp.float32)   # NCHW, like PyTorch
    params = make_params(kp, Cin, Cexp, Cout, K, Csq)

    ref = ref_forward(x, params, K=K, stride=stride, use_se=use_se,
                      use_res_connect=use_res_connect, has_expand=has_expand)

    # f32 path; dw_tile_rows=8 exercises multi-row-tile grid, halo masking and
    # the cross-tile SE pool accumulation.
    out = inverted_residual(x, params, K=K, stride=stride, use_se=use_se,
                            use_res_connect=use_res_connect,
                            has_expand=has_expand, dw_tile_rows=8)
    out = jax.block_until_ready(out)
    assert out.shape == (N, Cout, H, W)
    assert jnp.allclose(out, ref, rtol=1e-4, atol=1e-4)

    # bf16 activation/weight path (f32 accumulation); single row tile per image.
    out_bf16 = inverted_residual(x.astype(jnp.bfloat16), params, K=K,
                                 stride=stride, use_se=use_se,
                                 use_res_connect=use_res_connect,
                                 has_expand=has_expand)
    out_bf16 = jax.block_until_ready(out_bf16)
    assert jnp.allclose(out_bf16.astype(jnp.float32), ref, rtol=5e-2, atol=5e-2)

    print("KERNEL_OK")
</pallas_src>

<mosaic_0001>
module attributes {stable_mosaic.version = 11 : i64} {
  func.func @_fused_expand_dw_kernel(%arg0: i32, %arg1: i32, %arg2: memref<1x18x24x16xf32, #tpu.memory_space<vmem>>, %arg3: memref<16x64xf32, #tpu.memory_space<vmem>>, %arg4: memref<1x64xf32, #tpu.memory_space<vmem>>, %arg5: memref<9x64xf32, #tpu.memory_space<vmem>>, %arg6: memref<1x64xf32, #tpu.memory_space<vmem>>, %arg7: memref<1x8x16x64xf32, #tpu.memory_space<vmem>>, %arg8: memref<1x1x64xf32, #tpu.memory_space<vmem>>, %arg9: memref<10x24x64xf32, #tpu.memory_space<vmem>>, %arg10: memref<1x64xf32, #tpu.memory_space<vmem>>) attributes {dimension_semantics = [#tpu.dimension_semantics<parallel>, #tpu.dimension_semantics<arbitrary>], iteration_bounds = array<i64: 2, 2>, scalar_prefetch = 0 : i64, scratch_operands = 2 : i64, tpu.core_type = #tpu.core_type<tc>, window_params = [{transform_indices = @transform_0, window_bounds = array<i64: 1, 18, 24, 16>}, {pipeline_mode = #tpu.pipeline_mode<synchronous>, transform_indices = @transform_1, window_bounds = array<i64: 16, 64>}, {pipeline_mode = #tpu.pipeline_mode<synchronous>, transform_indices = @transform_2, window_bounds = array<i64: 1, 64>}, {pipeline_mode = #tpu.pipeline_mode<synchronous>, transform_indices = @transform_3, window_bounds = array<i64: 9, 64>}, {pipeline_mode = #tpu.pipeline_mode<synchronous>, transform_indices = @transform_4, window_bounds = array<i64: 1, 64>}, {transform_indices = @transform_5, window_bounds = array<i64: 1, 8, 16, 64>}, {transform_indices = @transform_6, window_bounds = array<i64: 1, 1, 64>}]} {
    %c8_i32 = arith.constant 8 : i32
    %0 = arith.muli %arg1, %c8_i32 : i32
    %c0 = arith.constant 0 : index
    %1 = arith.index_cast %0 : i32 to index
    %c0_0 = arith.constant 0 : index
    %c0_1 = arith.constant 0 : index
    %2 = vector.load %arg2[%c0, %1, %c0_0, %c0_1] : memref<1x18x24x16xf32, #tpu.memory_space<vmem>>, vector<1x10x24x16xf32>
    %3 = vector.shape_cast %2 : vector<1x10x24x16xf32> to vector<10x24x16xf32>
    %4 = vector.shape_cast %3 : vector<10x24x16xf32> to vector<240x16xf32>
    %c0_2 = arith.constant 0 : index
    %c0_3 = arith.constant 0 : index
    %5 = vector.load %arg3[%c0_2, %c0_3] : memref<16x64xf32, #tpu.memory_space<vmem>>, vector<16x64xf32>
    %cst = arith.constant dense<0.000000e+00> : vector<240x64xf32>
    %6 = tpu.matmul %4, %5, %cst {dimension_numbers = #tpu.dot_dimension_numbers<[1], [0], [0], [1], [0, 0, 1, 1], [], []>} : vector<240x16xf32>, vector<16x64xf32>, vector<240x64xf32> -> vector<240x64xf32>
    %c0_4 = arith.constant 0 : index
    %c0_5 = arith.constant 0 : index
    %7 = vector.load %arg4[%c0_4, %c0_5] : memref<1x64xf32, #tpu.memory_space<vmem>>, vector<1x64xf32>
    %8 = vector.broadcast %7 : vector<1x64xf32> to vector<240x64xf32>
    %9 = arith.addf %6, %8 : vector<240x64xf32>
    %10 = arith.negf %9 : vector<240x64xf32>
    %11 = math.exp %10 : vector<240x64xf32>
    %cst_6 = arith.constant 1.000000e+00 : f32
    %12 = vector.broadcast %cst_6 : f32 to vector<240x64xf32>
    %13 = arith.addf %12, %11 : vector<240x64xf32>
    %14 = arith.divf %12, %13 : vector<240x64xf32>
    %15 = arith.mulf %9, %14 : vector<240x64xf32>
    %16 = vector.shape_cast %15 : vector<240x64xf32> to vector<10x24x64xf32>
    %17 = tpu.iota {dimensions = array<i32: 0>} : vector<10x1x1xi32>
    %18 = vector.broadcast %0 : i32 to vector<10x1x1xi32>
    %19 = arith.addi %18, %17 : vector<10x1x1xi32>
    %20 = tpu.iota {dimensions = array<i32: 1>} : vector<1x24x1xi32>
    %c1_i32 = arith.constant 1 : i32
    %21 = vector.broadcast %c1_i32 : i32 to vector<10x1x1xi32>
    %22 = arith.cmpi sge, %19, %21 : vector<10x1x1xi32>
    %c17_i32 = arith.constant 17 : i32
    %23 = vector.broadcast %c17_i32 : i32 to vector<10x1x1xi32>
    %24 = arith.cmpi slt, %19, %23 : vector<10x1x1xi32>
    %25 = arith.andi %22, %24 : vector<10x1x1xi1>
    %c1_i32_7 = arith.constant 1 : i32
    %26 = vector.broadcast %c1_i32_7 : i32 to vector<1x24x1xi32>
    %27 = arith.cmpi sge, %20, %26 : vector<1x24x1xi32>
    %28 = vector.broadcast %25 : vector<10x1x1xi1> to vector<10x24x1xi1>
    %29 = vector.broadcast %27 : vector<1x24x1xi1> to vector<10x24x1xi1>
    %30 = arith.andi %28, %29 : vector<10x24x1xi1>
    %c17_i32_8 = arith.constant 17 : i32
    %31 = vector.broadcast %c17_i32_8 : i32 to vector<1x24x1xi32>
    %32 = arith.cmpi slt, %20, %31 : vector<1x24x1xi32>
    %33 = vector.broadcast %32 : vector<1x24x1xi1> to vector<10x24x1xi1>
    %34 = arith.andi %30, %33 : vector<10x24x1xi1>
    %cst_9 = arith.constant 0.000000e+00 : f32
    %35 = vector.shape_cast %34 : vector<10x24x1xi1> to vector<10x24x1xi1>
    %36 = vector.broadcast %35 : vector<10x24x1xi1> to vector<10x24x64xi1>
    %37 = vector.broadcast %cst_9 : f32 to vector<10x24x64xf32>
    %38 = arith.select %36, %16, %37 : vector<10x24x64xi1>, vector<10x24x64xf32>
    %c0_10 = arith.constant 0 : index
    %c0_11 = arith.constant 0 : index
    %c0_12 = arith.constant 0 : index
    %39 = vector.load %arg9[%c0_10, %c0_11, %c0_12] : memref<10x24x64xf32, #tpu.memory_space<vmem>>, vector<10x24x64xf32>
    tpu.vector_store %arg9[%c0_10, %c0_11, %c0_12], %38 {strides = array<i32>} : memref<10x24x64xf32, #tpu.memory_space<vmem>>, vector<10x24x64xf32>,
    %c0_13 = arith.constant 0 : index
    %c0_14 = arith.constant 0 : index
    %c0_15 = arith.constant 0 : index
    %40 = vector.load %arg9[%c0_13, %c0_14, %c0_15] : memref<10x24x64xf32, #tpu.memory_space<vmem>>, vector<10x24x64xf32>
    %c0_16 = arith.constant 0 : index
    %c0_17 = arith.constant 0 : index
    %41 = vector.load %arg5[%c0_16, %c0_17] : memref<9x64xf32, #tpu.memory_space<vmem>>, vector<9x64xf32>
    %cst_18 = arith.constant 0.000000e+00 : f32
    %42 = vector.broadcast %cst_18 : f32 to vector<8x16x64xf32>
    %43 = vector.extract_strided_slice %40 {offsets = [0, 0, 0], sizes = [10, 16, 64], strides = [1, 1, 1]} : vector<10x24x64xf32> to vector<10x16x64xf32>
    %44 = vector.extract_strided_slice %43 {offsets = [0, 0, 0], sizes = [8, 16, 64], strides = [1, 1, 1]} : vector<10x16x64xf32> to vector<8x16x64xf32>
    %45 = vector.extract_strided_slice %41 {offsets = [0, 0], sizes = [1, 64], strides = [1, 1]} : vector<9x64xf32> to vector<1x64xf32>
    %46 = vector.shape_cast %45 : vector<1x64xf32> to vector<64xf32>
    %47 = vector.shape_cast %46 : vector<64xf32> to vector<1x1x64xf32>
    %48 = vector.broadcast %47 : vector<1x1x64xf32> to vector<8x16x64xf32>
    %49 = arith.mulf %44, %48 : vector<8x16x64xf32>
    %50 = arith.addf %42, %49 : vector<8x16x64xf32>
    %51 = vector.extract_strided_slice %43 {offsets = [1, 0, 0], sizes = [8, 16, 64], strides = [1, 1, 1]} : vector<10x16x64xf32> to vector<8x16x64xf32>
    %52 = vector.extract_strided_slice %41 {offsets = [3, 0], sizes = [1, 64], strides = [1, 1]} : vector<9x64xf32> to vector<1x64xf32>
    %53 = vector.shape_cast %52 : vector<1x64xf32> to vector<64xf32>
    %54 = vector.shape_cast %53 : vector<64xf32> to vector<1x1x64xf32>
    %55 = vector.broadcast %54 : vector<1x1x64xf32> to vector<8x16x64xf32>
    %56 = arith.mulf %51, %55 : vector<8x16x64xf32>
    %57 = arith.addf %50, %56 : vector<8x16x64xf32>
    %58 = vector.extract_strided_slice %43 {offsets = [2, 0, 0], sizes = [8, 16, 64], strides = [1, 1, 1]} : vector<10x16x64xf32> to vector<8x16x64xf32>
    %59 = vector.extract_strided_slice %41 {offsets = [6, 0], sizes = [1, 64], strides = [1, 1]} : vector<9x64xf32> to vector<1x64xf32>
    %60 = vector.shape_cast %59 : vector<1x64xf32> to vector<64xf32>
    %61 = vector.shape_cast %60 : vector<64xf32> to vector<1x1x64xf32>
    %62 = vector.broadcast %61 : vector<1x1x64xf32> to vector<8x16x64xf32>
    %63 = arith.mulf %58, %62 : vector<8x16x64xf32>
    %64 = arith.addf %57, %63 : vector<8x16x64xf32>
    %65 = vector.extract_strided_slice %40 {offsets = [0, 1, 0], sizes = [10, 16, 64], strides = [1, 1, 1]} : vector<10x24x64xf32> to vector<10x16x64xf32>
    %66 = vector.extract_strided_slice %65 {offsets = [0, 0, 0], sizes = [8, 16, 64], strides = [1, 1, 1]} : vector<10x16x64xf32> to vector<8x16x64xf32>
    %67 = vector.extract_strided_slice %41 {offsets = [1, 0], sizes = [1, 64], strides = [1, 1]} : vector<9x64xf32> to vector<1x64xf32>
    %68 = vector.shape_cast %67 : vector<1x64xf32> to vector<64xf32>
    %69 = vector.shape_cast %68 : vector<64xf32> to vector<1x1x64xf32>
    %70 = vector.broadcast %69 : vector<1x1x64xf32> to vector<8x16x64xf32>
    %71 = arith.mulf %66, %70 : vector<8x16x64xf32>
    %72 = arith.addf %64, %71 : vector<8x16x64xf32>
    %73 = vector.extract_strided_slice %65 {offsets = [1, 0, 0], sizes = [8, 16, 64], strides = [1, 1, 1]} : vector<10x16x64xf32> to vector<8x16x64xf32>
    %74 = vector.extract_strided_slice %41 {offsets = [4, 0], sizes = [1, 64], strides = [1, 1]} : vector<9x64xf32> to vector<1x64xf32>
    %75 = vector.shape_cast %74 : vector<1x64xf32> to vector<64xf32>
    %76 = vector.shape_cast %75 : vector<64xf32> to vector<1x1x64xf32>
    %77 = vector.broadcast %76 : vector<1x1x64xf32> to vector<8x16x64xf32>
    %78 = arith.mulf %73, %77 : vector<8x16x64xf32>
    %79 = arith.addf %72, %78 : vector<8x16x64xf32>
    %80 = vector.extract_strided_slice %65 {offsets = [2, 0, 0], sizes = [8, 16, 64], strides = [1, 1, 1]} : vector<10x16x64xf32> to vector<8x16x64xf32>
    %81 = vector.extract_strided_slice %41 {offsets = [7, 0], sizes = [1, 64], strides = [1, 1]} : vector<9x64xf32> to vector<1x64xf32>
    %82 = vector.shape_cast %81 : vector<1x64xf32> to vector<64xf32>
    %83 = vector.shape_cast %82 : vector<64xf32> to vector<1x1x64xf32>
    %84 = vector.broadcast %83 : vector<1x1x64xf32> to vector<8x16x64xf32>
    %85 = arith.mulf %80, %84 : vector<8x16x64xf32>
    %86 = arith.addf %79, %85 : vector<8x16x64xf32>
    %87 = vector.extract_strided_slice %40 {offsets = [0, 2, 0], sizes = [10, 16, 64], strides = [1, 1, 1]} : vector<10x24x64xf32> to vector<10x16x64xf32>
    %88 = vector.extract_strided_slice %87 {offsets = [0, 0, 0], sizes = [8, 16, 64], strides = [1, 1, 1]} : vector<10x16x64xf32> to vector<8x16x64xf32>
    %89 = vector.extract_strided_slice %41 {offsets = [2, 0], sizes = [1, 64], strides = [1, 1]} : vector<9x64xf32> to vector<1x64xf32>
    %90 = vector.shape_cast %89 : vector<1x64xf32> to vector<64xf32>
    %91 = vector.shape_cast %90 : vector<64xf32> to vector<1x1x64xf32>
    %92 = vector.broadcast %91 : vector<1x1x64xf32> to vector<8x16x64xf32>
    %93 = arith.mulf %88, %92 : vector<8x16x64xf32>
    %94 = arith.addf %86, %93 : vector<8x16x64xf32>
    %95 = vector.extract_strided_slice %87 {offsets = [1, 0, 0], sizes = [8, 16, 64], strides = [1, 1, 1]} : vector<10x16x64xf32> to vector<8x16x64xf32>
    %96 = vector.extract_strided_slice %41 {offsets = [5, 0], sizes = [1, 64], strides = [1, 1]} : vector<9x64xf32> to vector<1x64xf32>
    %97 = vector.shape_cast %96 : vector<1x64xf32> to vector<64xf32>
    %98 = vector.shape_cast %97 : vector<64xf32> to vector<1x1x64xf32>
    %99 = vector.broadcast %98 : vector<1x1x64xf32> to vector<8x16x64xf32>
    %100 = arith.mulf %95, %99 : vector<8x16x64xf32>
    %101 = arith.addf %94, %100 : vector<8x16x64xf32>
    %102 = vector.extract_strided_slice %87 {offsets = [2, 0, 0], sizes = [8, 16, 64], strides = [1, 1, 1]} : vector<10x16x64xf32> to vector<8x16x64xf32>
    %103 = vector.extract_strided_slice %41 {offsets = [8, 0], sizes = [1, 64], strides = [1, 1]} : vector<9x64xf32> to vector<1x64xf32>
    %104 = vector.shape_cast %103 : vector<1x64xf32> to vector<64xf32>
    %105 = vector.shape_cast %104 : vector<64xf32> to vector<1x1x64xf32>
    %106 = vector.broadcast %105 : vector<1x1x64xf32> to vector<8x16x64xf32>
    %107 = arith.mulf %102, %106 : vector<8x16x64xf32>
    %108 = arith.addf %101, %107 : vector<8x16x64xf32>
    %c0_19 = arith.constant 0 : index
    %c0_20 = arith.constant 0 : index
    %109 = vector.load %arg6[%c0_19, %c0_20] : memref<1x64xf32, #tpu.memory_space<vmem>>, vector<1x64xf32>
    %110 = vector.shape_cast %109 : vector<1x64xf32> to vector<1x1x64xf32>
    %111 = vector.broadcast %110 : vector<1x1x64xf32> to vector<8x16x64xf32>
    %112 = arith.addf %108, %111 : vector<8x16x64xf32>
    %113 = arith.negf %112 : vector<8x16x64xf32>
    %114 = math.exp %113 : vector<8x16x64xf32>
    %cst_21 = arith.constant 1.000000e+00 : f32
    %115 = vector.broadcast %cst_21 : f32 to vector<8x16x64xf32>
    %116 = arith.addf %115, %114 : vector<8x16x64xf32>
    %117 = arith.divf %115, %116 : vector<8x16x64xf32>
    %118 = arith.mulf %112, %117 : vector<8x16x64xf32>
    %c0_22 = arith.constant 0 : index
    %c0_23 = arith.constant 0 : index
    %c0_24 = arith.constant 0 : index
    %c0_25 = arith.constant 0 : index
    %119 = vector.load %arg7[%c0_22, %c0_23, %c0_24, %c0_25] : memref<1x8x16x64xf32, #tpu.memory_space<vmem>>, vector<1x8x16x64xf32>
    %120 = vector.shape_cast %119 : vector<1x8x16x64xf32> to vector<8x16x64xf32>
    %121 = vector.shape_cast %118 : vector<8x16x64xf32> to vector<1x8x16x64xf32>
    tpu.vector_store %arg7[%c0_22, %c0_23, %c0_24, %c0_25], %121 {strides = array<i32>} : memref<1x8x16x64xf32, #tpu.memory_space<vmem>>, vector<1x8x16x64xf32>,
    %c0_i32 = arith.constant 0 : i32
    %122 = arith.cmpi eq, %arg1, %c0_i32 : i32
    %123 = arith.extui %122 : i1 to i32
    %c0_i32_26 = arith.constant 0 : i32
    %124 = arith.cmpi ne, %123, %c0_i32_26 : i32
    scf.if %124 {
      %cst_36 = arith.constant 0.000000e+00 : f32
      %143 = vector.broadcast %cst_36 : f32 to vector<1x64xf32>
      %c0_37 = arith.constant 0 : index
      %c0_38 = arith.constant 0 : index
      %144 = vector.load %arg10[%c0_37, %c0_38] : memref<1x64xf32, #tpu.memory_space<vmem>>, vector<1x64xf32>
      tpu.vector_store %arg10[%c0_37, %c0_38], %143 {strides = array<i32>} : memref<1x64xf32, #tpu.memory_space<vmem>>, vector<1x64xf32>,
    } else {
    }
    %c8_i32_27 = arith.constant 8 : i32
    %125 = arith.muli %arg1, %c8_i32_27 : i32
    %126 = tpu.iota {dimensions = array<i32: 0>} : vector<8x1x1xi32>
    %127 = vector.broadcast %125 : i32 to vector<8x1x1xi32>
    %128 = arith.addi %127, %126 : vector<8x1x1xi32>
    %c16_i32 = arith.constant 16 : i32
    %129 = vector.broadcast %c16_i32 : i32 to vector<8x1x1xi32>
    %130 = arith.cmpi slt, %128, %129 : vector<8x1x1xi32>
    %cst_28 = arith.constant 0.000000e+00 : f32
    %131 = vector.shape_cast %130 : vector<8x1x1xi1> to vector<8x1x1xi1>
    %132 = vector.broadcast %131 : vector<8x1x1xi1> to vector<8x16x64xi1>
    %133 = vector.broadcast %cst_28 : f32 to vector<8x16x64xf32>
    %134 = arith.select %132, %118, %133 : vector<8x16x64xi1>, vector<8x16x64xf32>
    %c0_29 = arith.constant 0 : index
    %c0_30 = arith.constant 0 : index
    %135 = vector.load %arg10[%c0_29, %c0_30] : memref<1x64xf32, #tpu.memory_space<vmem>>, vector<1x64xf32>
    %cst_31 = arith.constant dense<0.000000e+00> : vector<64xf32>
    %136 = vector.multi_reduction <add>, %134, %cst_31 [0, 1] : vector<8x16x64xf32> to vector<64xf32>
    %137 = vector.shape_cast %136 : vector<64xf32> to vector<1x64xf32>
    %138 = arith.addf %135, %137 : vector<1x64xf32>
    %c0_32 = arith.constant 0 : index
    %c0_33 = arith.constant 0 : index
    %139 = vector.load %arg10[%c0_32, %c0_33] : memref<1x64xf32, #tpu.memory_space<vmem>>, vector<1x64xf32>
    tpu.vector_store %arg10[%c0_32, %c0_33], %138 {strides = array<i32>} : memref<1x64xf32, #tpu.memory_space<vmem>>, vector<1x64xf32>,
    %c1_i32_34 = arith.constant 1 : i32
    %140 = arith.cmpi eq, %arg1, %c1_i32_34 : i32
    %141 = arith.extui %140 : i1 to i32
    %c0_i32_35 = arith.constant 0 : i32
    %142 = arith.cmpi ne, %141, %c0_i32_35 : i32
    scf.if %142 {
      %c0_36 = arith.constant 0 : index
      %c0_37 = arith.constant 0 : index
      %143 = vector.load %arg10[%c0_36, %c0_37] : memref<1x64xf32, #tpu.memory_space<vmem>>, vector<1x64xf32>
      %cst_38 = arith.constant 3.906250e-03 : f32
      %144 = vector.broadcast %cst_38 : f32 to vector<1x64xf32>
      %145 = arith.mulf %143, %144 : vector<1x64xf32>
      %146 = vector.shape_cast %145 : vector<1x64xf32> to vector<1x1x64xf32>
      %c0_39 = arith.constant 0 : index
      %c0_40 = arith.constant 0 : index
      %c0_41 = arith.constant 0 : index
      %147 = vector.load %arg8[%c0_39, %c0_40, %c0_41] : memref<1x1x64xf32, #tpu.memory_space<vmem>>, vector<1x1x64xf32>
      tpu.vector_store %arg8[%c0_39, %c0_40, %c0_41], %146 {strides = array<i32>} : memref<1x1x64xf32, #tpu.memory_space<vmem>>, vector<1x1x64xf32>,
    } else {
    }
    return
  }
  func.func @transform_0(%arg0: i32, %arg1: i32) -> (i32, i32, i32, i32) {
    %c0_i32 = arith.constant 0 : i32
    %c0_i32_0 = arith.constant 0 : i32
    %c0_i32_1 = arith.constant 0 : i32
    %c0_i32_2 = arith.constant 0 : i32
    return %arg0, %c0_i32, %c0_i32_0, %c0_i32_1 : i32, i32, i32, i32
  }
  func.func @transform_1(%arg0: i32, %arg1: i32) -> (i32, i32) {
    %c0_i32 = arith.constant 0 : i32
    %c0_i32_0 = arith.constant 0 : i32
    %c0_i32_1 = arith.constant 0 : i32
    return %c0_i32, %c0_i32_0 : i32, i32
  }
  func.func @transform_2(%arg0: i32, %arg1: i32) -> (i32, i32) {
    %c0_i32 = arith.constant 0 : i32
    %c0_i32_0 = arith.constant 0 : i32
    %c0_i32_1 = arith.constant 0 : i32
    return %c0_i32, %c0_i32_0 : i32, i32
  }
  func.func @transform_3(%arg0: i32, %arg1: i32) -> (i32, i32) {
    %c0_i32 = arith.constant 0 : i32
    %c0_i32_0 = arith.constant 0 : i32
    %c0_i32_1 = arith.constant 0 : i32
    return %c0_i32, %c0_i32_0 : i32, i32
  }
  func.func @transform_4(%arg0: i32, %arg1: i32) -> (i32, i32) {
    %c0_i32 = arith.constant 0 : i32
    %c0_i32_0 = arith.constant 0 : i32
    %c0_i32_1 = arith.constant 0 : i32
    return %c0_i32, %c0_i32_0 : i32, i32
  }
  func.func @transform_5(%arg0: i32, %arg1: i32) -> (i32, i32, i32, i32) {
    %c0_i32 = arith.constant 0 : i32
    %c0_i32_0 = arith.constant 0 : i32
    %c0_i32_1 = arith.constant 0 : i32
    return %arg0, %arg1, %c0_i32, %c0_i32_0 : i32, i32, i32, i32
  }
  func.func @transform_6(%arg0: i32, %arg1: i32) -> (i32, i32, i32) {
    %c0_i32 = arith.constant 0 : i32
    %c0_i32_0 = arith.constant 0 : i32
    %c0_i32_1 = arith.constant 0 : i32
    return %arg0, %c0_i32, %c0_i32_0 : i32, i32, i32
  }
}

</mosaic_0001>

<bundles_post_ra>
// kernel: tpu_custom_call.1
= control target key start
LH: loop header
LB: loop body
LE: loop exit
PB: predicated region body
PF: predicated region fallthrough
CT: control target
= control target key end

     0   :  { %s6282_s0 = inlined_call_operand.vmem [shape: f32[2,18,24,16], index: 0, kind: input, shape index: {}]   ;;  %s6283_s1 = inlined_call_operand.vmem [shape: f32[16,64], index: 1, kind: input, shape index: {}]   ;;  %s6284_s2 = inlined_call_operand.vmem [shape: f32[1,64], index: 2, kind: input, shape index: {}]   ;;  %s6285_s3 = inlined_call_operand.vmem [shape: f32[9,64], index: 3, kind: input, shape index: {}]   ;;  %s6286_s4 = inlined_call_operand.vmem [shape: f32[1,64], index: 4, kind: input, shape index: {}]   ;;  %s6287_s5 = inlined_call_operand.hbm [shape: f32[2,16,16,64], index: 5, kind: output, shape index: {0}]   ;;  %s6288_s6 = inlined_call_operand.hbm [shape: f32[2,1,64], index: 6, kind: output, shape index: {1}]  }
   0x1   :  { %6363 = sst [smem:[#allocation120_spill]] %s6282_s0 }
   0x2   :  { %6364 = sst [smem:[#allocation121_spill]] %s6283_s1 }
   0x3   :  { %6365 = sst [smem:[#allocation122_spill]] %s6284_s2 }
   0x4   :  { %6366 = sst [smem:[#allocation123_spill]] %s6285_s3 }
   0x5   :  { %6367 = sst [smem:[#allocation124_spill]] %s6286_s4 }
   0x6   :  { %12 = vsyncpa [#allocation5], 0 }
   0x7   :  { %14 = vsyncpa [#allocation5 + $0x1], 0 }
   0x8   :  { %15 = vsyncpa [#allocation7], 0 }
   0x9   :  { %17 = vsyncpa [#allocation7 + $0x1], 0  ;;  %s3413_s21 = smov 0   ;;  %s3415_s22 = smov 0  }
   0xa   :  { %s3417_s23 = smov 0   ;;  %s3419_s24 = smov 0  }
   0xb   :  { %s3421_s25 = smov 0   ;;  %s3423_s26 = smov 0  }
   0xc   :  { %s3425_s27 = smov 0   ;;  %s3427_s28 = smov 0  }
   0xd   :  { %s3429_s29 = smov 0   ;;  %s3431_s30 = smov 0  }
   0xe   :  { %s3433_s7 = smov 0  }
   0xf LB: > { %6368 = sst [smem:[#allocation10_spill]] %s3353_s26  ;;  %s2826_s8 = sadd.s32 4294967295, %s3373_s7   ;;  %s3373_s7 = sphi %s3433_s7, %s23_s7   ;;  %s3369_s30 = sphi %s3431_s30, %s6983_s30   ;;  %s3365_s29 = sphi %s3429_s29, %s6982_s29   ;;  %s3361_s28 = sphi %s3427_s28, %s6981_s28   ;;  %s3357_s27 = sphi %s3425_s27, %s6980_s27   ;;  %s3353_s26 = sphi %s3423_s26, %s6979_s26   ;;  %s3349_s25 = sphi %s3421_s25, %s6988_s25   ;;  %s3345_s24 = sphi %s3419_s24, %s6987_s24   ;;  %s3341_s23 = sphi %s3417_s23, %s6986_s23   ;;  %s3337_s22 = sphi %s3415_s22, %s6985_s22   ;;  %s3333_s21 = sphi %s3413_s21, %s6984_s21  }
  0x10   : > { %6369 = sst [smem:[#allocation11_spill]] %s3365_s29  ;;  %s2827_s9 = sadd.s32 4294967294, %s3373_s7  }
  0x11   : > { %6370 = sst [smem:[#allocation12_spill]] %s3369_s30  ;;  %s32_s10 = sadd.s32 1, %s3365_s29 }
  0x12   : > { %s35_s11 = sadd.s32 1, %s3369_s30  ;;  %p33_p0 = scmp.ge.s32.totalorder %s32_s10, 2 }
  0x13   : > { %s154_s12 = sadd.s32 1, %s3353_s26  ;;  %p164_p1 = scmp.ne.s32.totalorder %s3353_s26, %s3349_s25 }
  0x14   : > { %p3475_p2 = scmp.eq.s32.totalorder %s2826_s8, 3  ;;  %s6990_s10 = smov (%p33_p0, %s32_s10), 0 }
  0x15   : > { %6372 = sst [smem:[#allocation13_spill]] %s6990_s10  ;;  %s6992_s11 = smov (!%p33_p0, %s35_s11), %s3369_s30 }
  0x16   : > { %s150_s14 = ssub.s32 %s3365_s29, %s6990_s10  ;;  %p3486_p3 = por %p3475_p2, %p164_p1 }
  0x17   : > { %p37_p4 = scmp.ge.s32.totalorder %s6992_s11, 2  ;;  %p170_p5 = scmp.ne.s32.totalorder %s3349_s25, %s3345_s24 }
  0x18   : > { %p3492_p6 = scmp.eq.s32.totalorder %s2827_s9, 3  ;;  %s180_s17 = sadd.s32 1, %s3341_s23 }
  0x19   : > { %s6994_s11 = smov (%p37_p4, %s6992_s11), 0  ;;  %p190_p8 = scmp.ne.s32.totalorder %s3341_s23, %s3337_s22 }
  0x1a   : > { %6375 = sst [smem:[#allocation14_spill]] %s6994_s11  ;;  %p3501_p7 = por %p3492_p6, %p170_p5 }
  0x1b   : > { %s149_s19 = ssub.s32 %s3369_s30, %s6994_s11  ;;  %p196_p9 = scmp.ne.s32.totalorder %s3337_s22, %s3333_s21 }
  0x1c   : > { %s151_s20 = sor.u32 %s150_s14, %s149_s19  ;;  %p178_p10 = scmp.eq.s32.totalorder %s149_s19, 0 }
  0x1d   : > { %p152_p11 = scmp.eq.s32.totalorder %s151_s20, 0  ;;  %p3513_p12 = por %p190_p8, %p3475_p2 }
  0x1e   : > { %s3518_s9 = scalar_select %p178_p10, %s3341_s23, %s180_s17  }
  0x1f   : > { %s3521_s10 = scalar_select %p152_p11, %s3353_s26, %s154_s12  }
  0x20   : > { %6378 = sst [smem:[#allocation15_spill]] %s3518_s9  ;;  %p3525_p13 = por %p196_p9, %p3492_p6 }
  0x21   : > { %6379 = sst [smem:[#allocation16_spill]] %s3521_s10  ;;  %p2830_p0 = scmp.ge.s32.totalorder %s3373_s7, 1 }
  0x22   : > { %p235_p1 = scmp.lt.s32.totalorder %s3373_s7, 5 }
  0x24   : > { %p236_p4 = pnand %p2830_p0, %p235_p1 }
  0x26   : > { %239 = sbr.rel (%p236_p4) target bundleno = 679 (0x2a7), region = 40 }
  0x2b   : > { %s6381_s1 = sld [smem:[#allocation121_spill]]  ;;  %p269_p2 = scmp.lt.s32.totalorder %s3361_s28, 1  ;;  %vm314_vm0 = vcmask 130048   ;;  %v1122_v45 = vlaneseq  ;;  %vm6359_vm7 = vcmask 523264  }
  0x2c   : > { %s2834_s20 = smul.u32 192, %s3357_s27  ;;  %s6382_s0 = sld [smem:[#allocation120_spill]] }
  0x2d   : > { %s270_s16 = scalar_select %p269_p2, %s3361_s28, 1  ;;  %v3638_v54 = vshrl.u32 %v1122_v45, 7 }
  0x2e   : > { %s6383_s2 = sld [smem:[#allocation122_spill]]  ;;  %s6948_s17 = sand.u32 1, %s3337_s22  }
  0x2f   : > { %s2927_s13 = smul.u32 432, %s270_s16  ;;  %v3650_v60 = vadd.s32 16, %v3638_v54  ;;  %vm1156_vm3 = vcmp.ge.s32.totalorder %v3638_v54, 1  ;;  %s6420_s3 = sld [smem:[#allocation123_spill]] }
  0x30   : > { %s6734_s4 = sld [smem:[#allocation124_spill]]  ;;  %s6165_s16 = scalar_lea.vmem [#allocation6], %s6948_s17 }
  0x31   : > { %v309_v0 = vld [vmem:[%s6381_s1 + $0x8] sm:$0xff]  ;;  %v308_v1 = vld [vmem:[%s6381_s1] sm:$0xff]  ;;  %6386 = vst [vmem:[#allocation19_spill] sm:$0xff] %v3650_v60  ;;  %vm6293_vm6 = vcmp.lt.s32.totalorder %v3650_v60, 17  ;;  %p2911_p5 = scmp.ne.s32.totalorder %s3357_s27, 0 }
  0x32   : > { %419 = vmatpush.msra.mxu0 %v309_v0  ;;  %2921 = vmatpush.msra.mxu1 %v309_v0  ;;  %s273_s14 = scalar_lea.vmem %s6382_s0, %s2927_s13  ;;  %s2833_s13 = sshll.u32 %s3357_s27, 3 }
  0x33   : > { %2922 = vmatpush.msra.mxu2 %v309_v0  ;;  %2923 = vmatpush.msra.mxu3 %v309_v0  ;;  %s3544_s19 = scalar_lea.vmem %s273_s14, %s2834_s20  ;;  %v3636_v53 = vstv %s2833_s13  ;;  %s6361_s20 = sand.u32 1, %s3349_s25  }
  0x34   : > { %420 = vmatpush.msra.mxu0 %v308_v1  ;;  %2924 = vmatpush.msra.mxu1 %v308_v1  ;;  %v278_v2 = vld [vmem:[%s3544_s19] sm:$0xff]  ;;  %v279_v6 = vld [vmem:[%s3544_s19 + $0x8] sm:$0xff]  ;;  %v280_v10 = vld [vmem:[%s3544_s19 + $0x10] sm:$0xff]  ;;  %6384 = vst [vmem:[#allocation17_spill] sm:$0xff] %v3636_v53  ;;  %v3647_v59 = vadd.s32 2, %v3636_v53  ;;  %vm1126_vm1 = vcmp.ge.s32.totalorder %v3636_v53, 1 }
  0x35   : > { %2925 = vmatpush.msra.mxu2 %v308_v1  ;;  %2926 = vmatpush.msra.mxu3 %v308_v1  ;;  %v286_v3 = vld [vmem:[%s3544_s19 + $0x40] sm:$0xff]  ;;  %v287_v7 = vld [vmem:[%s3544_s19 + $0x48] sm:$0xff]  ;;  %v288_v11 = vld [vmem:[%s3544_s19 + $0x50] sm:$0xff]  ;;  %vm1136_vm2 = vcmp.lt.s32.totalorder %v3636_v53, 17  ;;  %s2831_s14 = sshll.u32 %s6361_s20, 7 }
  0x36   : > { %v294_v4 = vld [vmem:[%s3544_s19 + $0x80] sm:$0xff]  ;;  %2835 = vmatmul.msk.f32.vlgmr.msra.gmra.mxu0 %vm314_vm0, %v278_v2  ;;  %2843 = vmatmul.msk.f32.vlgmr.msra.gmra.mxu1 %vm314_vm0, %v286_v3  ;;  %v295_v8 = vld [vmem:[%s3544_s19 + $0x88] sm:$0xff]  ;;  %v296_v12 = vld [vmem:[%s3544_s19 + $0x90] sm:$0xff]  ;;  %6385 = vst [vmem:[#allocation18_spill] sm:$0xff] %v3647_v59  ;;  %vm1128_vm4 = vcmp.ge.s32.totalorder %v3647_v59, 1  ;;  %vm1138_vm5 = vcmp.lt.s32.totalorder %v3647_v59, 17 }
  0x37   : > { %v302_v5 = vld [vmem:[%s3544_s19 + $0xc0] sm:$0xff]  ;;  %2851 = vmatmul.msk.f32.vlgmr.msra.gmra.mxu2 %vm314_vm0, %v294_v4  ;;  %v303_v9 = vld [vmem:[%s3544_s19 + $0xc8] sm:$0xff]  ;;  %v304_v13 = vld [vmem:[%s3544_s19 + $0xd0] sm:$0xff] }
  0x38   : > { %2859 = vmatmul.msk.f32.vlgmr.msra.gmra.mxu3 %vm314_vm0, %v302_v5  ;;  %v281_v14 = vld [vmem:[%s3544_s19 + $0x18] sm:$0xff]  ;;  %v282_v18 = vld [vmem:[%s3544_s19 + $0x20] sm:$0xff]  ;;  %v283_v22 = vld [vmem:[%s3544_s19 + $0x28] sm:$0xff] }
  0x39   : > { %v289_v15 = vld [vmem:[%s3544_s19 + $0x58] sm:$0xff]  ;;  %v290_v19 = vld [vmem:[%s3544_s19 + $0x60] sm:$0xff]  ;;  %v291_v23 = vld [vmem:[%s3544_s19 + $0x68] sm:$0xff] }
  0x3a   : > { %v297_v16 = vld [vmem:[%s3544_s19 + $0x98] sm:$0xff]  ;;  %v298_v20 = vld [vmem:[%s3544_s19 + $0xa0] sm:$0xff]  ;;  %v299_v24 = vld [vmem:[%s3544_s19 + $0xa8] sm:$0xff] }
  0x3b   : > { %v305_v17 = vld [vmem:[%s3544_s19 + $0xd8] sm:$0xff]  ;;  %v306_v21 = vld [vmem:[%s3544_s19 + $0xe0] sm:$0xff]  ;;  %v307_v25 = vld [vmem:[%s3544_s19 + $0xe8] sm:$0xff] }
  0x3c   : > { %v284_v26 = vld [vmem:[%s3544_s19 + $0x30] sm:$0xff]  ;;  %v285_v29 = vld [vmem:[%s3544_s19 + $0x38] sm:$0xff]  ;;  %v3609_v32 = vld [vmem:[%s6383_s2] ss:$0 sm:$0xff] }
  0x3d   : > { %v292_v27 = vld [vmem:[%s3544_s19 + $0x70] sm:$0xff]  ;;  %v293_v30 = vld [vmem:[%s3544_s19 + $0x78] sm:$0xff]  ;;  %vm3696_vm14 = vmand %vm1126_vm1, %vm1136_vm2 }
  0x3e   : > { %2836 = vmatmul.msk.f32.gmra.mxu0 %vm314_vm0, %v279_v6  ;;  %2844 = vmatmul.msk.f32.gmra.mxu1 %vm314_vm0, %v287_v7  ;;  %v300_v28 = vld [vmem:[%s3544_s19 + $0xb0] sm:$0xff]  ;;  %v301_v31 = vld [vmem:[%s3544_s19 + $0xb8] sm:$0xff]  ;;  %v3669_v6 = vadd.s32 8, %v3636_v53  ;;  %vm3710_vm1 = vmand %vm1128_vm4, %vm1138_vm5  ;;  %s5603_s19 = scalar_lea.vmem [#allocation4], %s2831_s14 }
  0x3f   : > { %2852 = vmatmul.msk.f32.gmra.mxu2 %vm314_vm0, %v295_v8 }
  0x40   : > { %2860 = vmatmul.msk.f32.gmra.mxu3 %vm314_vm0, %v303_v9  ;;  %v3674_v9 = vadd.s32 5, %v3636_v53 }
  0x42   : > { %6387 = vst [vmem:[#allocation20_spill] sm:$0xff] %v3674_v9  ;;  %vm1141_vm12 = vcmp.lt.s32.totalorder %v3674_v9, 17 }
  0x46   : > { %2837 = vmatmul.msk.f32.gmra.mxu0 %vm314_vm0, %v280_v10  ;;  %2845 = vmatmul.msk.f32.gmra.mxu1 %vm314_vm0, %v288_v11 }
  0x47   : > { %2853 = vmatmul.msk.f32.gmra.mxu2 %vm314_vm0, %v296_v12 }
  0x48   : > { %2861 = vmatmul.msk.f32.gmra.mxu3 %vm314_vm0, %v304_v13 }
  0x4e   : > { %2838 = vmatmul.msk.f32.gmra.mxu0 %vm314_vm0, %v281_v14  ;;  %2846 = vmatmul.msk.f32.gmra.mxu1 %vm314_vm0, %v289_v15 }
  0x4f   : > { %2854 = vmatmul.msk.f32.gmra.mxu2 %vm314_vm0, %v297_v16 }
  0x50   : > { %2862 = vmatmul.msk.f32.gmra.mxu3 %vm314_vm0, %v305_v17 }
  0x56   : > { %2839 = vmatmul.msk.f32.gmra.mxu0 %vm314_vm0, %v282_v18  ;;  %2847 = vmatmul.msk.f32.gmra.mxu1 %vm314_vm0, %v290_v19 }
  0x57   : > { %2855 = vmatmul.msk.f32.gmra.mxu2 %vm314_vm0, %v298_v20 }
  0x58   : > { %2863 = vmatmul.msk.f32.gmra.mxu3 %vm314_vm0, %v306_v21 }
  0x5e   : > { %2840 = vmatmul.msk.f32.gmra.mxu0 %vm314_vm0, %v283_v22  ;;  %2848 = vmatmul.msk.f32.gmra.mxu1 %vm314_vm0, %v291_v23 }
  0x5f   : > { %2856 = vmatmul.msk.f32.gmra.mxu2 %vm314_vm0, %v299_v24 }
  0x60   : > { %2864 = vmatmul.msk.f32.gmra.mxu3 %vm314_vm0, %v307_v25 }
  0x66   : > { %2841 = vmatmul.msk.f32.gmra.mxu0 %vm314_vm0, %v284_v26  ;;  %2849 = vmatmul.msk.f32.gmra.mxu1 %vm314_vm0, %v292_v27 }
  0x67   : > { %2857 = vmatmul.msk.f32.gmra.mxu2 %vm314_vm0, %v300_v28  ;;  %v6394_v28 = vmov 0 }
  0x68   : > { %v6395_v28 = vsel %vm3710_vm1, 4294967295, %v6394_v28 }
  0x69   : > { %6396 = vst [vmem:[#allocation21_spill] sm:$0xff] %v6395_v28 }
  0x6e   : > { %2842 = vmatmul.msk.f32.gmra.mxu0 %vm314_vm0, %v285_v29  ;;  %2850 = vmatmul.msk.f32.gmra.mxu1 %vm314_vm0, %v293_v30 }
  0x6f   : > { %2858 = vmatmul.msk.f32.gmra.mxu2 %vm314_vm0, %v301_v31  ;;  %vm1131_vm0 = vcmp.ge.s32.totalorder %v3674_v9, 1 }
  0xb3   : > { %v422_v33 = vpop.f32.mrf.mxu0  ;;  %v446_v34 = vpop.f32.mrf.mxu1 }
  0xb4   : > { %v3612_v35 = vadd.f32 %v3609_v32, %v422_v33  ;;  %v3615_v36 = vadd.f32 %v3609_v32, %v446_v34 }
  0xb6   : > { %v2865_v37 = vmul.f32 -1.442695, %v3612_v35  ;;  %v2873_v38 = vmul.f32 -1.442695, %v3615_v36 }
  0xb8   : > { %3034 = vpow2.f32 %v2865_v37 }
  0xb9   : > { %3036 = vpow2.f32 %v2873_v38 }
  0xba   : > { %v470_v39 = vpop.f32.mrf.mxu2 }
  0xbb   : > { %v494_v40 = vpop.f32.mrf.mxu3  ;;  %v3620_v41 = vadd.f32 %v3609_v32, %v470_v39  ;;  %v425_v43 = vpop.f32.mrf.mxu0 }
  0xbc   : > { %v3623_v42 = vadd.f32 %v3609_v32, %v494_v40  ;;  %v449_v44 = vpop.f32.mrf.mxu1  ;;  %v3628_v47 = vadd.f32 %v3609_v32, %v425_v43 }
  0xbd   : > { %v2881_v46 = vmul.f32 -1.442695, %v3620_v41  ;;  %v3632_v50 = vadd.f32 %v3609_v32, %v449_v44 }
  0xbe   : > { %v3035_v48 = vpop.eup %3034  ;;  %v2889_v49 = vmul.f32 -1.442695, %v3623_v42  ;;  %v2866_v56 = vmul.f32 -1.442695, %v3628_v47 }
  0xbf   : > { %v3037_v51 = vpop.eup %3036  ;;  %v3634_v52 = vadd.f32 1.0, %v3035_v48  ;;  %3038 = vpow2.f32 %v2881_v46  ;;  %v2874_v57 = vmul.f32 -1.442695, %v3632_v50 }
  0xc0   : > { %v3640_v55 = vadd.f32 1.0, %v3037_v51  ;;  %3040 = vpow2.f32 %v2889_v49 }
  0xc1   : > { %3042 = vrcp.f32 %v3634_v52  ;;  %v641_v2 = vand.u32 2147483647, %v3634_v52  ;;  %v643_v7 = vand.u32 2147483648, %v3634_v52  ;;  %vm637_vm8 = vweird.f32 %v3634_v52 }
  0xc2   : > { %3044 = vrcp.f32 %v3640_v55  ;;  %v473_v58 = vpop.f32.mrf.mxu2  ;;  %v761_v13 = vand.u32 2147483647, %v3640_v55  ;;  %v763_v14 = vand.u32 2147483648, %v3640_v55  ;;  %vm757_vm10 = vweird.f32 %v3640_v55 }
  0xc3   : > { %3046 = vpow2.f32 %v2866_v56  ;;  %v3653_v62 = vadd.f32 %v3609_v32, %v473_v58  ;;  %vm3681_vm9 = vcmp.eq.f32.partialorder %v641_v2, 8.507059e+37  ;;  %v644_v21 = vor.u32 1.1754944e-38, %v643_v7  ;;  %v497_v46 = vpop.f32.mrf.mxu3  ;;  %v428_v7 = vpop.f32.mrf.mxu0 }
  0xc4   : > { %3048 = vpow2.f32 %v2874_v57  ;;  %vm3702_vm13 = vcmp.eq.f32.partialorder %v761_v13, 8.507059e+37  ;;  %v764_v27 = vor.u32 1.1754944e-38, %v763_v14 }
  0xc5   : > { %v3039_v61 = vpop.eup %3038  ;;  %v2882_v10 = vmul.f32 -1.442695, %v3653_v62 }
  0xc6   : > { %v3041_v63 = vpop.eup %3040  ;;  %v3658_v0 = vadd.f32 1.0, %v3039_v61 }
  0xc7   : > { %v3043_v1 = vpop.eup %3042  ;;  %v3663_v3 = vadd.f32 1.0, %v3041_v63 }
  0xc8   : > { %v3045_v4 = vpop.eup %3044  ;;  %v633_v5 = vmul.f32 %v3043_v1, %v3634_v52  ;;  %3050 = vrcp.f32 %v3658_v0  ;;  %vm638_vm11 = vweird.f32 %v3043_v1  ;;  %v881_v31 = vand.u32 2147483647, %v3658_v0 }
  0xc9   : > { %v753_v8 = vmul.f32 %v3045_v4, %v3640_v55  ;;  %v3047_v11 = vpop.eup %3046  ;;  %3052 = vrcp.f32 %v3663_v3  ;;  %vm758_vm15 = vweird.f32 %v3045_v4  ;;  %vm639_vm2 = vmor %vm637_vm8, %vm638_vm11  ;;  %v883_v33 = vand.u32 2147483648, %v3658_v0 }
  0xca   : > { %v634_v12 = vsub.f32 1.0, %v633_v5  ;;  %v3049_v15 = vpop.eup %3048  ;;  %v3688_v19 = vadd.f32 1.0, %v3047_v11  ;;  %3054 = vpow2.f32 %v2882_v10  ;;  %vm759_vm4 = vmor %vm757_vm10, %vm758_vm15  ;;  %vm997_vm5 = vweird.f32 %v3663_v3  ;;  %v452_v11 = vpop.f32.mrf.mxu1 }
  0xcb   : > { %v754_v17 = vsub.f32 1.0, %v753_v8  ;;  %v3690_v20 = vadd.f32 1.0, %v3049_v15  ;;  %v1001_v38 = vand.u32 2147483647, %v3663_v3  ;;  %vm3733_vm8 = vmand %vm3696_vm14, %vm1156_vm3  ;;  %v1003_v52 = vand.u32 2147483648, %v3663_v3 }
  0xcc   : > { %v635_v18 = vmul.f32 %v3043_v1, %v634_v12  ;;  %3056 = vrcp.f32 %v3688_v19  ;;  %vm3756_vm15 = vcmp.eq.f32.partialorder %v881_v31, 8.507059e+37  ;;  %v884_v10 = vor.u32 1.1754944e-38, %v883_v33 }
  0xcd   : > { %v755_v23 = vmul.f32 %v3045_v4, %v754_v17  ;;  %3058 = vrcp.f32 %v3690_v20  ;;  %v1004_v13 = vor.u32 1.1754944e-38, %v1003_v52 }
  0xce   : > { %v3051_v24 = vpop.eup %3050  ;;  %v636_v25 = vadd.f32 %v3043_v1, %v635_v18 }
  0xcf   : > { %v756_v29 = vadd.f32 %v3045_v4, %v755_v23  ;;  %v873_v30 = vmul.f32 %v3051_v24, %v3658_v0  ;;  %v3053_v34 = vpop.eup %3052  ;;  %vm878_vm10 = vweird.f32 %v3051_v24  ;;  %v6413_v23 = vmov 0 }
  0xd0   : > { %v640_v37 = vsel %vm639_vm2, %v3043_v1, %v636_v25  ;;  %v993_v45 = vmul.f32 %v3053_v34, %v3663_v3  ;;  %v3055_v55 = vpop.eup %3054  ;;  %vm998_vm11 = vweird.f32 %v3053_v34  ;;  %v3761_v1 = vadd.f32 %v3609_v32, %v497_v46 }
  0xd1   : > { %v645_v39 = vsel %vm3681_vm9, %v644_v21, %v640_v37  ;;  %v760_v43 = vsel %vm759_vm4, %v3045_v4, %v756_v29  ;;  %v874_v44 = vsub.f32 1.0, %v873_v30  ;;  %vm3745_vm9 = vmand %vm3710_vm1, %vm6293_vm6  ;;  %v3785_v14 = vadd.f32 1.0, %v3055_v55 }
  0xd2   : > { %v1082_v48 = vmul.f32 %v645_v39, %v3612_v35  ;;  %v765_v49 = vsel %vm3702_vm13, %v764_v27, %v760_v43  ;;  %v994_v58 = vsub.f32 1.0, %v993_v45  ;;  %v3751_v35 = vpop.eup %3056  ;;  %vm877_vm13 = vweird.f32 %v3658_v0  ;;  %vm3777_vm4 = vmor %vm997_vm5, %vm998_vm11 }
  0xd3   : > { %v1090_v56 = vmul.f32 %v765_v49, %v3615_v36  ;;  %v875_v57 = vmul.f32 %v3051_v24, %v874_v44  ;;  %vm3767_vm2 = vmor %vm877_vm13, %vm878_vm10  ;;  %v648_v0 = vmul.f32 %v3751_v35, %v3688_v19  ;;  %v3059_v8 = vpop.eup %3058  ;;  %vm6410_vm10 = vcmp.ge.s32.totalorder %v3669_v6, 1 }
  0xd4   : > { %v1314_v61 = vsel %vm3733_vm8, %v1082_v48, 0.0  ;;  %v995_v5 = vmul.f32 %v3053_v34, %v994_v58  ;;  %vm3781_vm8 = vcmp.eq.f32.partialorder %v1001_v38, 8.507059e+37  ;;  %v768_v18 = vmul.f32 %v3059_v8, %v3690_v20  ;;  %vm3804_vm5 = vmand %vm1131_vm0, %vm1141_vm12 }
  0xd5   : > { %1345 = vst.msk [vmem:[#allocation2] sm:$0xff] %vm6359_vm7, %v1314_v61  ;;  %v1322_v36 = vsel %vm3745_vm9, %v1090_v56, 0.0  ;;  %v876_v2 = vadd.f32 %v3051_v24, %v875_v57  ;;  %vm6409_vm9 = vcmp.lt.s32.totalorder %v3669_v6, 17  ;;  %v649_v17 = vsub.f32 1.0, %v648_v0 }
  0xd6   : > { %1353 = vst.msk [vmem:[#allocation2 + $0x40] sm:$0xff] %vm6359_vm7, %v1322_v36  ;;  %v996_v16 = vadd.f32 %v3053_v34, %v995_v5  ;;  %vm3793_vm13 = vmand %vm6410_vm10, %vm6409_vm9  ;;  %v6414_v23 = vsel %vm3804_vm5, 4294967295, %v6413_v23  ;;  %3060 = vrcp.f32 %v3785_v14  ;;  %v3810_v6 = vadd.f32 %v3609_v32, %v428_v7 }
  0xd7   : > { %v880_v15 = vsel %vm3767_vm2, %v3051_v24, %v876_v2  ;;  %6415 = vst [vmem:[#allocation22_spill] sm:$0xff] %v6414_v23  ;;  %v650_v26 = vmul.f32 %v3751_v35, %v649_v17  ;;  %v769_v27 = vsub.f32 1.0, %v768_v18  ;;  %vm1209_vm12 = vmand %vm3793_vm13, %vm1156_vm3  ;;  %v3823_v30 = vadd.s32 3, %v3636_v53 }
  0xd8   : > { %v885_v21 = vsel %vm3756_vm15, %v884_v10, %v880_v15  ;;  %v1000_v25 = vsel %vm3777_vm4, %v3053_v34, %v996_v16  ;;  %v2890_v31 = vmul.f32 -1.442695, %v3761_v1  ;;  %v656_v34 = vand.u32 2147483647, %v3688_v19 }
  0xd9   : > { %v1098_v24 = vmul.f32 %v885_v21, %v3620_v41  ;;  %v1005_v29 = vsel %vm3781_vm8, %v1004_v13, %v1000_v25  ;;  %6416 = vst [vmem:[#allocation23_spill] sm:$0xff] %v3823_v30  ;;  %v658_v37 = vand.u32 2147483648, %v3688_v19  ;;  %v2867_v38 = vmul.f32 -1.442695, %v3810_v6  ;;  %v3870_v13 = vld [vmem:[%s6420_s3] sm:$0xff] }
  0xda   : > { %v1106_v33 = vmul.f32 %v1005_v29, %v3623_v42  ;;  %v651_v40 = vadd.f32 %v3751_v35, %v650_v26  ;;  %vm653_vm0 = vweird.f32 %v3751_v35  ;;  %v770_v43 = vmul.f32 %v3059_v8, %v769_v27 }
  0xdb   : > { %v1330_v41 = vsel %vm3804_vm5, %v1098_v24, 0.0  ;;  %v778_v45 = vand.u32 2147483648, %v3690_v20  ;;  %vm1129_vm11 = vcmp.ge.s32.totalorder %v3823_v30, 1  ;;  %vm1139_vm15 = vcmp.lt.s32.totalorder %v3823_v30, 17 }
  0xdc   : > { %1361 = vst.msk [vmem:[#allocation2 + $0x80] sm:$0xff] %vm6359_vm7, %v1330_v41  ;;  %v1338_v39 = vsel %vm1209_vm12, %v1106_v33, 0.0  ;;  %v3061_v44 = vpop.eup %3060  ;;  %3062 = vpow2.f32 %v2890_v31  ;;  %vm652_vm2 = vweird.f32 %v3688_v19  ;;  %vm773_vm4 = vweird.f32 %v3059_v8  ;;  %vm3843_vm12 = vmand %vm1129_vm11, %vm1139_vm15 }
  0xdd   : > { %1369 = vst.msk [vmem:[#allocation2 + $0xc0] sm:$0xff] %vm6359_vm7, %v1338_v39  ;;  %v776_v42 = vand.u32 2147483647, %v3690_v20  ;;  %vm654_vm8 = vmor %vm652_vm2, %vm653_vm0  ;;  %v659_v46 = vor.u32 1.1754944e-38, %v658_v37  ;;  %3064 = vpow2.f32 %v2867_v38  ;;  %vm657_vm9 = vcmp.eq.f32.partialorder %v656_v34, 8.507059e+37 }
  0xde   : > { %v655_v48 = vsel %vm654_vm8, %v3751_v35, %v651_v40  ;;  %v771_v49 = vadd.f32 %v3059_v8, %v770_v43  ;;  %vm772_vm10 = vweird.f32 %v3690_v20  ;;  %v779_v55 = vor.u32 1.1754944e-38, %v778_v45  ;;  %vm1194_vm2 = vmand %vm3843_vm12, %vm1156_vm3  ;;  %v476_v40 = vpop.f32.mrf.mxu2 }
  0xdf   : > { %v660_v52 = vsel %vm657_vm9, %v659_v46, %v655_v48  ;;  %vm774_vm6 = vmor %vm772_vm10, %vm773_vm4  ;;  %v888_v19 = vmul.f32 %v3061_v44, %v3785_v14  ;;  %vm777_vm0 = vcmp.eq.f32.partialorder %v776_v42, 8.507059e+37  ;;  %v898_v2 = vand.u32 2147483648, %v3785_v14 }
  0xe0   : > { %v1083_v56 = vmul.f32 %v660_v52, %v3628_v47  ;;  %v775_v57 = vsel %vm774_vm6, %v3059_v8, %v771_v49  ;;  %v896_v47 = vand.u32 2147483647, %v3785_v14  ;;  %vm893_vm6 = vweird.f32 %v3061_v44  ;;  %v500_v49 = vpop.f32.mrf.mxu3 }
  0xe1   : > { %v780_v61 = vsel %vm777_vm0, %v779_v55, %v775_v57  ;;  %v889_v63 = vsub.f32 1.0, %v888_v19  ;;  %vm892_vm11 = vweird.f32 %v3785_v14  ;;  %vm6419_vm8 = vcmp.lt.s32.totalorder %v3650_v60, 17 }
  0xe2   : > { %v3063_v58 = vpop.eup %3062  ;;  %v1315_v20 = vsel %vm3696_vm14, %v1083_v56, 0.0  ;;  %v1091_v35 = vmul.f32 %v780_v61, %v3632_v50  ;;  %vm894_vm15 = vmor %vm892_vm11, %vm893_vm6  ;;  %v899_v50 = vor.u32 1.1754944e-38, %v898_v2  ;;  %vm897_vm4 = vcmp.eq.f32.partialorder %v896_v47, 8.507059e+37 }
  0xe3   : > { %v3065_v36 = vpop.eup %3064  ;;  %1346 = vst.msk [vmem:[#allocation2 + $0x8] sm:$0xff] %vm6359_vm7, %v1315_v20  ;;  %v890_v5 = vmul.f32 %v3061_v44, %v889_v63  ;;  %v627_v0 = vadd.f32 1.0, %v3063_v58  ;;  %vm1241_vm9 = vmand %vm3804_vm5, %vm6419_vm8  ;;  %v3875_v15 = vadd.f32 %v3609_v32, %v452_v11  ;;  %v3877_v16 = vld [vmem:[#allocation2 + $0x80] sm:$0xff]  ;;  %v3880_v18 = vperm.slane %v3870_v13, 1  ;;  %v455_v11 = vpop.f32.mrf.mxu1 }
  0xe4   : > { %v1323_v4 = vsel %vm1194_vm2, %v1091_v35, 0.0  ;;  %v3861_v8 = vadd.f32 1.0, %v3065_v36  ;;  %v3884_v24 = vperm.slane %v3870_v13, 2  ;;  %vm6308_vm10 = vcmask 1046528  }
  0xe5   : > { %1354 = vst.msk [vmem:[#allocation2 + $0x48] sm:$0xff] %vm6359_vm7, %v1323_v4  ;;  %v891_v7 = vadd.f32 %v3061_v44, %v890_v5  ;;  %3066 = vrcp.f32 %v627_v0  ;;  %v2875_v25 = vmul.f32 -1.442695, %v3875_v15  ;;  %v1018_v31 = vand.u32 2147483648, %v627_v0 }
  0xe6   : > { %3068 = vrcp.f32 %v3861_v8  ;;  %6421 = vst [vmem:[#allocation24_spill] sm:$0xff] %v3884_v24  ;;  %v3893_v27 = vmul.f32 %v3884_v24, %v3877_v16  ;;  %vm6305_vm0 = vcmask 1045504   ;;  %vm1012_vm2 = vweird.f32 %v627_v0 }
  0xe7   : > { %v895_v10 = vsel %vm894_vm15, %v3061_v44, %v891_v7  ;;  %3070 = vpow2.f32 %v2875_v25  ;;  %v1016_v38 = vand.u32 2147483647, %v627_v0  ;;  %vm667_vm11 = vweird.f32 %v3861_v8 }
  0xe8   : > { %v900_v12 = vsel %vm897_vm4, %v899_v50, %v895_v10  ;;  %6423 = vst [vmem:[#allocation26_spill] sm:$0xff] %v3893_v27  ;;  %v6294_v45 = vrot.slane %v3893_v27, 2  ;;  %v1019_v46 = vor.u32 1.1754944e-38, %v1018_v31  ;;  %v673_v19 = vand.u32 2147483648, %v3861_v8  ;;  %v431_v50 = vpop.f32.mrf.mxu0 }
  0xe9   : > { %v1099_v14 = vmul.f32 %v900_v12, %v3653_v62  ;;  %v3888_v62 = vmul.f32 %v3880_v18, %v3877_v16  ;;  %v3909_v56 = vadd.f32 %v3609_v32, %v476_v40  ;;  %vm1017_vm8 = vcmp.eq.f32.partialorder %v1016_v38, 8.507059e+37 }
  0xea   : > { %v671_v61 = vand.u32 2147483647, %v3861_v8  ;;  %v3925_v36 = vadd.f32 %v3609_v32, %v500_v49  ;;  %v674_v5 = vor.u32 1.1754944e-38, %v673_v19  ;;  %v3948_v25 = vperm.slane %v3870_v13, 0 }
  0xeb   : > { %v1331_v17 = vsel %vm1241_vm9, %v1099_v14, 0.0  ;;  %v3067_v21 = vpop.eup %3066  ;;  %6422 = vst [vmem:[#allocation25_spill] sm:$0xff] %v3888_v62  ;;  %v6295_v33 = vrot.slane %v3888_v62, 1  ;;  %v2883_v7 = vmul.f32 -1.442695, %v3909_v56  ;;  %v3960_v40 = vperm.slane %v3870_v13, 5 }
  0xec   : > { %1362 = vst.msk [vmem:[#allocation2 + $0x88] sm:$0xff] %vm6359_vm7, %v1331_v17  ;;  %v3069_v26 = vpop.eup %3068  ;;  %v1008_v29 = vmul.f32 %v3067_v21, %v627_v0  ;;  %vm1013_vm6 = vweird.f32 %v3067_v21  ;;  %v4083_v30 = vadd.s32 1, %v3636_v53 }
  0xed   : > { %v663_v41 = vmul.f32 %v3069_v26, %v3861_v8  ;;  %vm668_vm15 = vweird.f32 %v3069_v26  ;;  %vm1014_vm4 = vmor %vm1012_vm2, %vm1013_vm6  ;;  %v3071_v20 = vpop.eup %3070  ;;  %vm672_vm2 = vcmp.eq.f32.partialorder %v671_v61, 8.507059e+37  ;;  %vm6426_vm6 = vcmp.lt.s32.totalorder %v3650_v60, 17  ;;  %6427 = vst [vmem:[#allocation29_spill] sm:$0xff] %v3948_v25  ;;  %v503_v61 = vpop.f32.mrf.mxu3 }
  0xee   : > { %v1009_v34 = vsub.f32 1.0, %v1008_v29  ;;  %vm669_vm9 = vmor %vm667_vm11, %vm668_vm15  ;;  %v3927_v0 = vadd.f32 1.0, %v3071_v20  ;;  %v2891_v8 = vmul.f32 -1.442695, %v3925_v36  ;;  %v3952_v29 = vperm.slane %v3870_v13, 4  ;;  %6429 = vst [vmem:[#allocation31_spill] sm:$0xff] %v3960_v40 }
  0xef   : > { %v664_v39 = vsub.f32 1.0, %v663_v41  ;;  %vm1226_vm11 = vmand %vm3696_vm14, %vm6426_vm6  ;;  %v1383_v41 = vld [vmem:[#allocation2 + $0x40] sm:$0xff]  ;;  %6444 = vst [vmem:[#allocation44_spill] sm:$0xff] %v4083_v30 }
  0xf0   : > { %v1010_v42 = vmul.f32 %v3067_v21, %v1009_v34  ;;  %3072 = vrcp.f32 %v3927_v0  ;;  %6428 = vst [vmem:[#allocation30_spill] sm:$0xff] %v3952_v29  ;;  %v3956_v34 = vperm.slane %v3870_v13, 7  ;;  %v3981_v19 = vmul.f32 %v3880_v18, %v1383_v41 }
  0xf1   : > { %v665_v48 = vmul.f32 %v3069_v26, %v664_v39  ;;  %3074 = vpow2.f32 %v2883_v7  ;;  %v791_v7 = vand.u32 2147483647, %v3927_v0  ;;  %vm787_vm15 = vweird.f32 %v3927_v0 }
  0xf2   : > { %v1011_v57 = vadd.f32 %v3067_v21, %v1010_v42  ;;  %3076 = vpow2.f32 %v2891_v8  ;;  %6431 = vst [vmem:[#allocation33_spill] sm:$0xff] %v3981_v19  ;;  %v4087_v59 = vmul.f32 %v3952_v29, %v3877_v16 }
  0xf3   : > { %v3897_v37 = vld [vmem:[#allocation2 + $0x88] sm:$0xff]  ;;  %v666_v58 = vadd.f32 %v3069_v26, %v665_v48 }
  0xf4   : > { %v1524_v43 = vmul.f32 %v3880_v18, %v3897_v37  ;;  %v1888_v44 = vmul.f32 %v3884_v24, %v3897_v37  ;;  %v1015_v47 = vsel %vm1014_vm4, %v3067_v21, %v1011_v57  ;;  %v3945_v21 = vadd.f32 %v3609_v32, %v455_v11  ;;  %v3989_v57 = vld [vmem:[%s6420_s3 + $0x8] ss:$0 sm:$0xff]  ;;  %6445 = vst [vmem:[#allocation45_spill] sm:$0xff] %v4087_v59 }
  0xf5   : > { %v670_v2 = vsel %vm669_vm9, %v3069_v26, %v666_v58  ;;  %v1020_v4 = vsel %vm1017_vm8, %v1019_v46, %v1015_v47  ;;  %v1375_v26 = vld [vmem:[#allocation2] sm:$0xff]  ;;  %v479_v46 = vpop.f32.mrf.mxu2  ;;  %v3992_v47 = vmul.f32 %v3956_v34, %v1383_v41  ;;  %v4005_v11 = vmul.f32 %v3960_v40, %v1383_v41 }
  0xf6   : > { %v1584_v52 = vrot.slane %v1524_v43, 1  ;;  %v1948_v55 = vrot.slane %v1888_v44, 2  ;;  %v1107_v10 = vmul.f32 %v1020_v4, %v3761_v1  ;;  %v675_v12 = vsel %vm672_vm2, %v674_v5, %v670_v2  ;;  %v3073_v31 = vpop.eup %3072 }
  0xf7   : > { %v1084_v17 = vmul.f32 %v675_v12, %v3810_v6  ;;  %v3941_v1 = vadd.f32 %v3609_v32, %v431_v50  ;;  %v2876_v38 = vmul.f32 -1.442695, %v3945_v21  ;;  %v3075_v39 = vpop.eup %3074  ;;  %v3963_v43 = vperm.slane %v3870_v13, 3  ;;  %6433 = vst [vmem:[#allocation35_spill] sm:$0xff] %v3992_v47 }
  0xf8   : > { %v3915_v35 = vsel %vm6308_vm10, %v6295_v33, %v1584_v52  ;;  %v3920_v63 = vsel %vm6305_vm0, %v6294_v45, %v1948_v55  ;;  %v1339_v14 = vsel %vm3793_vm13, %v1107_v10, 0.0  ;;  %v3966_v44 = vperm.slane %v3870_v13, 6  ;;  %v3077_v20 = vpop.eup %3076  ;;  %6435 = vst [vmem:[#allocation37_spill] sm:$0xff] %v4005_v11  ;;  %v1399_v33 = vld [vmem:[#allocation2 + $0xc0] sm:$0xff] }
  0xf9   : > { %6424 = vst [vmem:[#allocation27_spill] sm:$0xff] %v3915_v35  ;;  %v1316_v22 = vsel %vm1226_vm11, %v1084_v17, 0.0  ;;  %v2868_v6 = vmul.f32 -1.442695, %v3941_v1  ;;  %v783_v42 = vmul.f32 %v3073_v31, %v3927_v0  ;;  %v3970_v48 = vmul.f32 %v3948_v25, %v1375_v26 }
  0xfa   : > { %6425 = vst [vmem:[#allocation28_spill] sm:$0xff] %v3920_v63  ;;  %v3973_v49 = vmul.f32 %v3880_v18, %v1375_v26  ;;  %v3976_v52 = vmul.f32 %v3884_v24, %v1375_v26  ;;  %v3978_v55 = vadd.f32 1.0, %v3075_v39  ;;  %v3984_v13 = vmul.f32 %v3952_v29, %v1383_v41 }
  0xfb   : > { %1370 = vst.msk [vmem:[#allocation2 + $0xc8] sm:$0xff] %vm6359_vm7, %v1339_v14  ;;  %v784_v58 = vsub.f32 1.0, %v783_v42  ;;  %3078 = vpow2.f32 %v2868_v6  ;;  %v793_v2 = vand.u32 2147483648, %v3927_v0  ;;  %v3996_v4 = vadd.f32 %v3609_v32, %v479_v46 }
  0xfc   : > { %1347 = vst.msk [vmem:[#allocation2 + $0x10] sm:$0xff] %vm6359_vm7, %v1316_v22  ;;  %3080 = vpow2.f32 %v2876_v38  ;;  %vm788_vm14 = vweird.f32 %v3073_v31  ;;  %v4002_v10 = vmul.f32 %v3884_v24, %v1383_v41  ;;  %v4008_v12 = vadd.f32 %v3609_v32, %v503_v61 }
  0xfd   : > { %6430 = vst [vmem:[#allocation32_spill] sm:$0xff] %v3963_v43  ;;  %v785_v5 = vmul.f32 %v3073_v31, %v784_v58  ;;  %3082 = vrcp.f32 %v3978_v55  ;;  %v4011_v8 = vmul.f32 %v3989_v57, %v1383_v41  ;;  %v4014_v17 = vadd.f32 1.0, %v3077_v20  ;;  %vm789_vm4 = vmor %vm787_vm15, %vm788_vm14 }
  0xfe   : > { %6432 = vst [vmem:[#allocation34_spill] sm:$0xff] %v3984_v13  ;;  %v794_v6 = vor.u32 1.1754944e-38, %v793_v2  ;;  %v2884_v38 = vmul.f32 -1.442695, %v3996_v4  ;;  %vm792_vm8 = vcmp.eq.f32.partialorder %v791_v7, 8.507059e+37  ;;  %v4027_v42 = vadd.s32 6, %v3636_v53 }
  0xff   : > { %6434 = vst [vmem:[#allocation36_spill] sm:$0xff] %v4002_v10  ;;  %v786_v14 = vadd.f32 %v3073_v31, %v785_v5  ;;  %v2892_v5 = vmul.f32 -1.442695, %v4008_v12  ;;  %3084 = vrcp.f32 %v4014_v17  ;;  %v4036_v7 = vmul.f32 %v3963_v43, %v3877_v16  ;;  %v1376_v13 = vld [vmem:[#allocation2 + $0x8] sm:$0xff] }
 0x100   : > { %6436 = vst [vmem:[#allocation38_spill] sm:$0xff] %v4011_v8  ;;  %3086 = vpow2.f32 %v2884_v38  ;;  %v4050_v2 = vmul.f32 %v3963_v43, %v1399_v33  ;;  %v4053_v61 = vmul.f32 %v3966_v44, %v1399_v33  ;;  %v913_v0 = vand.u32 2147483648, %v3978_v55 }
 0x101   : > { %v3079_v39 = vpop.eup %3078  ;;  %v790_v41 = vsel %vm789_vm4, %v3073_v31, %v786_v14  ;;  %6437 = vst [vmem:[#allocation39_spill] sm:$0xff] %v4027_v42  ;;  %v4032_v31 = vmul.f32 %v3948_v25, %v3877_v16  ;;  %3088 = vpow2.f32 %v2892_v5  ;;  %vm1132_vm9 = vcmp.ge.s32.totalorder %v4027_v42, 1 }
 0x102   : > { %v3081_v58 = vpop.eup %3080  ;;  %v795_v20 = vsel %vm792_vm8, %v794_v6, %v790_v41  ;;  %6438 = vst [vmem:[#allocation40_spill] sm:$0xff] %v4036_v7  ;;  %v4041_v6 = vmul.f32 %v3966_v44, %v3877_v16  ;;  %v4045_v41 = vadd.f32 1.0, %v3079_v39  ;;  %vm1142_vm2 = vcmp.lt.s32.totalorder %v4027_v42, 17 }
 0x103   : > { %v3083_v45 = vpop.eup %3082  ;;  %v1092_v26 = vmul.f32 %v795_v20, %v3875_v15  ;;  %v4047_v20 = vadd.f32 1.0, %v3081_v58  ;;  %6440 = vst [vmem:[#allocation42_spill] sm:$0xff] %v4050_v2  ;;  %v911_v39 = vand.u32 2147483647, %v3978_v55  ;;  %v4063_v46 = vmul.f32 %v3952_v29, %v1399_v33  ;;  %vm4077_vm14 = vmand %vm1132_vm9, %vm1142_vm2 }
 0x104   : > { %v903_v14 = vmul.f32 %v3083_v45, %v3978_v55  ;;  %6439 = vst [vmem:[#allocation41_spill] sm:$0xff] %v4041_v6  ;;  %3090 = vrcp.f32 %v4045_v41  ;;  %vm908_vm6 = vweird.f32 %v3083_v45  ;;  %v4066_v5 = vmul.f32 %v3956_v34, %v1399_v33  ;;  %vm4100_vm8 = vmand %vm4077_vm14, %vm1156_vm3 }
 0x105   : > { %v1324_v15 = vsel %vm3843_vm12, %v1092_v26, 0.0  ;;  %6441 = vst [vmem:[#allocation43_spill] sm:$0xff] %v4053_v61  ;;  %3092 = vrcp.f32 %v4047_v20  ;;  %v3085_v58 = vpop.eup %3084  ;;  %vm907_vm11 = vweird.f32 %v3978_v55  ;;  %v914_v55 = vor.u32 1.1754944e-38, %v913_v0 }
 0x106   : > { %1355 = vst.msk [vmem:[#allocation2 + $0x50] sm:$0xff] %vm6359_vm7, %v1324_v15  ;;  %v904_v38 = vsub.f32 1.0, %v903_v14  ;;  %v4069_v14 = vmul.f32 %v3960_v40, %v1399_v33  ;;  %v4072_v15 = vmul.f32 %v3989_v57, %v1399_v33  ;;  %v3087_v22 = vpop.eup %3086  ;;  %v1023_v9 = vmul.f32 %v3085_v58, %v4014_v17  ;;  %vm909_vm15 = vmor %vm907_vm11, %vm908_vm6 }
 0x107   : > { %v4091_v33 = vmul.f32 %v3956_v34, %v3877_v16  ;;  %v3089_v42 = vpop.eup %3088  ;;  %vm912_vm4 = vcmp.eq.f32.partialorder %v911_v39, 8.507059e+37  ;;  %v1033_v35 = vand.u32 2147483648, %v4014_v17  ;;  %vm1027_vm9 = vweird.f32 %v4014_v17 }
 0x108   : > { %v905_v26 = vmul.f32 %v3083_v45, %v904_v38  ;;  %v1024_v27 = vsub.f32 1.0, %v1023_v9  ;;  %vm1028_vm2 = vweird.f32 %v3085_v58  ;;  %v4105_v0 = vadd.f32 1.0, %v3087_v22 }
 0x109   : > { %6446 = vst [vmem:[#allocation46_spill] sm:$0xff] %v4091_v33  ;;  %v4109_v9 = vmul.f32 %v3960_v40, %v3877_v16  ;;  %vm1127_vm6 = vcmp.ge.s32.totalorder %v4083_v30, 1  ;;  %vm1137_vm11 = vcmp.lt.s32.totalorder %v4083_v30, 17  ;;  %v4127_v11 = vadd.f32 1.0, %v3089_v42 }
 0x10a   : > { %v906_v38 = vadd.f32 %v3083_v45, %v905_v26  ;;  %v1031_v26 = vand.u32 2147483647, %v4014_v17  ;;  %v3091_v62 = vpop.eup %3090  ;;  %v1025_v39 = vmul.f32 %v3085_v58, %v1024_v27  ;;  %3094 = vrcp.f32 %v4105_v0 }
 0x10b   : > { %6449 = vst [vmem:[#allocation47_spill] sm:$0xff] %v4109_v9  ;;  %v678_v17 = vmul.f32 %v3091_v62, %v4045_v41  ;;  %vm683_vm0 = vweird.f32 %v3091_v62  ;;  %v688_v2 = vand.u32 2147483648, %v4045_v41  ;;  %v808_v47 = vand.u32 2147483648, %v4047_v20 }
 0x10c   : > { %v910_v63 = vsel %vm909_vm15, %v3083_v45, %v906_v38  ;;  %v3093_v45 = vpop.eup %3092  ;;  %vm4114_vm15 = vcmp.eq.f32.partialorder %v1031_v26, 8.507059e+37  ;;  %v1026_v27 = vadd.f32 %v3085_v58, %v1025_v39  ;;  %3096 = vrcp.f32 %v4127_v11 }
 0x10d   : > { %v915_v61 = vsel %vm912_vm4, %v914_v55, %v910_v63  ;;  %v798_v22 = vmul.f32 %v3093_v45, %v4047_v20  ;;  %vm4122_vm4 = vmor %vm1027_vm9, %vm1028_vm2  ;;  %v679_v26 = vsub.f32 1.0, %v678_v17  ;;  %vm803_vm2 = vweird.f32 %v3093_v45 }
 0x10e   : > { %v1100_v63 = vmul.f32 %v915_v61, %v3909_v56  ;;  %v1034_v56 = vor.u32 1.1754944e-38, %v1033_v35  ;;  %v686_v61 = vand.u32 2147483647, %v4045_v41  ;;  %v1030_v35 = vsel %vm4122_vm4, %v3085_v58, %v1026_v27 }
 0x10f   : > { %v799_v10 = vsub.f32 1.0, %v798_v22  ;;  %v680_v39 = vmul.f32 %v3091_v62, %v679_v26  ;;  %v4146_v22 = vmul.f32 %v3989_v57, %v3877_v16  ;;  %vm682_vm4 = vweird.f32 %v4045_v41 }
 0x110   : > { %v1332_v55 = vsel %vm4100_vm8, %v1100_v63, 0.0  ;;  %v806_v63 = vand.u32 2147483647, %v4047_v20  ;;  %vm6454_vm8 = vcmp.lt.s32.totalorder %v3650_v60, 17  ;;  %vm4162_vm10 = vmor %vm682_vm4, %vm683_vm0  ;;  %v4168_v41 = vmul.f32 %v3880_v18, %v1376_v13  ;;  %v4170_v27 = vpop.eup %3094 }
 0x111   : > { %1363 = vst.msk [vmem:[#allocation2 + $0x90] sm:$0xff] %vm6359_vm7, %v1332_v55  ;;  %vm4140_vm9 = vmand %vm3793_vm13, %vm6454_vm8  ;;  %v800_v17 = vmul.f32 %v3093_v45, %v799_v10  ;;  %v1035_v55 = vsel %vm4114_vm15, %v1034_v56, %v1030_v35  ;;  %vm802_vm8 = vweird.f32 %v4047_v20  ;;  %v681_v8 = vadd.f32 %v3091_v62, %v680_v39 }
 0x112   : > { %6457 = vst [vmem:[#allocation48_spill] sm:$0xff] %v4146_v22  ;;  %vm4155_vm13 = vmand %vm1127_vm6, %vm1137_vm11  ;;  %v1108_v10 = vmul.f32 %v1035_v55, %v3925_v36  ;;  %vm687_vm6 = vcmp.eq.f32.partialorder %v686_v61, 8.507059e+37  ;;  %v689_v38 = vor.u32 1.1754944e-38, %v688_v2  ;;  %v809_v56 = vor.u32 1.1754944e-38, %v808_v47  ;;  %v1384_v55 = vld [vmem:[#allocation2 + $0x48] sm:$0xff] }
 0x113   : > { %v801_v58 = vadd.f32 %v3093_v45, %v800_v17  ;;  %vm804_vm11 = vmor %vm802_vm8, %vm803_vm2  ;;  %v685_v20 = vsel %vm4162_vm10, %v3091_v62, %v681_v8  ;;  %vm807_vm0 = vcmp.eq.f32.partialorder %v806_v63, 8.507059e+37  ;;  %v4178_v39 = vmul.f32 %v3884_v24, %v1376_v13  ;;  %v434_v63 = vpop.f32.mrf.mxu0 }
 0x114   : > { %v1340_v36 = vsel %vm4140_vm9, %v1108_v10, 0.0  ;;  %v690_v61 = vsel %vm687_vm6, %v689_v38, %v685_v20  ;;  %vm4189_vm10 = vmand %vm4155_vm13, %vm1156_vm3  ;;  %vm6464_vm15 = vcmp.lt.s32.totalorder %v3650_v60, 17  ;;  %v918_v38 = vmul.f32 %v4170_v27, %v4105_v0 }
 0x115   : > { %v805_v26 = vsel %vm804_vm11, %v3093_v45, %v801_v58  ;;  %1371 = vst.msk [vmem:[#allocation2 + $0xd0] sm:$0xff] %vm6359_vm7, %v1340_v36  ;;  %vm4200_vm9 = vmand %vm3843_vm12, %vm6464_vm15  ;;  %v4209_v36 = vmul.f32 %v3948_v25, %v1376_v13  ;;  %v6309_v20 = vrot.slane %v4168_v41, 1  ;;  %v6312_v51 = vrot.slane %v4178_v39, 2 }
 0x116   : > { %v810_v2 = vsel %vm807_vm0, %v809_v56, %v805_v26  ;;  %v4206_v56 = vpop.eup %3096  ;;  %v1085_v26 = vmul.f32 %v690_v61, %v3941_v1  ;;  %v4216_v17 = vmul.f32 %v3880_v18, %v1384_v55  ;;  %v4219_v47 = vmul.f32 %v3952_v29, %v1384_v55 }
 0x117   : > { %6467 = vst [vmem:[#allocation49_spill] sm:$0xff] %v4209_v36  ;;  %v1093_v42 = vmul.f32 %v810_v2, %v3945_v21  ;;  %v4222_v35 = vadd.f32 %v3609_v32, %v434_v63  ;;  %v4225_v13 = vmul.f32 %v3948_v25, %v1384_v55  ;;  %v4228_v16 = vmul.f32 %v3956_v34, %v1384_v55 }
 0x118   : > { %v1317_v1 = vsel %vm4189_vm10, %v1085_v26, 0.0  ;;  %v4235_v61 = vmul.f32 %v3884_v24, %v1384_v55  ;;  %v4238_v2 = vmul.f32 %v3960_v40, %v1384_v55  ;;  %v919_v63 = vsub.f32 1.0, %v918_v38 }
 0x119   : > { %6468 = vst [vmem:[#allocation50_spill] sm:$0xff] %v4225_v13  ;;  %v1325_v21 = vsel %vm4200_vm9, %v1093_v42, 0.0  ;;  %v1038_v8 = vmul.f32 %v4206_v56, %v4127_v11  ;;  %v6469_v45 = vrot.slane %v3973_v49, 1  ;;  %vm6470_vm12 = vcmask 1046528  }
 0x11a   : > { %1348 = vst.msk [vmem:[#allocation2 + $0x18] sm:$0xff] %vm6359_vm7, %v1317_v1  ;;  %v4251_v42 = vmul.f32 %v3963_v43, %v1384_v55  ;;  %v4254_v58 = vmul.f32 %v3966_v44, %v1384_v55  ;;  %v1643_v1 = vmul.f32 %v3952_v29, %v3897_v37  ;;  %v6474_v38 = vrot.slane %v3976_v52, 2  ;;  %vm6480_vm9 = vmmov %vm6470_vm12 }
 0x11b   : > { %v4248_v26 = vsel %vm6470_vm12, %v6469_v45, %v6309_v20  ;;  %1356 = vst.msk [vmem:[#allocation2 + $0x58] sm:$0xff] %vm6359_vm7, %v1325_v21  ;;  %vm6475_vm2 = vcmask 1045504   ;;  %v2869_v10 = vmul.f32 -1.442695, %v4222_v35  ;;  %v4271_v30 = vmul.f32 %v3989_v57, %v1384_v55  ;;  %v458_v45 = vpop.f32.mrf.mxu1 }
 0x11c   : > { %6471 = vst [vmem:[#allocation51_spill] sm:$0xff] %v4248_v26  ;;  %v4264_v49 = vsel %vm6475_vm2, %v6474_v38, %v6312_v51  ;;  %v920_v21 = vmul.f32 %v4170_v27, %v919_v63  ;;  %v1039_v19 = vsub.f32 1.0, %v1038_v8  ;;  %v1761_v38 = vmul.f32 %v3956_v34, %v3897_v37 }
 0x11d   : > { %6472 = vst [vmem:[#allocation52_spill] sm:$0xff] %v4251_v42  ;;  %v2007_v20 = vmul.f32 %v3960_v40, %v3897_v37  ;;  %v1700_v51 = vrot.slane %v1643_v1, 1  ;;  %v2125_v62 = vmul.f32 %v3989_v57, %v3897_v37  ;;  %v1121_v63 = vadd.s32 9, %v3636_v53 }
 0x11e   : > { %6473 = vst [vmem:[#allocation53_spill] sm:$0xff] %v4254_v58  ;;  %v1040_v55 = vmul.f32 %v4206_v56, %v1039_v19  ;;  %v921_v8 = vadd.f32 %v4170_v27, %v920_v21  ;;  %vm923_vm4 = vweird.f32 %v4170_v27  ;;  %v928_v52 = vand.u32 2147483648, %v4105_v0  ;;  %v1400_v19 = vld [vmem:[#allocation2 + $0xc8] sm:$0xff] }
 0x11f   : > { %6476 = vst [vmem:[#allocation54_spill] sm:$0xff] %v4264_v49  ;;  %3098 = vpow2.f32 %v2869_v10  ;;  %vm1042_vm8 = vweird.f32 %v4127_v11  ;;  %vm1043_vm6 = vweird.f32 %v4206_v56  ;;  %v1048_v1 = vand.u32 2147483648, %v4127_v11 }
 0x120   : > { %v4291_v26 = vadd.f32 %v3609_v32, %v458_v45  ;;  %vm922_vm11 = vweird.f32 %v4105_v0  ;;  %v926_v21 = vand.u32 2147483647, %v4105_v0  ;;  %v1046_v49 = vand.u32 2147483647, %v4127_v11  ;;  %vm4314_vm12 = vmor %vm1042_vm8, %vm1043_vm6 }
 0x121   : > { %v1816_v58 = vrot.slane %v1761_v38, 1  ;;  %vm4297_vm0 = vmor %vm922_vm11, %vm923_vm4  ;;  %v1041_v42 = vadd.f32 %v4206_v56, %v1040_v55  ;;  %vm1135_vm10 = vcmp.ge.s32.totalorder %v1121_v63, 1  ;;  %vm1145_vm15 = vcmp.lt.s32.totalorder %v1121_v63, 17 }
 0x122   : > { %v6479_v32 = vrot.slane %v4087_v59, 1  ;;  %v2064_v37 = vrot.slane %v2007_v20, 2  ;;  %v2180_v23 = vrot.slane %v2125_v62, 2  ;;  %v925_v0 = vsel %vm4297_vm0, %v4170_v27, %v921_v8  ;;  %v1377_v59 = vld [vmem:[#allocation2 + $0x10] sm:$0xff]  ;;  %vm4330_vm8 = vmand %vm1135_vm10, %vm1145_vm15 }
 0x123   : > { %v4319_v55 = vmul.f32 %v3952_v29, %v1400_v19  ;;  %v2877_v62 = vmul.f32 -1.442695, %v4291_v26  ;;  %v4323_v10 = vmul.f32 %v3956_v34, %v1400_v19  ;;  %v4326_v27 = vmul.f32 %v3960_v40, %v1400_v19  ;;  %vm6489_vm6 = vmmov %vm6480_vm9 }
 0x124   : > { %v4305_v45 = vsel %vm6480_vm9, %v6479_v32, %v1700_v51  ;;  %v929_v51 = vor.u32 1.1754944e-38, %v928_v52  ;;  %v1049_v32 = vor.u32 1.1754944e-38, %v1048_v1  ;;  %vm927_vm2 = vcmp.eq.f32.partialorder %v926_v21, 8.507059e+37  ;;  %vm4362_vm10 = vmand %vm4330_vm8, %vm1156_vm3  ;;  %v6742_v54 = vld [vmem:[#allocation52_spill] sm:$0xff] }
 0x125   : > { %6481 = vst [vmem:[#allocation55_spill] sm:$0xff] %v4305_v45  ;;  %v3099_v20 = vpop.eup %3098  ;;  %vm1047_vm4 = vcmp.eq.f32.partialorder %v1046_v49, 8.507059e+37  ;;  %v6485_v11 = vmov 0  ;;  %v6488_v52 = vrot.slane %v4091_v33, 1  ;;  %v4340_v1 = vmul.f32 %v3989_v57, %v1400_v19  ;;  %vm6503_vm15 = vmmov %vm6489_vm6 }
 0x126   : > { %6484 = vst [vmem:[#allocation56_spill] sm:$0xff] %v4326_v27  ;;  %v6486_v11 = vsel %vm4330_vm8, 4294967295, %v6485_v11  ;;  %v930_v45 = vsel %vm927_vm2, %v929_v51, %v925_v0  ;;  %v1045_v21 = vsel %vm4314_vm12, %v4206_v56, %v1041_v42  ;;  %v6492_v49 = vrot.slane %v4109_v9, 2  ;;  %vm6506_vm9 = vmmov %vm6489_vm6 }
 0x127   : > { %6487 = vst [vmem:[#allocation57_spill] sm:$0xff] %v6486_v11  ;;  %v4337_v8 = vsel %vm6489_vm6, %v6488_v52, %v1816_v58  ;;  %vm6493_vm11 = vcmask 1045504   ;;  %v6495_v6 = vrot.slane %v4146_v22, 2  ;;  %v1509_v58 = vmul.f32 %v3880_v18, %v1377_v59  ;;  %v461_v22 = vpop.f32.mrf.mxu1 }
 0x128   : > { %6490 = vst [vmem:[#allocation58_spill] sm:$0xff] %v4337_v8  ;;  %v4348_v63 = vsel %vm6493_vm11, %v6492_v49, %v2064_v37  ;;  %vm6496_vm0 = vmmov %vm6493_vm11  ;;  %v1873_v52 = vmul.f32 %v3884_v24, %v1377_v59  ;;  %v1385_v8 = vld [vmem:[#allocation2 + $0x50] sm:$0xff]  ;;  %v1101_v0 = vmul.f32 %v930_v45, %v3996_v4  ;;  %v1050_v51 = vsel %vm1047_vm4, %v1049_v32, %v1045_v21  ;;  %v482_v37 = vpop.f32.mrf.mxu2  ;;  %v506_v45 = vpop.f32.mrf.mxu3 }
 0x129   : > { %6491 = vst [vmem:[#allocation59_spill] sm:$0xff] %v4340_v1  ;;  %v4353_v33 = vsel %vm6496_vm0, %v6495_v6, %v2180_v23  ;;  %v4366_v42 = vadd.f32 1.0, %v3099_v20  ;;  %3100 = vpow2.f32 %v2877_v62  ;;  %v6316_v23 = vrot.slane %v4319_v55, 1  ;;  %vm6510_vm12 = vmmov %vm6496_vm0 }
 0x12a   : > { %6494 = vst [vmem:[#allocation60_spill] sm:$0xff] %v4348_v63  ;;  %v6317_v6 = vrot.slane %v4323_v10, 1  ;;  %v1109_v4 = vmul.f32 %v1050_v51, %v4008_v12  ;;  %v4373_v38 = vmul.f32 %v3963_v43, %v1400_v19  ;;  %v1333_v20 = vsel %vm4077_vm14, %v1101_v0, 0.0  ;;  %vm6514_vm2 = vmmov %vm6496_vm0 }
 0x12b   : > { %6497 = vst [vmem:[#allocation61_spill] sm:$0xff] %v4353_v33  ;;  %3102 = vrcp.f32 %v4366_v42  ;;  %v1559_v62 = vrot.slane %v1509_v58, 1  ;;  %v4380_v21 = vmul.f32 %v3880_v18, %v1385_v8  ;;  %v4383_v49 = vmul.f32 %v3952_v29, %v1385_v8  ;;  %v4395_v58 = vld [vmem:[%s6383_s2] ss:$0 sm:$0xff]  ;;  %vm6517_vm4 = vmmov %vm6489_vm6 }
 0x12c   : > { %6500 = vst [vmem:[#allocation62_spill] sm:$0xff] %v4373_v38  ;;  %v1341_v12 = vsel %vm4362_vm10, %v1109_v4, 0.0  ;;  %v1923_v51 = vrot.slane %v1873_v52, 2  ;;  %v4389_v32 = vmul.f32 %v3956_v34, %v1385_v8  ;;  %v4398_v0 = vadd.f32 %v4395_v58, %v482_v37  ;;  %vm6520_vm6 = vmmov %vm6496_vm0 }
 0x12d   : > { %1364 = vst.msk [vmem:[#allocation2 + $0x98] sm:$0xff] %vm6359_vm7, %v1333_v20  ;;  %v4401_v59 = vadd.f32 %v4395_v58, %v506_v45  ;;  %v4404_v56 = vmul.f32 %v3966_v44, %v1400_v19  ;;  %v6502_v52 = vrot.slane %v4063_v46, 1  ;;  %v6505_v20 = vrot.slane %v4066_v5, 1  ;;  %vm6526_vm11 = vmmov %vm6517_vm4 }
 0x12e   : > { %1372 = vst.msk [vmem:[#allocation2 + $0xd8] sm:$0xff] %vm6359_vm7, %v1341_v12  ;;  %v6508_v45 = vrot.slane %v4326_v27, 2  ;;  %v6509_v12 = vrot.slane %v4069_v14, 2  ;;  %v6512_v46 = vrot.slane %v4340_v1, 2  ;;  %v4435_v5 = vmul.f32 %v3884_v24, %v1385_v8  ;;  %vm6530_vm0 = vmmov %vm6517_vm4 }
 0x12f   : > { %6501 = vst [vmem:[#allocation63_spill] sm:$0xff] %v4404_v56  ;;  %v4411_v4 = vsel %vm6503_vm15, %v6502_v52, %v6316_v23  ;;  %v4418_v37 = vsel %vm6506_vm9, %v6505_v20, %v6317_v6  ;;  %v3101_v38 = vpop.eup %3100  ;;  %v6513_v52 = vrot.slane %v4072_v15, 2  ;;  %v4438_v20 = vmul.f32 %v3960_v40, %v1385_v8  ;;  %v437_v15 = vpop.f32.mrf.mxu0  ;;  %vm6534_vm10 = vmmov %vm6530_vm0 }
 0x130   : > { %6504 = vst [vmem:[#allocation64_spill] sm:$0xff] %v4411_v4  ;;  %v4425_v19 = vsel %vm6510_vm12, %v6509_v12, %v6508_v45  ;;  %v2885_v6 = vmul.f32 -1.442695, %v4398_v0  ;;  %v6516_v14 = vrot.slane %v4168_v41, 1  ;;  %v6322_v12 = vrot.slane %v4380_v21, 1  ;;  %vm6539_vm9 = vmmov %vm6514_vm2 }
 0x131   : > { %6507 = vst [vmem:[#allocation65_spill] sm:$0xff] %v4418_v37  ;;  %v4432_v23 = vsel %vm6514_vm2, %v6513_v52, %v6512_v46  ;;  %v4448_v1 = vadd.f32 1.0, %v3101_v38  ;;  %v3103_v46 = vpop.eup %3102  ;;  %v6519_v52 = vrot.slane %v4178_v39, 2  ;;  %v2893_v41 = vmul.f32 -1.442695, %v4401_v59  ;;  %vm6543_vm12 = vmmov %vm6514_vm2 }
 0x132   : > { %6511 = vst [vmem:[#allocation66_spill] sm:$0xff] %v4425_v19  ;;  %v4444_v45 = vsel %vm6517_vm4, %v6516_v14, %v1559_v62  ;;  %3104 = vpow2.f32 %v2885_v6  ;;  %v4458_v62 = vmul.f32 %v3948_v25, %v1385_v8  ;;  %v4461_v14 = vmul.f32 %v3963_v43, %v1385_v8 }
 0x133   : > { %6515 = vst [vmem:[#allocation67_spill] sm:$0xff] %v4432_v23  ;;  %v4453_v27 = vsel %vm6520_vm6, %v6519_v52, %v1923_v51  ;;  %v693_v38 = vmul.f32 %v3103_v46, %v4366_v42  ;;  %3106 = vrcp.f32 %v4448_v1  ;;  %v4466_v39 = vmul.f32 %v3966_v44, %v1385_v8 }
 0x134   : > { %6518 = vst [vmem:[#allocation68_spill] sm:$0xff] %v4444_v45  ;;  %v4471_v6 = vmul.f32 %v3989_v57, %v1385_v8  ;;  %v4473_v23 = vld [vmem:[#allocation2 + $0x98] sm:$0xff]  ;;  %v6525_v19 = vrot.slane %v4216_v17, 1  ;;  %v6528_v4 = vrot.slane %v4383_v49, 1  ;;  %v6529_v56 = vrot.slane %v4219_v47, 1  ;;  %v1393_v47 = vld [vmem:[#allocation2 + $0x90] sm:$0xff] }
 0x135   : > { %6521 = vst [vmem:[#allocation69_spill] sm:$0xff] %v4453_v27  ;;  %v1452_v8 = vmul.f32 %v3963_v43, %v4473_v23  ;;  %v694_v52 = vsub.f32 1.0, %v693_v38  ;;  %v6532_v9 = vrot.slane %v4389_v32, 1  ;;  %v6533_v27 = vrot.slane %v4228_v16, 1 }
 0x136   : > { %6522 = vst [vmem:[#allocation70_spill] sm:$0xff] %v4458_v62  ;;  %v4480_v37 = vsel %vm6526_vm11, %v6525_v19, %v6322_v12  ;;  %v4487_v51 = vsel %vm6530_vm0, %v6529_v56, %v6528_v4  ;;  %v701_v19 = vand.u32 2147483647, %v4366_v42  ;;  %v703_v12 = vand.u32 2147483648, %v4366_v42 }
 0x137   : > { %6523 = vst [vmem:[#allocation71_spill] sm:$0xff] %v4461_v14  ;;  %v4496_v17 = vsel %vm6534_vm10, %v6533_v27, %v6532_v9  ;;  %3108 = vpow2.f32 %v2893_v41  ;;  %v4501_v56 = vadd.f32 %v1452_v8, %v4032_v31  ;;  %v695_v4 = vmul.f32 %v3103_v46, %v694_v52 }
 0x138   : > { %6524 = vst [vmem:[#allocation72_spill] sm:$0xff] %v4466_v39  ;;  %vm698_vm15 = vweird.f32 %v3103_v46  ;;  %v4504_v38 = vadd.f32 %v4395_v58, %v437_v15  ;;  %v6537_v16 = vrot.slane %v4435_v5, 2  ;;  %v6538_v9 = vrot.slane %v4235_v61, 2 }
 0x139   : > { %6527 = vst [vmem:[#allocation73_spill] sm:$0xff] %v4480_v37  ;;  %v3105_v37 = vpop.eup %3104  ;;  %v6542_v41 = vrot.slane %v4238_v2, 2  ;;  %v4522_v15 = vadd.f32 %v4395_v58, %v461_v22  ;;  %vm697_vm2 = vweird.f32 %v4366_v42  ;;  %v4526_v61 = vadd.s32 4, %v3636_v53 }
 0x13a   : > { %6531 = vst [vmem:[#allocation74_spill] sm:$0xff] %v4487_v51  ;;  %v4511_v27 = vsel %vm6539_vm9, %v6538_v9, %v6537_v16  ;;  %v3107_v8 = vpop.eup %3106  ;;  %v4528_v16 = vadd.f32 1.0, %v3105_v37  ;;  %v4531_v9 = vmul.f32 %v3948_v25, %v1393_v47  ;;  %v4534_v2 = vmul.f32 %v3963_v43, %v1393_v47  ;;  %vm699_vm4 = vmor %vm697_vm2, %vm698_vm15 }
 0x13b   : > { %6535 = vst [vmem:[#allocation75_spill] sm:$0xff] %v4496_v17  ;;  %v6541_v17 = vrot.slane %v4438_v20, 2  ;;  %v813_v22 = vmul.f32 %v3107_v8, %v4448_v1  ;;  %vm702_vm6 = vcmp.eq.f32.partialorder %v701_v19, 8.507059e+37  ;;  %v2870_v42 = vmul.f32 -1.442695, %v4504_v38 }
 0x13c   : > { %6536 = vst [vmem:[#allocation76_spill] sm:$0xff] %v4501_v56  ;;  %v696_v56 = vadd.f32 %v3103_v46, %v695_v4  ;;  %3110 = vrcp.f32 %v4528_v16  ;;  %v4540_v37 = vmul.f32 %v3880_v18, %v1393_v47  ;;  %vm1130_vm11 = vcmp.ge.s32.totalorder %v4526_v61, 1 }
 0x13d   : > { %6540 = vst [vmem:[#allocation77_spill] sm:$0xff] %v4511_v27  ;;  %v4518_v31 = vsel %vm6543_vm12, %v6542_v41, %v6541_v17  ;;  %v704_v17 = vor.u32 1.1754944e-38, %v703_v12  ;;  %v3109_v4 = vpop.eup %3108  ;;  %v814_v27 = vsub.f32 1.0, %v813_v22  ;;  %v823_v12 = vand.u32 2147483648, %v4448_v1 }
 0x13e   : > { %6544 = vst [vmem:[#allocation78_spill] sm:$0xff] %v4518_v31  ;;  %v700_v41 = vsel %vm699_vm4, %v3103_v46, %v696_v56  ;;  %v1401_v31 = vld [vmem:[#allocation2 + $0xd0] sm:$0xff]  ;;  %vm1140_vm0 = vcmp.lt.s32.totalorder %v4526_v61, 17  ;;  %v4548_v46 = vmul.f32 %v3952_v29, %v1393_v47  ;;  %vm818_vm10 = vweird.f32 %v3107_v8 }
 0x13f   : > { %6545 = vst [vmem:[#allocation79_spill] sm:$0xff] %v4526_v61  ;;  %v705_v52 = vsel %vm702_vm6, %v704_v17, %v700_v41  ;;  %v815_v19 = vmul.f32 %v3107_v8, %v814_v27  ;;  %v821_v56 = vand.u32 2147483647, %v4448_v1  ;;  %v4552_v17 = vmul.f32 %v3956_v34, %v1393_v47  ;;  %vm4561_vm9 = vmand %vm1130_vm11, %vm1140_vm0 }
 0x140   : > { %6546 = vst [vmem:[#allocation80_spill] sm:$0xff] %v4531_v9  ;;  %v2878_v9 = vmul.f32 -1.442695, %v4522_v15  ;;  %3112 = vpow2.f32 %v2870_v42  ;;  %vm817_vm15 = vweird.f32 %v4448_v1  ;;  %v4566_v51 = vmul.f32 %v3884_v24, %v1393_v47  ;;  %vm4586_vm4 = vmand %vm4561_vm9, %vm1156_vm3 }
 0x141   : > { %6547 = vst [vmem:[#allocation81_spill] sm:$0xff] %v4534_v2  ;;  %v1086_v2 = vmul.f32 %v705_v52, %v4222_v35  ;;  %v4556_v35 = vadd.f32 1.0, %v3109_v4  ;;  %v1652_v52 = vmul.f32 %v3952_v29, %v1401_v31  ;;  %v816_v41 = vadd.f32 %v3107_v8, %v815_v19  ;;  %vm819_vm12 = vmor %vm817_vm15, %vm818_vm10 }
 0x142   : > { %6548 = vst [vmem:[#allocation82_spill] sm:$0xff] %v4552_v17  ;;  %3114 = vpow2.f32 %v2878_v9  ;;  %v3111_v61 = vpop.eup %3110  ;;  %v824_v42 = vor.u32 1.1754944e-38, %v823_v12  ;;  %v1770_v4 = vmul.f32 %v3956_v34, %v1401_v31  ;;  %vm822_vm2 = vcmp.eq.f32.partialorder %v821_v56, 8.507059e+37 }
 0x143   : > { %v1318_v22 = vsel %vm4155_vm13, %v1086_v2, 0.0  ;;  %6551 = vst [vmem:[#allocation83_spill] sm:$0xff] %v4566_v51  ;;  %v4569_v2 = vmul.f32 %v3960_v40, %v1393_v47  ;;  %3116 = vrcp.f32 %v4556_v35  ;;  %v820_v1 = vsel %vm819_vm12, %v3107_v8, %v816_v41 }
 0x144   : > { %1349 = vst.msk [vmem:[#allocation2 + $0x20] sm:$0xff] %vm6359_vm7, %v1318_v22  ;;  %v933_v19 = vmul.f32 %v3111_v61, %v4528_v16  ;;  %v485_v22 = vpop.f32.mrf.mxu2  ;;  %v4576_v9 = vmul.f32 %v3966_v44, %v1393_v47  ;;  %v4580_v39 = vmul.f32 %v3989_v57, %v1393_v47  ;;  %v825_v14 = vsel %vm822_vm2, %v824_v42, %v820_v1 }
 0x145   : > { %6552 = vst [vmem:[#allocation84_spill] sm:$0xff] %v4569_v2  ;;  %v1715_v56 = vrot.slane %v1652_v52, 1  ;;  %v1094_v41 = vmul.f32 %v825_v14, %v4291_v26  ;;  %v4596_v1 = vadd.f32 %v4395_v58, %v485_v22  ;;  %v1831_v7 = vrot.slane %v1770_v4, 1 }
 0x146   : > { %6553 = vst [vmem:[#allocation85_spill] sm:$0xff] %v4576_v9  ;;  %v934_v9 = vsub.f32 1.0, %v933_v19  ;;  %v3113_v33 = vpop.eup %3112  ;;  %v943_v52 = vand.u32 2147483648, %v4528_v16  ;;  %v1378_v19 = vld [vmem:[#allocation2 + $0x18] sm:$0xff]  ;;  %v6557_v47 = vrot.slane %v4471_v6, 2  ;;  %v6558_v42 = vrot.slane %v4271_v30, 2 }
 0x147   : > { %6554 = vst [vmem:[#allocation86_spill] sm:$0xff] %v4580_v39  ;;  %v1326_v62 = vsel %vm4586_vm4, %v1094_v41, 0.0  ;;  %vm6559_vm6 = vcmask 1045504   ;;  %vm938_vm11 = vweird.f32 %v3111_v61  ;;  %v941_v4 = vand.u32 2147483647, %v4528_v16 }
 0x148   : > { %v3115_v63 = vpop.eup %3114  ;;  %v935_v8 = vmul.f32 %v3111_v61, %v934_v9  ;;  %v4609_v22 = vsel %vm6559_vm6, %v6558_v42, %v6557_v47  ;;  %1357 = vst.msk [vmem:[#allocation2 + $0x60] sm:$0xff] %vm6359_vm7, %v1326_v62  ;;  %v6561_v9 = vrot.slane %v4319_v55, 1  ;;  %vm6562_vm0 = vcmask 1046528  }
 0x149   : > { %v4601_v26 = vpop.eup %3116  ;;  %6560 = vst [vmem:[#allocation87_spill] sm:$0xff] %v4609_v22  ;;  %v4619_v41 = vmul.f32 %v3960_v40, %v1401_v31  ;;  %v4622_v14 = vmul.f32 %v3989_v57, %v1401_v31  ;;  %v4624_v30 = vadd.f32 1.0, %v3113_v33  ;;  %vm937_vm10 = vweird.f32 %v4528_v16  ;;  %vm6567_vm15 = vmmov %vm6562_vm0 }
 0x14a   : > { %v4616_v12 = vsel %vm6562_vm0, %v6561_v9, %v1715_v56  ;;  %v936_v47 = vadd.f32 %v3111_v61, %v935_v8  ;;  %v1053_v62 = vmul.f32 %v4601_v26, %v4556_v35  ;;  %v2886_v42 = vmul.f32 -1.442695, %v4596_v1  ;;  %vm939_vm12 = vmor %vm937_vm10, %vm938_vm11 }
 0x14b   : > { %6563 = vst [vmem:[#allocation88_spill] sm:$0xff] %v4616_v12  ;;  %v6566_v55 = vrot.slane %v4323_v10, 1  ;;  %v4636_v9 = vmul.f32 %v3948_v25, %v1378_v19  ;;  %v944_v31 = vor.u32 1.1754944e-38, %v943_v52  ;;  %v4638_v33 = vadd.f32 1.0, %v3115_v63  ;;  %v4654_v52 = vld [vmem:[#allocation2 + $0x58] sm:$0xff] }
 0x14c   : > { %6564 = vst [vmem:[#allocation89_spill] sm:$0xff] %v4619_v41  ;;  %v1441_v8 = vmul.f32 %v3963_v43, %v1378_v19  ;;  %v940_v16 = vsel %vm939_vm12, %v3111_v61, %v936_v47  ;;  %vm942_vm2 = vcmp.eq.f32.partialorder %v941_v4, 8.507059e+37  ;;  %v1054_v45 = vsub.f32 1.0, %v1053_v62  ;;  %v440_v4 = vpop.f32.mrf.mxu0 }
 0x14d   : > { %6565 = vst [vmem:[#allocation90_spill] sm:$0xff] %v4622_v14  ;;  %v4633_v56 = vsel %vm6567_vm15, %v6566_v55, %v1831_v7  ;;  %v509_v14 = vpop.f32.mrf.mxu3  ;;  %v4642_v41 = vmul.f32 %v3880_v18, %v1378_v19  ;;  %v4645_v10 = vmul.f32 %v3952_v29, %v1378_v19  ;;  %v945_v7 = vsel %vm942_vm2, %v944_v31, %v940_v16 }
 0x14e   : > { %6568 = vst [vmem:[#allocation91_spill] sm:$0xff] %v4633_v56  ;;  %3118 = vrcp.f32 %v4624_v30  ;;  %v4649_v55 = vmul.f32 %v3884_v24, %v1378_v19  ;;  %v4652_v63 = vmul.f32 %v3960_v40, %v1378_v19  ;;  %v1102_v61 = vmul.f32 %v945_v7, %v4398_v0 }
 0x14f   : > { %6569 = vst [vmem:[#allocation92_spill] sm:$0xff] %v4636_v9  ;;  %3120 = vpow2.f32 %v2886_v42  ;;  %vm6571_vm4 = vcmp.lt.s32.totalorder %v3650_v60, 17  ;;  %v4667_v47 = vmul.f32 %v3880_v18, %v4473_v23  ;;  %v1063_v19 = vand.u32 2147483648, %v4556_v35 }
 0x150   : > { %6570 = vst [vmem:[#allocation93_spill] sm:$0xff] %v4642_v41  ;;  %vm4661_vm6 = vmand %vm4077_vm14, %vm6571_vm4  ;;  %3122 = vrcp.f32 %v4638_v33  ;;  %v4672_v62 = vadd.f32 %v4395_v58, %v509_v14  ;;  %v1055_v0 = vmul.f32 %v4601_v26, %v1054_v45  ;;  %vm1057_vm11 = vweird.f32 %v4556_v35 }
 0x151   : > { %vm1058_vm14 = vweird.f32 %v4601_v26  ;;  %v1061_v50 = vand.u32 2147483647, %v4556_v35  ;;  %v4680_v42 = vmul.f32 %v3880_v18, %v4654_v52  ;;  %v4684_v31 = vmul.f32 %v3952_v29, %v4473_v23 }
 0x152   : > { %6574 = vst [vmem:[#allocation94_spill] sm:$0xff] %v4672_v62  ;;  %v4688_v14 = vmul.f32 %v3884_v24, %v4473_v23  ;;  %v4692_v45 = vmul.f32 %v3960_v40, %v4473_v23  ;;  %v4695_v16 = vadd.f32 %v1441_v8, %v3970_v48  ;;  %v4700_v56 = vmul.f32 %v3952_v29, %v4654_v52  ;;  %vm4715_vm0 = vmor %vm1057_vm11, %vm1058_vm14 }
 0x153   : > { %v1334_v12 = vsel %vm4661_vm6, %v1102_v61, 0.0  ;;  %v4706_v9 = vmul.f32 %v3956_v34, %v4654_v52  ;;  %v4710_v28 = vmul.f32 %v3884_v24, %v4654_v52  ;;  %v1064_v8 = vor.u32 1.1754944e-38, %v1063_v19 }
 0x154   : > { %6575 = vst [vmem:[#allocation95_spill] sm:$0xff] %v4695_v16  ;;  %v3119_v22 = vpop.eup %3118  ;;  %v2894_v61 = vmul.f32 -1.442695, %v4672_v62  ;;  %v1056_v13 = vadd.f32 %v4601_v26, %v1055_v0  ;;  %vm1062_vm10 = vcmp.eq.f32.partialorder %v1061_v50, 8.507059e+37  ;;  %v718_v19 = vand.u32 2147483648, %v4624_v30 }
 0x155   : > { %1365 = vst.msk [vmem:[#allocation2 + $0xa0] sm:$0xff] %vm6359_vm7, %v1334_v12  ;;  %v3121_v7 = vpop.eup %3120  ;;  %v708_v41 = vmul.f32 %v3119_v22, %v4624_v30  ;;  %v4732_v0 = vadd.f32 %v4395_v58, %v440_v4  ;;  %vm712_vm15 = vweird.f32 %v4624_v30  ;;  %vm713_vm12 = vweird.f32 %v3119_v22 }
 0x156   : > { %v3123_v39 = vpop.eup %3122  ;;  %v1060_v62 = vsel %vm4715_vm0, %v4601_v26, %v1056_v13  ;;  %v4735_v12 = vadd.f32 1.0, %v3121_v7  ;;  %3124 = vpow2.f32 %v2894_v61  ;;  %v716_v48 = vand.u32 2147483647, %v4624_v30  ;;  %vm714_vm4 = vmor %vm712_vm15, %vm713_vm12 }
 0x157   : > { %v709_v2 = vsub.f32 1.0, %v708_v41  ;;  %v828_v16 = vmul.f32 %v3123_v39, %v4638_v33  ;;  %v1065_v50 = vsel %vm1062_vm10, %v1064_v8, %v1060_v62  ;;  %v719_v13 = vor.u32 1.1754944e-38, %v718_v19 }
 0x158   : > { %v1110_v36 = vmul.f32 %v1065_v50, %v4401_v59  ;;  %vm833_vm2 = vweird.f32 %v3123_v39  ;;  %3126 = vrcp.f32 %v4735_v12  ;;  %v838_v8 = vand.u32 2147483648, %v4638_v33 }
 0x159   : > { %v710_v35 = vmul.f32 %v3119_v22, %v709_v2  ;;  %v829_v51 = vsub.f32 1.0, %v828_v16  ;;  %vm832_vm6 = vweird.f32 %v4638_v33  ;;  %vm717_vm11 = vcmp.eq.f32.partialorder %v716_v48, 8.507059e+37 }
 0x15a   : > { %v1342_v41 = vsel %vm4330_vm8, %v1110_v36, 0.0  ;;  %v836_v36 = vand.u32 2147483647, %v4638_v33  ;;  %vm834_vm14 = vmor %vm832_vm6, %vm833_vm2  ;;  %vm6579_vm0 = vcmask 1046528   ;;  %v6581_v33 = vrot.slane %v4684_v31, 1 }
 0x15b   : > { %v711_v62 = vadd.f32 %v3119_v22, %v710_v35  ;;  %v830_v7 = vmul.f32 %v3123_v39, %v829_v51  ;;  %1373 = vst.msk [vmem:[#allocation2 + $0xe0] sm:$0xff] %vm6359_vm7, %v1342_v41  ;;  %vm6582_vm10 = vmmov %vm6579_vm0  ;;  %v6584_v48 = vrot.slane %v4688_v14, 2  ;;  %vm6585_vm15 = vcmask 1045504  }
 0x15c   : > { %v4740_v26 = vld [vmem:[#allocation2 + $0xa0] sm:$0xff]  ;;  %v3125_v35 = vpop.eup %3124  ;;  %vm6587_vm12 = vcmp.lt.s32.totalorder %v3650_v60, 17  ;;  %vm6591_vm6 = vmmov %vm6585_vm15 }
 0x15d   : > { %v1527_v59 = vmul.f32 %v3880_v18, %v4740_v26  ;;  %v1646_v2 = vmul.f32 %v3952_v29, %v4740_v26  ;;  %v1891_v16 = vmul.f32 %v3884_v24, %v4740_v26  ;;  %v2010_v51 = vmul.f32 %v3960_v40, %v4740_v26  ;;  %vm4781_vm2 = vmand %vm4155_vm13, %vm6587_vm12 }
 0x15e   : > { %v715_v61 = vsel %vm714_vm4, %v3119_v22, %v711_v62  ;;  %v831_v4 = vadd.f32 %v3123_v39, %v830_v7  ;;  %v839_v24 = vor.u32 1.1754944e-38, %v838_v8  ;;  %v4760_v43 = vpop.eup %3126  ;;  %v6578_v29 = vrot.slane %v4667_v47, 1 }
 0x15f   : > { %v1589_v19 = vrot.slane %v1527_v59, 1  ;;  %v1705_v50 = vrot.slane %v1646_v2, 1  ;;  %v1953_v11 = vrot.slane %v1891_v16, 2  ;;  %v2069_v41 = vrot.slane %v2010_v51, 2  ;;  %v464_v51 = vpop.f32.mrf.mxu1 }
 0x160   : > { %v720_v17 = vsel %vm717_vm11, %v719_v13, %v715_v61  ;;  %v835_v30 = vsel %vm834_vm14, %v3123_v39, %v831_v4  ;;  %vm837_vm4 = vcmp.eq.f32.partialorder %v836_v36, 8.507059e+37  ;;  %v6590_v13 = vrot.slane %v4692_v45, 2  ;;  %v6637_v61 = vld [vmem:[#allocation83_spill] sm:$0xff] }
 0x161   : > { %v4765_v22 = vsel %vm6579_vm0, %v6578_v29, %v1589_v19  ;;  %v4770_v62 = vsel %vm6582_vm10, %v6581_v33, %v1705_v50  ;;  %v4775_v7 = vsel %vm6585_vm15, %v6584_v48, %v1953_v11  ;;  %v2001_v29 = vmul.f32 %v3960_v40, %v4654_v52  ;;  %v1402_v48 = vld [vmem:[#allocation2 + $0xd8] sm:$0xff]  ;;  %vm6596_vm15 = vmmov %vm6582_vm10  ;;  %v6628_v19 = vld [vmem:[#allocation24_spill] sm:$0xff] }
 0x162   : > { %6580 = vst [vmem:[#allocation96_spill] sm:$0xff] %v4765_v22  ;;  %v4790_v8 = vsel %vm6591_vm6, %v6590_v13, %v2069_v41  ;;  %v1087_v11 = vmul.f32 %v720_v17, %v4504_v38  ;;  %v840_v59 = vsel %vm837_vm4, %v839_v24, %v835_v30  ;;  %v2119_v2 = vmul.f32 %v3989_v57, %v4654_v52  ;;  %v4834_v13 = vld [vmem:[%s6420_s3 + $0x8] ss:$0 sm:$0xff]  ;;  %vm6604_vm4 = vmmov %vm6591_vm6 }
 0x163   : > { %6583 = vst [vmem:[#allocation97_spill] sm:$0xff] %v4770_v62  ;;  %v1095_v3 = vmul.f32 %v840_v59, %v4522_v15  ;;  %v948_v16 = vmul.f32 %v4760_v43, %v4735_v12  ;;  %v2871_v36 = vmul.f32 -1.442695, %v4732_v0  ;;  %v1574_v38 = vrot.slane %v4680_v42, 1  ;;  %v6641_v62 = vld [vmem:[#allocation84_spill] sm:$0xff] }
 0x164   : > { %6586 = vst [vmem:[#allocation98_spill] sm:$0xff] %v4775_v7  ;;  %v1319_v24 = vsel %vm4781_vm2, %v1087_v11, 0.0  ;;  %v1690_v57 = vrot.slane %v4700_v56, 1  ;;  %v4810_v17 = vadd.s32 7, %v3636_v53  ;;  %v1806_v52 = vrot.slane %v4706_v9, 1  ;;  %vm6601_vm2 = vmmov %vm6582_vm10 }
 0x165   : > { %6592 = vst [vmem:[#allocation99_spill] sm:$0xff] %v4790_v8  ;;  %v1327_v15 = vsel %vm4561_vm9, %v1095_v3, 0.0  ;;  %v949_v50 = vsub.f32 1.0, %v948_v16  ;;  %v4814_v41 = vadd.f32 1.0, %v3125_v35  ;;  %v4817_v30 = vadd.f32 %v4395_v58, %v464_v51  ;;  %v1387_v8 = vld [vmem:[#allocation2 + $0x60] sm:$0xff] }
 0x166   : > { %1350 = vst.msk [vmem:[#allocation2 + $0x28] sm:$0xff] %vm6359_vm7, %v1319_v24  ;;  %v1938_v56 = vrot.slane %v4710_v28, 2  ;;  %v2054_v42 = vrot.slane %v2001_v29, 2  ;;  %v2170_v33 = vrot.slane %v2119_v2, 2  ;;  %3128 = vpow2.f32 %v2871_v36 }
 0x167   : > { %6593 = vst [vmem:[#allocation100_spill] sm:$0xff] %v4810_v17  ;;  %v950_v39 = vmul.f32 %v4760_v43, %v949_v50  ;;  %vm953_vm13 = vweird.f32 %v4760_v43  ;;  %v958_v9 = vand.u32 2147483648, %v4735_v12  ;;  %3130 = vrcp.f32 %v4814_v41 }
 0x168   : > { %1358 = vst.msk [vmem:[#allocation2 + $0x68] sm:$0xff] %vm6359_vm7, %v1327_v15  ;;  %v956_v35 = vand.u32 2147483647, %v4735_v12  ;;  %vm1133_vm11 = vcmp.ge.s32.totalorder %v4810_v17, 1  ;;  %vm1143_vm14 = vcmp.lt.s32.totalorder %v4810_v17, 17  ;;  %v4829_v29 = vmul.f32 %v3956_v34, %v1402_v48 }
 0x169   : > { %v2879_v28 = vmul.f32 -1.442695, %v4817_v30  ;;  %v4837_v11 = vmul.f32 %v4834_v13, %v1402_v48  ;;  %v951_v59 = vadd.f32 %v4760_v43, %v950_v39  ;;  %vm952_vm0 = vweird.f32 %v4735_v12  ;;  %vm4878_vm6 = vmand %vm1133_vm11, %vm1143_vm14 }
 0x16a   : > { %v6594_v2 = vrot.slane %v4380_v21, 1  ;;  %v6595_v16 = vrot.slane %v4383_v49, 1  ;;  %v4853_v51 = vmul.f32 %v3956_v34, %v4473_v23  ;;  %vm4857_vm12 = vmor %vm952_vm0, %vm953_vm13  ;;  %v6600_v21 = vrot.slane %v4389_v32, 1 }
 0x16b   : > { %3132 = vpow2.f32 %v2879_v28  ;;  %v6603_v49 = vrot.slane %v4435_v5, 2  ;;  %v959_v15 = vor.u32 1.1754944e-38, %v958_v9  ;;  %v6605_v50 = vmov 0  ;;  %vm6609_vm13 = vmmov %vm6604_vm4  ;;  %v488_v9 = vpop.f32.mrf.mxu2 }
 0x16c   : > { %v4844_v3 = vsel %vm6582_vm10, %v6594_v2, %v1574_v38  ;;  %v4849_v36 = vsel %vm6596_vm15, %v6595_v16, %v1690_v57  ;;  %v4864_v12 = vsel %vm6601_vm2, %v6600_v21, %v1806_v52  ;;  %v955_v57 = vsel %vm4857_vm12, %v4760_v43, %v951_v59  ;;  %v3129_v32 = vpop.eup %3128  ;;  %vm6612_vm0 = vmmov %vm6604_vm4  ;;  %v1379_v2 = vld [vmem:[#allocation2 + $0x20] sm:$0xff] }
 0x16d   : > { %6597 = vst [vmem:[#allocation101_spill] sm:$0xff] %v4849_v36  ;;  %v4869_v38 = vsel %vm6604_vm4, %v6603_v49, %v1938_v56  ;;  %v6606_v50 = vsel %vm4878_vm6, 4294967295, %v6605_v50  ;;  %v6608_v52 = vrot.slane %v4438_v20, 2  ;;  %v6611_v56 = vrot.slane %v4471_v6, 2  ;;  %v3131_v28 = vpop.eup %3130  ;;  %vm6618_vm11 = vmmov %vm6601_vm2 }
 0x16e   : > { %6602 = vst [vmem:[#allocation102_spill] sm:$0xff] %v4864_v12  ;;  %v4894_v43 = vmul.f32 %v3948_v25, %v4473_v23  ;;  %vm957_vm10 = vcmp.eq.f32.partialorder %v956_v35, 8.507059e+37  ;;  %v4897_v59 = vmul.f32 %v3966_v44, %v1402_v48  ;;  %v6616_v6 = vrot.slane %v4667_v47, 1  ;;  %vm6622_vm14 = vmmov %vm6601_vm2 }
 0x16f   : > { %6607 = vst [vmem:[#allocation103_spill] sm:$0xff] %v6606_v50  ;;  %v4885_v5 = vsel %vm6609_vm13, %v6608_v52, %v2054_v42  ;;  %v4890_v39 = vsel %vm6612_vm0, %v6611_v56, %v2170_v33  ;;  %v960_v16 = vsel %vm957_vm10, %v959_v15, %v955_v57  ;;  %v6617_v33 = vrot.slane %v4540_v37, 1  ;;  %vm4924_vm15 = vmand %vm4878_vm6, %vm1156_vm3 }
 0x170   : > { %6610 = vst [vmem:[#allocation104_spill] sm:$0xff] %v4885_v5  ;;  %v6620_v35 = vrot.slane %v4684_v31, 1  ;;  %v6621_v21 = vrot.slane %v4548_v46, 1  ;;  %v4918_v52 = vmul.f32 %v4834_v13, %v4473_v23  ;;  %v1103_v47 = vmul.f32 %v960_v16, %v4596_v1  ;;  %vm6632_vm4 = vmmov %vm6618_vm11 }
 0x171   : > { %6613 = vst [vmem:[#allocation105_spill] sm:$0xff] %v4890_v39  ;;  %v4906_v24 = vsel %vm6618_vm11, %v6617_v33, %v6616_v6  ;;  %v1068_v46 = vmul.f32 %v3131_v28, %v4814_v41  ;;  %v4930_v31 = vadd.f32 1.0, %v3129_v32  ;;  %v4933_v57 = vadd.f32 %v4395_v58, %v488_v9  ;;  %v3133_v15 = vpop.eup %3132  ;;  %v6626_v6 = vld [vmem:[#allocation30_spill] sm:$0xff]  ;;  %v6627_v9 = vld [vmem:[#allocation32_spill] sm:$0xff]  ;;  %vm6643_vm10 = vmmov %vm6612_vm0 }
 0x172   : > { %6614 = vst [vmem:[#allocation106_spill] sm:$0xff] %v4894_v43  ;;  %v4913_v48 = vsel %vm6622_vm14, %v6621_v21, %v6620_v35  ;;  %v4936_v56 = vmul.f32 %v3880_v18, %v1379_v2  ;;  %v4939_v33 = vmul.f32 %v6626_v6, %v1379_v2  ;;  %vm1072_vm12 = vweird.f32 %v4814_v41  ;;  %vm6651_vm14 = vmmov %vm6612_vm0 }
 0x173   : > { %6615 = vst [vmem:[#allocation107_spill] sm:$0xff] %v4897_v59  ;;  %v1078_v35 = vand.u32 2147483648, %v4814_v41  ;;  %v1335_v1 = vsel %vm4924_vm15, %v1103_v47, 0.0  ;;  %v1069_v16 = vsub.f32 1.0, %v1068_v46  ;;  %vm1073_vm2 = vweird.f32 %v3131_v28  ;;  %vm6656_vm15 = vmmov %vm6632_vm4 }
 0x174   : > { %6619 = vst [vmem:[#allocation108_spill] sm:$0xff] %v4906_v24  ;;  %v1076_v32 = vand.u32 2147483647, %v4814_v41  ;;  %v1442_v21 = vmul.f32 %v6627_v9, %v1379_v2  ;;  %3134 = vrcp.f32 %v4930_v31  ;;  %v4950_v20 = vadd.f32 1.0, %v3133_v15  ;;  %vm4970_vm13 = vmor %vm1072_vm12, %vm1073_vm2 }
 0x175   : > { %6623 = vst [vmem:[#allocation109_spill] sm:$0xff] %v4913_v48  ;;  %v4953_v4 = vmul.f32 %v6628_v19, %v1379_v2  ;;  %v4956_v37 = vmul.f32 %v3960_v40, %v1379_v2  ;;  %v1070_v47 = vmul.f32 %v3131_v28, %v1069_v16  ;;  %v2887_v46 = vmul.f32 -1.442695, %v4933_v57  ;;  %vm6659_vm12 = vmmov %vm6632_vm4 }
 0x176   : > { %1366 = vst.msk [vmem:[#allocation2 + $0xa8] sm:$0xff] %vm6359_vm7, %v1335_v1  ;;  %v6629_v42 = vrot.slane %v4853_v51, 1  ;;  %v6630_v1 = vld [vmem:[#allocation82_spill] sm:$0xff]  ;;  %v1079_v16 = vor.u32 1.1754944e-38, %v1078_v35  ;;  %v6636_v7 = vrot.slane %v4688_v14, 2  ;;  %v6638_v24 = vrot.slane %v6637_v61, 2  ;;  %vm6664_vm2 = vmmov %vm6612_vm0 }
 0x177   : > { %v6631_v17 = vrot.slane %v6630_v1, 1  ;;  %v6640_v1 = vrot.slane %v4692_v45, 2  ;;  %v1071_v41 = vadd.f32 %v3131_v28, %v1070_v47  ;;  %vm1077_vm11 = vcmp.eq.f32.partialorder %v1076_v32, 8.507059e+37  ;;  %v6646_v35 = vld [vmem:[#allocation49_spill] sm:$0xff]  ;;  %v6649_v61 = vld [vmem:[#allocation86_spill] sm:$0xff]  ;;  %v443_v45 = vpop.f32.mrf.mxu0 }
 0x178   : > { %v4979_v49 = vsel %vm6612_vm0, %v6638_v24, %v6636_v7  ;;  %v4989_v48 = vmul.f32 %v3948_v25, %v1379_v2  ;;  %v4992_v22 = vadd.f32 %v1442_v21, %v6646_v35  ;;  %v6648_v14 = vrot.slane %v4918_v52, 2 }
 0x179   : > { %v4966_v15 = vsel %vm6632_vm4, %v6631_v17, %v6629_v42  ;;  %6639 = vst [vmem:[#allocation32_spill] sm:$0xff] %v4979_v49  ;;  %v6642_v17 = vrot.slane %v6641_v62, 2  ;;  %v6650_v7 = vrot.slane %v6649_v61, 2  ;;  %3136 = vrcp.f32 %v4950_v20  ;;  %v6674_v49 = vld [vmem:[#allocation50_spill] sm:$0xff] }
 0x17a   : > { %6633 = vst [vmem:[#allocation30_spill] sm:$0xff] %v4966_v15  ;;  %v6341_v62 = vrot.slane %v4953_v4, 2  ;;  %v1075_v2 = vsel %vm4970_vm13, %v3131_v28, %v1071_v41  ;;  %3138 = vpow2.f32 %v2887_v46  ;;  %v5006_v21 = vpop.eup %3134  ;;  %v6653_v47 = vrot.slane %v4936_v56, 1 }
 0x17b   : > { %v4986_v42 = vsel %vm6643_vm10, %v6642_v17, %v6640_v1  ;;  %6645 = vst [vmem:[#allocation82_spill] sm:$0xff] %v4989_v48  ;;  %v4999_v24 = vsel %vm6651_vm14, %v6650_v7, %v6648_v14  ;;  %v6654_v1 = vld [vmem:[#allocation93_spill] sm:$0xff]  ;;  %v6657_v14 = vrot.slane %v4939_v33, 1  ;;  %v6658_v61 = vrot.slane %v4645_v10, 1 }
 0x17c   : > { %6644 = vst [vmem:[#allocation24_spill] sm:$0xff] %v4986_v42  ;;  %v6655_v17 = vrot.slane %v6654_v1, 1  ;;  %v1447_v53 = vmul.f32 %v6627_v9, %v1387_v8  ;;  %v1080_v28 = vsel %vm1077_vm11, %v1079_v16, %v1075_v2  ;;  %v5024_v46 = vmul.f32 %v3880_v18, %v1387_v8  ;;  %v6662_v2 = vld [vmem:[#allocation94_spill] sm:$0xff] }
 0x17d   : > { %6647 = vst [vmem:[#allocation83_spill] sm:$0xff] %v4992_v22  ;;  %v5020_v7 = vsel %vm6659_vm12, %v6658_v61, %v6657_v14  ;;  %v5027_v41 = vmul.f32 %v6626_v6, %v1387_v8  ;;  %v5030_v1 = vmul.f32 %v3956_v34, %v1387_v8  ;;  %v5036_v10 = vmul.f32 %v6628_v19, %v1387_v8  ;;  %vm5136_vm12 = vmand %vm3710_vm1, %vm1156_vm3 }
 0x17e   : > { %6652 = vst [vmem:[#allocation84_spill] sm:$0xff] %v4999_v24  ;;  %v5013_v35 = vsel %vm6656_vm15, %v6655_v17, %v6653_v47  ;;  %v5033_v47 = vadd.f32 %v4395_v58, %v443_v45  ;;  %v5039_v17 = vmul.f32 %v3960_v40, %v1387_v8  ;;  %v5042_v16 = vmul.f32 %v4834_v13, %v1387_v8 }
 0x17f   : > { %6660 = vst [vmem:[#allocation49_spill] sm:$0xff] %v5036_v10  ;;  %v1111_v14 = vmul.f32 %v1080_v28, %v6662_v2  ;;  %v6663_v61 = vrot.slane %v4649_v55, 2  ;;  %v5054_v45 = vmul.f32 %v3956_v34, %v4740_v26  ;;  %v5058_v42 = vmul.f32 %v4834_v13, %v4740_v26  ;;  %v5070_v2 = vpop.eup %3136 }
 0x180   : > { %6661 = vst [vmem:[#allocation86_spill] sm:$0xff] %v5039_v17  ;;  %vm6666_vm4 = vcmp.lt.s32.totalorder %v3650_v60, 17  ;;  %v723_v55 = vmul.f32 %v5006_v21, %v4930_v31  ;;  %v5080_v59 = vmul.f32 %v3948_v25, %v1387_v8  ;;  %v5083_v43 = vadd.f32 %v1447_v53, %v6674_v49  ;;  %v3139_v15 = vpop.eup %3138 }
 0x181   : > { %v5050_v32 = vsel %vm6664_vm2, %v6663_v61, %v6341_v62  ;;  %vm5064_vm13 = vmand %vm4330_vm8, %vm6666_vm4  ;;  %v6670_v61 = vrot.slane %v4956_v37, 2  ;;  %v6671_v62 = vrot.slane %v4652_v63, 2  ;;  %v5086_v24 = vmul.f32 %v3966_v44, %v1387_v8  ;;  %v467_v8 = vpop.f32.mrf.mxu1 }
 0x182   : > { %6665 = vst [vmem:[#allocation93_spill] sm:$0xff] %v5050_v32  ;;  %v2872_v63 = vmul.f32 -1.442695, %v5033_v47  ;;  %v1343_v53 = vsel %vm5064_vm13, %v1111_v14, 0.0  ;;  %v1821_v49 = vrot.slane %v5054_v45, 1  ;;  %v2185_v39 = vrot.slane %v5058_v42, 2 }
 0x183   : > { %v5077_v26 = vsel %vm6612_vm0, %v6671_v62, %v6670_v61  ;;  %6673 = vst [vmem:[#allocation57_spill] sm:$0xff] %v5080_v59  ;;  %v724_v32 = vsub.f32 1.0, %v723_v55  ;;  %v843_v5 = vmul.f32 %v5070_v2, %v4950_v20  ;;  %vm728_vm8 = vweird.f32 %v5006_v21  ;;  %v5107_v14 = vld [vmem:[#allocation2 + $0x68] sm:$0xff] }
 0x184   : > { %6672 = vst [vmem:[#allocation94_spill] sm:$0xff] %v5077_v26  ;;  %v731_v61 = vand.u32 2147483647, %v4930_v31  ;;  %v733_v62 = vand.u32 2147483648, %v4930_v31  ;;  %v5105_v28 = vadd.f32 1.0, %v3139_v15  ;;  %3140 = vpow2.f32 %v2872_v63  ;;  %v1380_v15 = vld [vmem:[#allocation2 + $0x28] sm:$0xff] }
 0x185   : > { %6675 = vst [vmem:[#allocation50_spill] sm:$0xff] %v5083_v43  ;;  %v1403_v43 = vld [vmem:[#allocation2 + $0xe0] sm:$0xff]  ;;  %v725_v45 = vmul.f32 %v5006_v21, %v724_v32  ;;  %v844_v42 = vsub.f32 1.0, %v843_v5  ;;  %vm727_vm10 = vweird.f32 %v4930_v31  ;;  %v853_v59 = vand.u32 2147483648, %v4950_v20 }
 0x186   : > { %1374 = vst.msk [vmem:[#allocation2 + $0xe8] sm:$0xff] %vm6359_vm7, %v1343_v53  ;;  %v5111_v53 = vadd.f32 %v4395_v58, %v467_v8  ;;  %v5114_v55 = vmul.f32 %v3956_v34, %v1403_v43  ;;  %3142 = vrcp.f32 %v5105_v28  ;;  %vm848_vm11 = vweird.f32 %v5070_v2  ;;  %vm729_vm14 = vmor %vm727_vm10, %vm728_vm8 }
 0x187   : > { %v726_v17 = vadd.f32 %v5006_v21, %v725_v45  ;;  %v845_v10 = vmul.f32 %v5070_v2, %v844_v42  ;;  %v851_v5 = vand.u32 2147483647, %v4950_v20  ;;  %v5124_v58 = vmul.f32 %v4834_v13, %v1403_v43 }
 0x188   : > { %6676 = vst [vmem:[#allocation110_spill] sm:$0xff] %v5114_v55  ;;  %v1448_v32 = vmul.f32 %v6627_v9, %v5107_v14  ;;  %v734_v31 = vor.u32 1.1754944e-38, %v733_v62  ;;  %v2880_v63 = vmul.f32 -1.442695, %v5111_v53  ;;  %vm732_vm15 = vcmp.eq.f32.partialorder %v731_v61, 8.507059e+37 }
 0x189   : > { %6677 = vst [vmem:[#allocation111_spill] sm:$0xff] %v5124_v58  ;;  %v730_v8 = vsel %vm729_vm14, %v5006_v21, %v726_v17  ;;  %v846_v26 = vadd.f32 %v5070_v2, %v845_v10  ;;  %vm847_vm2 = vweird.f32 %v4950_v20  ;;  %v1512_v12 = vmul.f32 %v3880_v18, %v1380_v15 }
 0x18a   : > { %v1631_v62 = vmul.f32 %v6626_v6, %v1380_v15  ;;  %v735_v36 = vsel %vm732_vm15, %v734_v31, %v730_v8  ;;  %vm849_vm4 = vmor %vm847_vm2, %vm848_vm11  ;;  %v854_v21 = vor.u32 1.1754944e-38, %v853_v59  ;;  %v3141_v17 = vpop.eup %3140  ;;  %vm852_vm13 = vcmp.eq.f32.partialorder %v851_v5, 8.507059e+37 }
 0x18b   : > { %v1088_v61 = vmul.f32 %v735_v36, %v4732_v0  ;;  %v850_v22 = vsel %vm849_vm4, %v5070_v2, %v846_v26  ;;  %3144 = vpow2.f32 %v2880_v63  ;;  %v1876_v20 = vmul.f32 %v6628_v19, %v1380_v15  ;;  %v6684_v2 = vld [vmem:[#allocation70_spill] sm:$0xff] }
 0x18c   : > { %v5148_v48 = vpop.eup %3142  ;;  %v1995_v10 = vmul.f32 %v3960_v40, %v1380_v15  ;;  %v1417_v31 = vmul.f32 %v3948_v25, %v5107_v14  ;;  %v855_v8 = vsel %vm852_vm13, %v854_v21, %v850_v22  ;;  %vm6681_vm0 = vcmp.lt.s32.totalorder %v3650_v60, 17 }
 0x18d   : > { %vm5158_vm8 = vmand %vm4561_vm9, %vm6681_vm0  ;;  %v1320_v36 = vsel %vm5136_vm12, %v1088_v61, 0.0  ;;  %v1096_v59 = vmul.f32 %v855_v8, %v4817_v30  ;;  %v1464_v26 = vadd.f32 %v1448_v32, %v6684_v2  ;;  %v5166_v15 = vadd.f32 1.0, %v3141_v17 }
 0x18e   : > { %v6685_v5 = vrot.slane %v4853_v51, 1  ;;  %vm6686_vm10 = vcmask 1046528   ;;  %1351 = vst.msk [vmem:[#allocation2 + $0x30] sm:$0xff] %vm6359_vm7, %v1320_v36  ;;  %v5176_v27 = vmul.f32 %v3880_v18, %v5107_v14  ;;  %v5180_v63 = vmul.f32 %v6626_v6, %v5107_v14 }
 0x18f   : > { %v963_v30 = vmul.f32 %v5148_v48, %v5105_v28  ;;  %v6687_v32 = vrot.slane %v4918_v52, 2  ;;  %vm6688_vm9 = vcmask 1045504   ;;  %v1328_v21 = vsel %vm5158_vm8, %v1096_v59, 0.0  ;;  %vm6693_vm11 = vmmov %vm6686_vm10 }
 0x190   : > { %v5171_v22 = vsel %vm6686_vm10, %v6685_v5, %v1821_v49  ;;  %v6345_v49 = vrot.slane %v5114_v55, 1  ;;  %v5194_v17 = vmul.f32 %v3966_v44, %v1403_v43  ;;  %v1564_v61 = vrot.slane %v1512_v12, 1  ;;  %1359 = vst.msk [vmem:[#allocation2 + $0x70] sm:$0xff] %vm6359_vm7, %v1328_v21  ;;  %v6690_v5 = vld [vmem:[#allocation40_spill] sm:$0xff]  ;;  %vm6697_vm14 = vmmov %vm6688_vm9 }
 0x191   : > { %v5187_v51 = vsel %vm6688_vm9, %v6687_v32, %v2185_v39  ;;  %v1680_v8 = vrot.slane %v1631_v62, 1  ;;  %v1928_v36 = vrot.slane %v1876_v20, 2  ;;  %v3145_v2 = vpop.eup %3144  ;;  %v2044_v52 = vrot.slane %v1995_v10, 2  ;;  %v6691_v32 = vld [vmem:[#allocation41_spill] sm:$0xff]  ;;  %vm6700_vm15 = vmmov %vm6686_vm10 }
 0x192   : > { %6689 = vst [vmem:[#allocation21_spill] sm:$0xff] %v5194_v17  ;;  %v1466_v39 = vadd.f32 %v6690_v5, %v1417_v31  ;;  %v1497_v60 = vadd.f32 %v6691_v32, %v1464_v26  ;;  %3146 = vrcp.f32 %v5166_v15  ;;  %v1577_v42 = vrot.slane %v5176_v27, 1  ;;  %vm6702_vm12 = vmmov %vm6686_vm10  ;;  %v5241_v32 = vld [vmem:[#allocation2 + $0xa8] sm:$0xff] }
 0x193   : > { %v1693_v0 = vrot.slane %v5180_v63, 1  ;;  %v5204_v43 = vmul.f32 %v3956_v34, %v5107_v14  ;;  %v964_v12 = vsub.f32 1.0, %v963_v30  ;;  %v6692_v62 = vrot.slane %v4829_v29, 1  ;;  %vm6704_vm2 = vmmov %vm6688_vm9  ;;  %6705 = vst [vmem:[#allocation41_spill] sm:$0xff] %v5241_v32 }
 0x194   : > { %v6695_v10 = vrot.slane %v5124_v58, 2  ;;  %v6696_v31 = vrot.slane %v4837_v11, 2  ;;  %v5222_v26 = vmul.f32 %v3966_v44, %v5107_v14  ;;  %v1483_v27 = vmul.f32 %v3966_v44, %v4473_v23  ;;  %vm6707_vm4 = vmmov %vm6704_vm2 }
 0x195   : > { %v5211_v20 = vsel %vm6693_vm11, %v6692_v62, %v6345_v49  ;;  %v6699_v63 = vrot.slane %v4936_v56, 1  ;;  %v6701_v30 = vrot.slane %v4939_v33, 1  ;;  %v6703_v11 = vrot.slane %v4953_v4, 2  ;;  %vm6709_vm13 = vmmov %vm6686_vm10 }
 0x196   : > { %6694 = vst [vmem:[#allocation70_spill] sm:$0xff] %v5211_v20  ;;  %v5218_v59 = vsel %vm6697_vm14, %v6696_v31, %v6695_v10  ;;  %v5243_v62 = vadd.f32 1.0, %v3145_v2  ;;  %v6706_v23 = vrot.slane %v4956_v37, 2  ;;  %v1619_v33 = vadd.f32 %v4844_v3, %v1497_v60  ;;  %vm6712_vm0 = vmmov %vm6686_vm10 }
 0x197   : > { %6698 = vst [vmem:[#allocation40_spill] sm:$0xff] %v5218_v59  ;;  %v5229_v29 = vsel %vm6700_vm15, %v6699_v63, %v1564_v61  ;;  %v5234_v21 = vsel %vm6702_vm12, %v6701_v30, %v1680_v8  ;;  %v5239_v5 = vsel %vm6704_vm2, %v6703_v11, %v1928_v36  ;;  %v1499_v61 = vadd.f32 %v1483_v27, %v1466_v39  ;;  %v5289_v31 = vld [vmem:[#allocation2 + $0x70] sm:$0xff]  ;;  %vm6726_vm12 = vmmov %vm6712_vm0 }
 0x198   : > { %v5248_v56 = vsel %vm6707_vm4, %v6706_v23, %v2044_v52  ;;  %v5253_v8 = vmul.f32 %v6628_v19, %v5107_v14  ;;  %v6708_v4 = vrot.slane %v5024_v46, 1  ;;  %v6711_v2 = vrot.slane %v5027_v41, 1  ;;  %v5267_v39 = vpop.eup %3146  ;;  %vm6727_vm2 = vmmov %vm6712_vm0 }
 0x199   : > { %v965_v52 = vmul.f32 %v5148_v48, %v964_v12  ;;  %v5271_v60 = vmul.f32 %v3948_v25, %v5241_v32  ;;  %v5275_v3 = vmul.f32 %v6627_v9, %v5241_v32  ;;  %v5279_v46 = vmul.f32 %v3966_v44, %v5241_v32 }
 0x19a   : > { %v5258_v36 = vsel %vm6709_vm13, %v6708_v4, %v1577_v42  ;;  %v5263_v10 = vsel %vm6712_vm0, %v6711_v2, %v1693_v0  ;;  %v5283_v41 = vmul.f32 %v3960_v40, %v5107_v14  ;;  %v5287_v12 = vmul.f32 %v3880_v18, %v5241_v32 }
 0x19b   : > { %6710 = vst [vmem:[#allocation112_spill] sm:$0xff] %v5258_v36  ;;  %v5293_v27 = vmul.f32 %v4834_v13, %v5107_v14  ;;  %v971_v63 = vand.u32 2147483647, %v5105_v28  ;;  %3148 = vrcp.f32 %v5243_v62  ;;  %v5299_v30 = vmul.f32 %v6626_v6, %v5241_v32 }
 0x19c   : > { %6713 = vst [vmem:[#allocation113_spill] sm:$0xff] %v5263_v10  ;;  %v5303_v11 = vmul.f32 %v3956_v34, %v5241_v32  ;;  %v973_v4 = vand.u32 2147483648, %v5105_v28  ;;  %v966_v2 = vadd.f32 %v5148_v48, %v965_v52  ;;  %vm968_vm8 = vweird.f32 %v5148_v48 }
 0x19d   : > { %6714 = vst [vmem:[#allocation114_spill] sm:$0xff] %v5271_v60  ;;  %v738_v14 = vmul.f32 %v5267_v39, %v5166_v15  ;;  %v746_v49 = vand.u32 2147483647, %v5166_v15  ;;  %v1521_v37 = vmul.f32 %v3880_v18, %v5289_v31  ;;  %v1640_v58 = vmul.f32 %v6626_v6, %v5289_v31 }
 0x19e   : > { %6715 = vst [vmem:[#allocation115_spill] sm:$0xff] %v5275_v3  ;;  %v748_v23 = vand.u32 2147483648, %v5166_v15  ;;  %v1885_v52 = vmul.f32 %v6628_v19, %v5289_v31  ;;  %vm967_vm10 = vweird.f32 %v5105_v28  ;;  %vm5322_vm9 = vcmp.eq.f32.partialorder %v971_v63, 8.507059e+37 }
 0x19f   : > { %6716 = vst [vmem:[#allocation116_spill] sm:$0xff] %v5279_v46  ;;  %v1579_v20 = vrot.slane %v1521_v37, 1  ;;  %v1695_v46 = vrot.slane %v1640_v58, 1  ;;  %v2004_v36 = vmul.f32 %v3960_v40, %v5289_v31  ;;  %vm5328_vm11 = vmor %vm967_vm10, %vm968_vm8  ;;  %v974_v10 = vor.u32 1.1754944e-38, %v973_v4  ;;  %v5343_v4 = vld [vmem:[#allocation2 + $0x30] sm:$0xff] }
 0x1a0   : > { %6717 = vst [vmem:[#allocation117_spill] sm:$0xff] %v5287_v12  ;;  %v970_v17 = vsel %vm5328_vm11, %v5148_v48, %v966_v2  ;;  %v739_v28 = vsub.f32 1.0, %v738_v14  ;;  %vm742_vm14 = vweird.f32 %v5166_v15  ;;  %vm5336_vm15 = vcmp.eq.f32.partialorder %v746_v49, 8.507059e+37 }
 0x1a1   : > { %6718 = vst [vmem:[#allocation118_spill] sm:$0xff] %v5299_v30  ;;  %v1580_v58 = vsel %vm6726_vm12, %v1577_v42, %v1579_v20  ;;  %v1696_v37 = vsel %vm6727_vm2, %v1693_v0, %v1695_v46  ;;  %v749_v30 = vor.u32 1.1754944e-38, %v748_v23  ;;  %v866_v12 = vand.u32 2147483647, %v5243_v62  ;;  %v6728_v20 = vld [vmem:[#allocation55_spill] sm:$0xff]  ;;  %v6729_v46 = vld [vmem:[#allocation58_spill] sm:$0xff] }
 0x1a2   : > { %6719 = vst [vmem:[#allocation119_spill] sm:$0xff] %v5303_v11  ;;  %v3149_v11 = vpop.eup %3148  ;;  %v1621_v60 = vadd.f32 %v1580_v58, %v1499_v61  ;;  %v1740_v3 = vadd.f32 %v1696_v37, %v1619_v33  ;;  %v1943_v55 = vrot.slane %v1885_v52, 2  ;;  %vm743_vm4 = vweird.f32 %v5267_v39 }
 0x1a3   : > { %v2059_v48 = vrot.slane %v2004_v36, 2  ;;  %v975_v49 = vsel %vm5322_vm9, %v974_v10, %v970_v17  ;;  %v740_v2 = vmul.f32 %v5267_v39, %v739_v28  ;;  %v858_v42 = vmul.f32 %v3149_v11, %v5243_v62  ;;  %vm744_vm0 = vmor %vm742_vm14, %vm743_vm4 }
 0x1a4   : > { %v1742_v0 = vadd.f32 %v6728_v20, %v1621_v60  ;;  %v1861_v23 = vadd.f32 %v6729_v46, %v1740_v3  ;;  %v1104_v14 = vmul.f32 %v975_v49, %v4933_v57  ;;  %v868_v61 = vand.u32 2147483648, %v5243_v62  ;;  %v5378_v49 = vld [vmem:[%s6734_s4] ss:$0 sm:$0xff]  ;;  %vm6762_vm4 = vmmov %vm6727_vm2 }
 0x1a5   : > { %v1443_v33 = vmul.f32 %v6627_v9, %v5343_v4  ;;  %v1474_v36 = vmul.f32 %v3966_v44, %v5343_v4  ;;  %v741_v17 = vadd.f32 %v5267_v39, %v740_v2  ;;  %v859_v59 = vsub.f32 1.0, %v858_v42 }
 0x1a6   : > { %v1863_v10 = vadd.f32 %v5171_v22, %v1742_v0  ;;  %v6730_v52 = vrot.slane %v5253_v8, 2  ;;  %vm6731_vm13 = vcmask 1045504   ;;  %v1983_v3 = vadd.f32 %v4869_v38, %v1861_v23  ;;  %v6735_v0 = vld [vmem:[#allocation60_spill] sm:$0xff]  ;;  %v6736_v23 = vld [vmem:[#allocation61_spill] sm:$0xff] }
 0x1a7   : > { %v1336_v57 = vsel %vm4878_vm6, %v1104_v14, 0.0  ;;  %v6732_v28 = vrot.slane %v5283_v41, 2  ;;  %vm6733_vm8 = vmmov %vm6731_vm13  ;;  %v745_v22 = vsel %vm744_vm0, %v5267_v39, %v741_v17  ;;  %v860_v37 = vmul.f32 %v3149_v11, %v859_v59 }
 0x1a8   : > { %v1944_v60 = vsel %vm6731_vm13, %v6730_v52, %v1943_v55  ;;  %1367 = vst.msk [vmem:[#allocation2 + $0xb0] sm:$0xff] %vm6359_vm7, %v1336_v57  ;;  %vm863_vm10 = vweird.f32 %v3149_v11  ;;  %v750_v15 = vsel %vm5336_vm15, %v749_v30, %v745_v22  ;;  %vm862_vm9 = vweird.f32 %v5243_v62  ;;  %v6737_v30 = vld [vmem:[#allocation92_spill] sm:$0xff]  ;;  %v6738_v62 = vld [vmem:[#allocation95_spill] sm:$0xff]  ;;  %vm5409_vm15 = vmand %vm3804_vm5, %vm1156_vm3 }
 0x1a9   : > { %v2060_v58 = vsel %vm6733_vm8, %v6732_v28, %v2059_v48  ;;  %v1985_v55 = vadd.f32 %v1944_v60, %v1863_v10  ;;  %v1089_v48 = vmul.f32 %v750_v15, %v5033_v47  ;;  %v861_v2 = vadd.f32 %v3149_v11, %v860_v37  ;;  %vm864_vm14 = vmor %vm862_vm9, %vm863_vm10  ;;  %v6743_v22 = vld [vmem:[#allocation53_spill] sm:$0xff] }
 0x1aa   : > { %v2104_v38 = vadd.f32 %v2060_v58, %v1983_v3  ;;  %vm867_vm11 = vcmp.eq.f32.partialorder %v866_v12, 8.507059e+37  ;;  %v869_v42 = vor.u32 1.1754944e-38, %v868_v61  ;;  %v1412_v39 = vmul.f32 %v3948_v25, %v5343_v4  ;;  %vm6747_vm3 = vmmov %vm6727_vm2 }
 0x1ab   : > { %v5388_v20 = vmul.f32 %v3880_v18, %v5343_v4  ;;  %v2106_v46 = vadd.f32 %v6735_v0, %v1985_v55  ;;  %v1459_v63 = vadd.f32 %v1443_v33, %v6737_v30  ;;  %v1490_v17 = vadd.f32 %v1474_v36, %v6738_v62  ;;  %v6744_v55 = vld [vmem:[#allocation51_spill] sm:$0xff]  ;;  %vm6752_vm5 = vmmov %vm6727_vm2 }
 0x1ac   : > { %v2225_v14 = vadd.f32 %v6736_v23, %v2104_v38  ;;  %v1321_v47 = vsel %vm3710_vm1, %v1089_v48, 0.0  ;;  %v865_v12 = vsel %vm864_vm14, %v3149_v11, %v861_v2  ;;  %v5398_v61 = vmul.f32 %v6626_v6, %v5343_v4  ;;  %vm6750_vm1 = vmmov %vm6733_vm8 }
 0x1ad   : > { %v2227_v59 = vadd.f32 %v5187_v51, %v2106_v46  ;;  %1352 = vst.msk [vmem:[#allocation2 + $0x38] sm:$0xff] %vm6359_vm7, %v1321_v47  ;;  %v870_v52 = vsel %vm867_vm11, %v869_v42, %v865_v12  ;;  %v5415_v11 = vmul.f32 %v3956_v34, %v5343_v4  ;;  %v5419_v51 = vmul.f32 %v6628_v19, %v5343_v4  ;;  %vm6758_vm12 = vmmov %vm6750_vm1 }
 0x1ae   : > { %v5402_v10 = vadd.f32 %v5378_v49, %v2225_v14  ;;  %v1758_v36 = vmul.f32 %v3956_v34, %v5289_v31  ;;  %v1097_v60 = vmul.f32 %v870_v52, %v5111_v53  ;;  %v1461_v3 = vadd.f32 %v6742_v54, %v1412_v39  ;;  %v6754_v54 = vld [vmem:[#allocation82_spill] sm:$0xff]  ;;  %vm6764_vm13 = vmmov %vm6727_vm2 }
 0x1af   : > { %v5427_v57 = vmul.f32 %v3960_v40, %v5343_v4  ;;  %v5430_v28 = vadd.f32 %v5378_v49, %v2227_v59  ;;  %v1492_v37 = vadd.f32 %v6743_v22, %v1459_v63  ;;  %v1612_v38 = vadd.f32 %v6744_v55, %v1490_v17  ;;  %v491_v17 = vpop.f32.mrf.mxu2  ;;  %vm6767_vm0 = vmmov %vm6727_vm2 }
 0x1b0   : > { %v2902_v58 = vmul.f32 -1.442695, %v5402_v10  ;;  %v2122_v15 = vmul.f32 %v4834_v13, %v5289_v31  ;;  %v1329_v53 = vsel %vm5409_vm15, %v1097_v60, 0.0  ;;  %v6745_v48 = vrot.slane %v5204_v43, 1  ;;  %vm6770_vm10 = vmmov %vm6767_vm0 }
 0x1b1   : > { %v6746_v2 = vrot.slane %v5030_v1, 1  ;;  %v6748_v39 = vrot.slane %v5293_v27, 2  ;;  %v6749_v0 = vrot.slane %v5042_v16, 2  ;;  %v2904_v31 = vmul.f32 -1.442695, %v5430_v28  ;;  %1360 = vst.msk [vmem:[#allocation2 + $0x78] sm:$0xff] %vm6359_vm7, %v1329_v53  ;;  %vm6773_vm9 = vmmov %vm6767_vm0 }
 0x1b2   : > { %3150 = vpow2.f32 %v2902_v58  ;;  %v1566_v23 = vrot.slane %v5388_v20, 1  ;;  %v1682_v14 = vrot.slane %v5398_v61, 1  ;;  %v5459_v1 = vmul.f32 %v4834_v13, %v5343_v4  ;;  %v6755_v58 = vld [vmem:[#allocation71_spill] sm:$0xff]  ;;  %vm6775_vm11 = vmmov %vm6750_vm1 }
 0x1b3   : > { %v5444_v42 = vsel %vm6747_vm3, %v6746_v2, %v6745_v48  ;;  %v5451_v46 = vsel %vm6750_vm1, %v6749_v0, %v6748_v39  ;;  %v1811_v30 = vrot.slane %v1758_v36, 1  ;;  %v1798_v63 = vrot.slane %v5415_v11, 1  ;;  %v6759_v0 = vld [vmem:[#allocation72_spill] sm:$0xff] }
 0x1b4   : > { %v1930_v16 = vrot.slane %v5419_v51, 2  ;;  %v2046_v62 = vrot.slane %v5427_v57, 2  ;;  %3152 = vpow2.f32 %v2904_v31  ;;  %v1494_v47 = vadd.f32 %v5086_v24, %v1461_v3  ;;  %v5467_v59 = vld [vmem:[#allocation2 + $0x38] sm:$0xff]  ;;  %v3220_v51 = vld [vmem:[%s6383_s2] ss:$0 sm:$0xff] }
 0x1b5   : > { %v1614_v12 = vadd.f32 %v5013_v35, %v1492_v37  ;;  %v1733_v20 = vadd.f32 %v5020_v7, %v1612_v38  ;;  %v2175_v61 = vrot.slane %v2122_v15, 2  ;;  %v1413_v4 = vmul.f32 %v3948_v25, %v5467_v59  ;;  %v6756_v37 = vld [vmem:[#allocation83_spill] sm:$0xff] }
 0x1b6   : > { %v1444_v52 = vmul.f32 %v6627_v9, %v5467_v59  ;;  %v1475_v33 = vmul.f32 %v3966_v44, %v5467_v59  ;;  %v1514_v45 = vmul.f32 %v3880_v18, %v5467_v59  ;;  %v2162_v24 = vrot.slane %v5459_v1, 2  ;;  %v6799_v1 = vld [vmem:[#allocation105_spill] sm:$0xff] }
 0x1b7   : > { %v6751_v35 = vmov %v6745_v48  ;;  %v1633_v11 = vmul.f32 %v6626_v6, %v5467_v59  ;;  %v5486_v36 = vadd.f32 %v3220_v51, %v491_v17  ;;  %v1462_v22 = vadd.f32 %v6755_v58, %v1413_v4  ;;  %v6763_v51 = vld [vmem:[#allocation68_spill] sm:$0xff] }
 0x1b8   : > { %v1812_v7 = vsel %vm6752_vm5, %v6751_v35, %v1811_v30  ;;  %v3151_v60 = vpop.eup %3150  ;;  %v1460_v3 = vadd.f32 %v1444_v52, %v6754_v54  ;;  %v1491_v55 = vadd.f32 %v1475_v33, %v6756_v37  ;;  %v1567_v38 = vrot.slane %v1514_v45, 1 }
 0x1b9   : > { %6753 = vst [vmem:[#allocation55_spill] sm:$0xff] %v5486_v36  ;;  %v6757_v43 = vmov %v6748_v39  ;;  %v5496_v53 = vadd.f32 1.0, %v3151_v60  ;;  %v1751_v48 = vmul.f32 %v3956_v34, %v5467_v59  ;;  %v1878_v2 = vmul.f32 %v6628_v19, %v5467_v59 }
 0x1ba   : > { %v5494_v15 = vsel %vm6758_vm12, %v6757_v43, %v2175_v61  ;;  %v3153_v39 = vpop.eup %3152  ;;  %v1493_v31 = vadd.f32 %v6759_v0, %v1460_v3  ;;  %v1495_v30 = vadd.f32 %v5222_v26, %v1462_v22  ;;  %v1568_v17 = vsel %vm6727_vm2, %v1566_v23, %v1567_v38  ;;  %v6760_v61 = vld [vmem:[#allocation33_spill] sm:$0xff]  ;;  %vm6788_vm2 = vmmov %vm6750_vm1 }
 0x1bb   : > { %v1683_v4 = vrot.slane %v1633_v11, 1  ;;  %v5505_v27 = vadd.f32 1.0, %v3153_v39  ;;  %3154 = vrcp.f32 %v5496_v53  ;;  %v6761_v52 = vrot.slane %v6760_v61, 1  ;;  %v6765_v39 = vld [vmem:[#allocation34_spill] sm:$0xff]  ;;  %v6769_v61 = vld [vmem:[#allocation101_spill] sm:$0xff] }
 0x1bc   : > { %v5512_v45 = vmul.f32 -1.442695, %v5486_v36  ;;  %v2434_v35 = vand.u32 2147483648, %v5496_v53  ;;  %v1613_v60 = vadd.f32 %v6763_v51, %v1491_v55  ;;  %v1615_v26 = vadd.f32 %v5229_v29, %v1493_v31  ;;  %v6768_v31 = vld [vmem:[#allocation74_spill] sm:$0xff] }
 0x1bd   : > { %v1570_v33 = vsel %vm6762_vm4, %v1567_v38, %v6761_v52  ;;  %v1616_v54 = vadd.f32 %v1568_v17, %v1494_v47  ;;  %3156 = vrcp.f32 %v5505_v27  ;;  %v1799_v23 = vrot.slane %v1751_v48, 1  ;;  %vm6791_vm4 = vmmov %vm6750_vm1 }
 0x1be   : > { %v1931_v11 = vrot.slane %v1878_v2, 2  ;;  %v1997_v3 = vmul.f32 %v3960_v40, %v5467_v59  ;;  %v2432_v58 = vand.u32 2147483647, %v5496_v53  ;;  %v2462_v22 = vand.u32 2147483647, %v5505_v27 }
 0x1bf   : > { %v1617_v37 = vadd.f32 %v1570_v33, %v1495_v30  ;;  %v1684_v38 = vsel %vm6764_vm13, %v1682_v14, %v1683_v4  ;;  %v2435_v43 = vor.u32 1.1754944e-38, %v2434_v35  ;;  %v6766_v55 = vrot.slane %v6765_v39, 1  ;;  %v6771_v33 = vld [vmem:[#allocation35_spill] sm:$0xff] }
 0x1c0   : > { %v1734_v47 = vadd.f32 %v5234_v21, %v1613_v60  ;;  %v1735_v0 = vadd.f32 %v1684_v38, %v1614_v12  ;;  %vm2428_vm8 = vweird.f32 %v5496_v53  ;;  %v2464_v48 = vand.u32 2147483648, %v5505_v27 }
 0x1c1   : > { %v1686_v29 = vsel %vm6767_vm0, %v1683_v4, %v6766_v55  ;;  %v1737_v17 = vadd.f32 %v6768_v31, %v1616_v54  ;;  %v1738_v52 = vadd.f32 %v6769_v61, %v1617_v37  ;;  %v3155_v30 = vpop.eup %3154  ;;  %v1800_v14 = vsel %vm6770_vm10, %v1798_v63, %v1799_v23  ;;  %v6774_v4 = vld [vmem:[#allocation75_spill] sm:$0xff]  ;;  %v6778_v37 = vld [vmem:[#allocation102_spill] sm:$0xff]  ;;  %vm6796_vm10 = vmmov %vm6750_vm1 }
 0x1c2   : > { %v1736_v2 = vadd.f32 %v1686_v29, %v1615_v26  ;;  %v6772_v35 = vrot.slane %v6771_v33, 1  ;;  %v1856_v39 = vadd.f32 %v6774_v4, %v1735_v0  ;;  %v1932_v21 = vsel %vm6775_vm11, %v1930_v16, %v1931_v11  ;;  %v6779_v29 = vld [vmem:[#allocation36_spill] sm:$0xff]  ;;  %v6786_v4 = vld [vmem:[#allocation94_spill] sm:$0xff]  ;;  %vm6824_vm11 = vmmov %vm6750_vm1 }
 0x1c3   : > { %v2424_v12 = vmul.f32 %v3155_v30, %v5496_v53  ;;  %vm2429_vm14 = vweird.f32 %v3155_v30  ;;  %vm5538_vm15 = vcmp.eq.f32.partialorder %v2432_v58, 8.507059e+37  ;;  %vm2458_vm3 = vweird.f32 %v5505_v27  ;;  %v3157_v54 = vpop.eup %3156 }
 0x1c4   : > { %v1802_v51 = vsel %vm6773_vm9, %v1799_v23, %v6772_v35  ;;  %v1854_v26 = vadd.f32 %v1800_v14, %v1733_v20  ;;  %v1857_v38 = vadd.f32 %v6778_v37, %v1736_v2  ;;  %v1858_v23 = vadd.f32 %v5444_v42, %v1737_v17  ;;  %v6783_v20 = vld [vmem:[#allocation54_spill] sm:$0xff]  ;;  %v6784_v2 = vld [vmem:[#allocation69_spill] sm:$0xff]  ;;  %vm2430_vm13 = vmor %vm2428_vm8, %vm2429_vm14 }
 0x1c5   : > { %v1855_v63 = vadd.f32 %v1802_v51, %v1734_v47  ;;  %v1859_v55 = vadd.f32 %v1812_v7, %v1738_v52  ;;  %v6780_v16 = vrot.slane %v6779_v29, 2  ;;  %v2425_v31 = vsub.f32 1.0, %v2424_v12  ;;  %v6785_v42 = vld [vmem:[#allocation93_spill] sm:$0xff]  ;;  %v6787_v37 = vld [vmem:[#allocation78_spill] sm:$0xff]  ;;  %vm6793_vm8 = vmmov %vm6750_vm1 }
 0x1c6   : > { %v2454_v58 = vmul.f32 %v3157_v54, %v5505_v27  ;;  %vm2459_vm5 = vweird.f32 %v3157_v54  ;;  %vm5549_vm12 = vcmp.eq.f32.partialorder %v2462_v22, 8.507059e+37  ;;  %v1976_v47 = vadd.f32 %v6783_v20, %v1854_v26  ;;  %v6794_v20 = vld [vmem:[#allocation38_spill] sm:$0xff]  ;;  %vm6819_vm9 = vmmov %vm6750_vm1 }
 0x1c7   : > { %v1934_v0 = vsel %vm6750_vm1, %v1931_v11, %v6780_v16  ;;  %v1977_v14 = vadd.f32 %v6784_v2, %v1855_v63  ;;  %v1978_v7 = vadd.f32 %v6785_v42, %v1856_v39  ;;  %v1979_v17 = vadd.f32 %v5239_v5, %v1857_v38  ;;  %vm2460_vm0 = vmor %vm2458_vm3, %vm2459_vm5  ;;  %v5591_v42 = vld [vmem:[#allocation2 + $0x78] sm:$0xff] }
 0x1c8   : > { %v1980_v52 = vadd.f32 %v1932_v21, %v1858_v23  ;;  %v2426_v11 = vmul.f32 %v3155_v30, %v2425_v31  ;;  %v2455_v33 = vsub.f32 1.0, %v2454_v58  ;;  %v1981_v35 = vadd.f32 %v1934_v0, %v1859_v55  ;;  %v6789_v21 = vld [vmem:[#allocation37_spill] sm:$0xff]  ;;  %v6792_v55 = vld [vmem:[#allocation104_spill] sm:$0xff] }
 0x1c9   : > { %v2047_v51 = vrot.slane %v1997_v3, 2  ;;  %v2097_v12 = vadd.f32 %v6786_v4, %v1976_v47  ;;  %v2098_v22 = vadd.f32 %v5248_v56, %v1977_v14  ;;  %v2115_v26 = vmul.f32 %v4834_v13, %v5467_v59 }
 0x1ca   : > { %v2101_v29 = vadd.f32 %v6787_v37, %v1980_v52  ;;  %v2427_v63 = vadd.f32 %v3155_v30, %v2426_v11  ;;  %v2456_v39 = vmul.f32 %v3157_v54, %v2455_v33  ;;  %v6790_v38 = vrot.slane %v6789_v21, 2  ;;  %v6805_v21 = vld [vmem:[#allocation80_spill] sm:$0xff] }
 0x1cb   : > { %v2048_v5 = vsel %vm6788_vm2, %v2046_v62, %v2047_v51  ;;  %v2102_v59 = vadd.f32 %v6792_v55, %v1981_v35  ;;  %v2163_v16 = vrot.slane %v2115_v26, 2  ;;  %v2465_v58 = vor.u32 1.1754944e-38, %v2464_v48  ;;  %v6803_v26 = vld [vmem:[#allocation57_spill] sm:$0xff] }
 0x1cc   : > { %v2050_v3 = vsel %vm6791_vm4, %v2047_v51, %v6790_v38  ;;  %v2099_v56 = vadd.f32 %v2048_v5, %v1978_v7  ;;  %v2431_v0 = vsel %vm2430_vm13, %v3155_v30, %v2427_v63  ;;  %v2457_v31 = vadd.f32 %v3157_v54, %v2456_v39  ;;  %v6797_v30 = vld [vmem:[#allocation87_spill] sm:$0xff]  ;;  %v6804_v39 = vld [vmem:[#allocation50_spill] sm:$0xff] }
 0x1cd   : > { %v2100_v23 = vadd.f32 %v2050_v3, %v1979_v17  ;;  %v2222_v57 = vadd.f32 %v5451_v46, %v2101_v29  ;;  %v2436_v62 = vsel %vm5538_vm15, %v2435_v43, %v2431_v0  ;;  %v2164_v53 = vsel %vm6793_vm8, %v2162_v24, %v2163_v16  ;;  %v6808_v0 = vld [vmem:[#allocation114_spill] sm:$0xff] }
 0x1ce   : > { %v6795_v47 = vrot.slane %v6794_v20, 2  ;;  %v2220_v14 = vadd.f32 %v6797_v30, %v2099_v56  ;;  %v2461_v48 = vsel %vm2460_vm0, %v3157_v54, %v2457_v31  ;;  %v5589_v46 = vmul.f32 %v2436_v62, %v5402_v10  ;;  %v6809_v31 = vld [vmem:[#allocation42_spill] sm:$0xff] }
 0x1cf   : > { %v2218_v60 = vadd.f32 %v2164_v53, %v2097_v12  ;;  %v2466_v27 = vsel %vm5549_vm12, %v2465_v58, %v2461_v48  ;;  %v2221_v7 = vadd.f32 %v6799_v1, %v2100_v23  ;;  %v2223_v24 = vadd.f32 %v5494_v15, %v2102_v59  ;;  %v6807_v23 = vld [vmem:[#allocation73_spill] sm:$0xff]  ;;  %v6812_v30 = vld [vmem:[#allocation118_spill] sm:$0xff] }
 0x1d0   : > { %v2166_v2 = vsel %vm6796_vm10, %v2163_v16, %v6795_v47  ;;  %6798 = vst [vmem:[#allocation58_spill] sm:$0xff] %v5589_v46  ;;  %v5598_v17 = vadd.f32 %v5378_v49, %v2220_v14  ;;  %v5601_v52 = vmul.f32 %v2466_v27, %v5430_v28  ;;  %v5615_v15 = vadd.f32 %v5378_v49, %v2222_v57  ;;  %v6810_v57 = vld [vmem:[#allocation85_spill] sm:$0xff] }
 0x1d1   : > { %v2219_v43 = vadd.f32 %v2166_v2, %v2098_v22  ;;  %2581 = vst.msk [vmem:[%s5603_s19 + $0x38] sm:$0xff] %vm6359_vm7, %v5589_v46  ;;  %v5609_v10 = vadd.f32 %v5378_v49, %v2218_v60  ;;  %v5618_v61 = vadd.f32 %v5378_v49, %v2221_v7  ;;  %v5621_v28 = vadd.f32 %v5378_v49, %v2223_v24  ;;  %v6811_v47 = vld [vmem:[#allocation117_spill] sm:$0xff]  ;;  %v6815_v24 = vld [vmem:[#allocation43_spill] sm:$0xff] }
 0x1d2   : > { %6800 = vst [vmem:[#allocation60_spill] sm:$0xff] %v5601_v52  ;;  %v2897_v11 = vmul.f32 -1.442695, %v5598_v17  ;;  %v1449_v33 = vmul.f32 %v6627_v9, %v5591_v42  ;;  %v1480_v4 = vmul.f32 %v3966_v44, %v5591_v42  ;;  %3158 = vpow2.f32 %v5512_v45  ;;  %v6806_v45 = vld [vmem:[#allocation115_spill] sm:$0xff]  ;;  %v6814_v27 = vld [vmem:[#allocation113_spill] sm:$0xff] }
 0x1d3   : > { %v5612_v54 = vadd.f32 %v5378_v49, %v2219_v43  ;;  %2583 = vst.msk [vmem:[%s5603_s19 + $0x48] sm:$0xff] %vm6359_vm7, %v5601_v52  ;;  %v2895_v35 = vmul.f32 -1.442695, %v5609_v10  ;;  %v5636_v12 = vmul.f32 %v6628_v19, %v5241_v32  ;;  %v2898_v22 = vmul.f32 -1.442695, %v5618_v61  ;;  %v5666_v43 = vld [vmem:[#allocation2 + $0xb0] sm:$0xff] }
 0x1d4   : > { %3160 = vpow2.f32 %v2897_v11  ;;  %v2899_v37 = vmul.f32 -1.442695, %v5615_v15  ;;  %v5642_v29 = vmul.f32 %v3960_v40, %v5241_v32  ;;  %v1465_v63 = vadd.f32 %v1449_v33, %v6803_v26 }
 0x1d5   : > { %v2896_v51 = vmul.f32 -1.442695, %v5612_v54  ;;  %6801 = vst [vmem:[#allocation61_spill] sm:$0xff] %v5636_v12  ;;  %3162 = vpow2.f32 %v2895_v35  ;;  %v1496_v5 = vadd.f32 %v1480_v4, %v6804_v39  ;;  %v1469_v38 = vadd.f32 %v6806_v45, %v6805_v21  ;;  %v6817_v35 = vld [vmem:[#allocation49_spill] sm:$0xff]  ;;  %v6822_v39 = vld [vmem:[#allocation86_spill] sm:$0xff] }
 0x1d6   : > { %6802 = vst [vmem:[#allocation92_spill] sm:$0xff] %v5642_v29  ;;  %v2900_v3 = vmul.f32 -1.442695, %v5621_v28  ;;  %v1418_v56 = vmul.f32 %v3948_v25, %v5591_v42  ;;  %v1641_v59 = vmul.f32 %v6626_v6, %v5591_v42  ;;  %v1759_v16 = vmul.f32 %v3956_v34, %v5591_v42 }
 0x1d7   : > { %3164 = vpow2.f32 %v2896_v51  ;;  %v1618_v55 = vadd.f32 %v6807_v23, %v1496_v5  ;;  %v5658_v58 = vadd.f32 %v6809_v31, %v6808_v0  ;;  %v1498_v62 = vadd.f32 %v6810_v57, %v1465_v63  ;;  %v6825_v0 = vld [vmem:[#allocation112_spill] sm:$0xff] }
 0x1d8   : > { %3166 = vpow2.f32 %v2898_v22  ;;  %v1522_v53 = vmul.f32 %v3880_v18, %v5591_v42  ;;  %v3159_v20 = vpop.eup %3158  ;;  %v5670_v11 = vadd.f32 %v6815_v24, %v1469_v38  ;;  %v6816_v33 = vrot.slane %v5253_v8, 2  ;;  %v6820_v22 = vld [vmem:[#allocation81_spill] sm:$0xff] }
 0x1d9   : > { %3168 = vpow2.f32 %v2899_v37  ;;  %v1739_v1 = vadd.f32 %v6814_v27, %v1618_v55  ;;  %v6818_v51 = vrot.slane %v6817_v35, 2  ;;  %v1467_v37 = vadd.f32 %v6820_v22, %v1418_v56  ;;  %v6827_v24 = vld [vmem:[#allocation45_spill] sm:$0xff]  ;;  %v6830_v35 = vld [vmem:[#allocation46_spill] sm:$0xff] }
 0x1da   : > { %v3161_v7 = vpop.eup %3160  ;;  %3170 = vpow2.f32 %v2900_v3  ;;  %v6821_v63 = vrot.slane %v5283_v41, 2  ;;  %v6823_v5 = vrot.slane %v6822_v39, 2  ;;  %v1697_v38 = vrot.slane %v1641_v59, 1 }
 0x1db   : > { %v5677_v4 = vsel %vm6819_vm9, %v6818_v51, %v6816_v33  ;;  %v3163_v26 = vpop.eup %3162  ;;  %v5687_v45 = vadd.f32 1.0, %v3161_v7  ;;  %v1813_v8 = vrot.slane %v1759_v16, 1  ;;  %v5691_v55 = vmul.f32 %v6627_v9, %v5666_v43  ;;  %v6826_v9 = vld [vmem:[#allocation116_spill] sm:$0xff] }
 0x1dc   : > { %v5685_v21 = vsel %vm6824_vm11, %v6823_v5, %v6821_v63  ;;  %v5693_v3 = vadd.f32 1.0, %v3163_v26  ;;  %v1581_v56 = vrot.slane %v1522_v53, 1  ;;  %v1620_v31 = vadd.f32 %v6825_v0, %v1498_v62  ;;  %v6833_v63 = vld [vmem:[#allocation25_spill] sm:$0xff] }
 0x1dd   : > { %v3165_v23 = vpop.eup %3164  ;;  %v5698_v57 = vmul.f32 %v3966_v44, %v5666_v43  ;;  %3172 = vrcp.f32 %v5687_v45  ;;  %v5703_v59 = vadd.f32 1.0, %v3159_v20  ;;  %v5709_v53 = vadd.f32 %v6826_v9, %v1467_v37 }
 0x1de   : > { %v3167_v41 = vpop.eup %3166  ;;  %v5700_v27 = vadd.f32 1.0, %v3165_v23  ;;  %3174 = vrcp.f32 %v5693_v3  ;;  %v5713_v62 = vmul.f32 %v3960_v40, %v5591_v42  ;;  %v6828_v33 = vrot.slane %v6827_v24, 1 }
 0x1df   : > { %v3169_v16 = vpop.eup %3168  ;;  %v5705_v7 = vadd.f32 1.0, %v3167_v41  ;;  %vm6829_vm14 = vcmask 1046528   ;;  %v6831_v51 = vrot.slane %v6830_v35, 1  ;;  %v2329_v37 = vand.u32 2147483648, %v5693_v3 }
 0x1e0   : > { %v5715_v44 = vadd.f32 1.0, %v3169_v16  ;;  %3176 = vrcp.f32 %v5700_v27  ;;  %v1699_v20 = vsel %vm6829_vm14, %v1697_v38, %v6828_v33  ;;  %vm6832_vm15 = vmmov %vm6829_vm14  ;;  %v3171_v26 = vpop.eup %3170  ;;  %v6834_v39 = vrot.slane %v6833_v63, 1 }
 0x1e1   : > { %v1815_v22 = vsel %vm6832_vm15, %v1813_v8, %v6831_v51  ;;  %vm6835_vm3 = vmmov %vm6829_vm14  ;;  %v1741_v23 = vadd.f32 %v1699_v20, %v1620_v31  ;;  %v2327_v41 = vand.u32 2147483647, %v5693_v3  ;;  %v2344_v16 = vand.u32 2147483648, %v5700_v27 }
 0x1e2   : > { %v5728_v5 = vsel %vm6835_vm3, %v1581_v56, %v6834_v39  ;;  %v5730_v0 = vadd.f32 %v1815_v22, %v1739_v1  ;;  %v2357_v38 = vand.u32 2147483647, %v5687_v45  ;;  %3178 = vrcp.f32 %v5705_v7 }
 0x1e3   : > { %v2342_v8 = vand.u32 2147483647, %v5700_v27  ;;  %v2359_v9 = vand.u32 2147483648, %v5687_v45  ;;  %v5741_v56 = vmul.f32 %v4834_v13, %v5591_v42  ;;  %v3173_v1 = vpop.eup %3172  ;;  %v5743_v31 = vadd.f32 1.0, %v3171_v26 }
 0x1e4   : > { %vm2323_vm1 = vweird.f32 %v5693_v3  ;;  %vm2353_vm5 = vweird.f32 %v5687_v45  ;;  %3180 = vrcp.f32 %v5715_v44  ;;  %v3175_v33 = vpop.eup %3174  ;;  %v2330_v20 = vor.u32 1.1754944e-38, %v2329_v37 }
 0x1e5   : > { %vm2338_vm12 = vweird.f32 %v5700_v27  ;;  %v2349_v35 = vmul.f32 %v3173_v1, %v5687_v45  ;;  %v2372_v51 = vand.u32 2147483647, %v5705_v7  ;;  %v2374_v13 = vand.u32 2147483648, %v5705_v7  ;;  %v6847_v45 = vld [vmem:[#allocation77_spill] sm:$0xff] }
 0x1e6   : > { %v3177_v22 = vpop.eup %3176  ;;  %v2319_v26 = vmul.f32 %v3175_v33, %v5693_v3  ;;  %vm5753_vm2 = vcmp.eq.f32.partialorder %v2327_v41, 8.507059e+37  ;;  %v2345_v39 = vor.u32 1.1754944e-38, %v2344_v16  ;;  %vm5757_vm4 = vcmp.eq.f32.partialorder %v2357_v38, 8.507059e+37 }
 0x1e7   : > { %v2389_v37 = vand.u32 2147483648, %v5715_v44  ;;  %v2334_v14 = vmul.f32 %v3177_v22, %v5700_v27  ;;  %vm5763_vm13 = vcmp.eq.f32.partialorder %v2342_v8, 8.507059e+37  ;;  %v2350_v24 = vsub.f32 1.0, %v2349_v35 }
 0x1e8   : > { %v2360_v52 = vor.u32 1.1754944e-38, %v2359_v9  ;;  %v2387_v41 = vand.u32 2147483647, %v5715_v44  ;;  %v3179_v46 = vpop.eup %3178  ;;  %v2320_v16 = vsub.f32 1.0, %v2319_v26  ;;  %vm2324_vm8 = vweird.f32 %v3175_v33  ;;  %v6844_v26 = vld [vmem:[#allocation30_spill] sm:$0xff] }
 0x1e9   : > { %vm2354_vm10 = vweird.f32 %v3173_v1  ;;  %3182 = vrcp.f32 %v5743_v31  ;;  %v2335_v38 = vsub.f32 1.0, %v2334_v14  ;;  %v2351_v36 = vmul.f32 %v3173_v1, %v2350_v24  ;;  %vm2325_vm0 = vmor %vm2323_vm1, %vm2324_vm8 }
 0x1ea   : > { %v2364_v50 = vmul.f32 %v3179_v46, %v5705_v7  ;;  %vm5771_vm9 = vcmp.eq.f32.partialorder %v2372_v51, 8.507059e+37  ;;  %v2375_v35 = vor.u32 1.1754944e-38, %v2374_v13  ;;  %v3181_v9 = vpop.eup %3180  ;;  %v2321_v25 = vmul.f32 %v3175_v33, %v2320_v16  ;;  %vm2355_vm3 = vmor %vm2353_vm5, %vm2354_vm10 }
 0x1eb   : > { %vm2339_vm14 = vweird.f32 %v3177_v22  ;;  %v2390_v29 = vor.u32 1.1754944e-38, %v2389_v37  ;;  %v1862_v32 = vadd.f32 %v6844_v26, %v1741_v23  ;;  %v2336_v12 = vmul.f32 %v3177_v22, %v2335_v38 }
 0x1ec   : > { %v2352_v48 = vadd.f32 %v3173_v1, %v2351_v36  ;;  %v2365_v40 = vsub.f32 1.0, %v2364_v50  ;;  %v2379_v14 = vmul.f32 %v3181_v9, %v5715_v44  ;;  %vm5778_vm15 = vcmp.eq.f32.partialorder %v2387_v41, 8.507059e+37  ;;  %vm2340_vm6 = vmor %vm2338_vm12, %vm2339_vm14 }
 0x1ed   : > { %v2322_v51 = vadd.f32 %v3175_v33, %v2321_v25  ;;  %vm2369_vm7 = vweird.f32 %v3179_v46  ;;  %vm2384_vm11 = vweird.f32 %v3181_v9  ;;  %v2402_v13 = vand.u32 2147483647, %v5743_v31 }
 0x1ee   : > { %v2337_v50 = vadd.f32 %v3177_v22, %v2336_v12  ;;  %v2356_v36 = vsel %vm2355_vm3, %v3173_v1, %v2352_v48  ;;  %v2366_v23 = vmul.f32 %v3179_v46, %v2365_v40  ;;  %v2380_v37 = vsub.f32 1.0, %v2379_v14 }
 0x1ef   : > { %v3183_v41 = vpop.eup %3182  ;;  %v2326_v16 = vsel %vm2325_vm0, %v3175_v33, %v2322_v51  ;;  %v2361_v25 = vsel %vm5757_vm4, %v2360_v52, %v2356_v36  ;;  %v1982_v38 = vadd.f32 %v6847_v45, %v5730_v0  ;;  %v1984_v26 = vadd.f32 %v5677_v4, %v1862_v32 }
 0x1f0   : > { %v2331_v12 = vsel %vm5753_vm2, %v2330_v20, %v2326_v16  ;;  %v2341_v40 = vsel %vm2340_vm6, %v3177_v22, %v2337_v50  ;;  %v2367_v48 = vadd.f32 %v3179_v46, %v2366_v23  ;;  %v2381_v3 = vmul.f32 %v3181_v9, %v2380_v37  ;;  %v6862_v50 = vld [vmem:[#allocation106_spill] sm:$0xff]  ;;  %v6864_v37 = vld [vmem:[#allocation76_spill] sm:$0xff] }
 0x1f1   : > { %v2346_v1 = vsel %vm5763_vm13, %v2345_v39, %v2341_v40  ;;  %vm6848_vm1 = vweird.f32 %v5705_v7  ;;  %v2394_v52 = vmul.f32 %v3183_v41, %v5743_v31  ;;  %v2404_v60 = vand.u32 2147483648, %v5743_v31 }
 0x1f2   : > { %vm2370_vm5 = vmor %vm6848_vm1, %vm2369_vm7  ;;  %v5807_v32 = vmul.f32 %v2331_v12, %v5609_v10  ;;  %v2382_v27 = vadd.f32 %v3181_v9, %v2381_v3  ;;  %v5810_v0 = vmul.f32 %v2346_v1, %v5612_v54  ;;  %v5813_v2 = vmul.f32 %v2361_v25, %v5598_v17 }
 0x1f3   : > { %v2371_v4 = vsel %vm2370_vm5, %v3179_v46, %v2367_v48  ;;  %vm6849_vm7 = vweird.f32 %v5715_v44  ;;  %v2395_v33 = vsub.f32 1.0, %v2394_v52  ;;  %vm6850_vm12 = vcmask 523264   ;;  %v6851_v46 = vld [vmem:[#allocation47_spill] sm:$0xff]  ;;  %v6869_v52 = vld [vmem:[#allocation96_spill] sm:$0xff] }
 0x1f4   : > { %v2376_v7 = vsel %vm5771_vm9, %v2375_v35, %v2371_v4  ;;  %vm2385_vm6 = vmor %vm6849_vm7, %vm2384_vm11  ;;  %2574 = vst.msk [vmem:[%s5603_s19] sm:$0xff] %vm6850_vm12, %v5807_v32  ;;  %v6852_v10 = vrot.slane %v6851_v46, 2  ;;  %v6853_v54 = vrot.slane %v5713_v62, 2  ;;  %vm6854_vm2 = vcmask 1045504   ;;  %v6858_v62 = vld [vmem:[#allocation48_spill] sm:$0xff]  ;;  %v6867_v48 = vld [vmem:[#allocation27_spill] sm:$0xff] }
 0x1f5   : > { %v2103_v17 = vadd.f32 %v5685_v21, %v1982_v38  ;;  %v2386_v22 = vsel %vm2385_vm6, %v3181_v9, %v2382_v27  ;;  %v5830_v63 = vmul.f32 %v2376_v7, %v5618_v61  ;;  %vm6855_vm4 = vmmov %vm6850_vm12  ;;  %v2177_v39 = vrot.slane %v5741_v56, 2  ;;  %v6861_v9 = vld [vmem:[#allocation84_spill] sm:$0xff]  ;;  %v6866_v38 = vld [vmem:[#allocation107_spill] sm:$0xff] }
 0x1f6   : > { %v2063_v20 = vsel %vm6854_vm2, %v6853_v54, %v6852_v10  ;;  %2575 = vst.msk [vmem:[%s5603_s19 + $0x8] sm:$0xff] %vm6855_vm4, %v5810_v0  ;;  %v2391_v8 = vsel %vm5778_vm15, %v2390_v29, %v2386_v22  ;;  %v2396_v35 = vmul.f32 %v3183_v41, %v2395_v33  ;;  %vm2399_vm13 = vweird.f32 %v3183_v41  ;;  %vm6856_vm0 = vmmov %vm6855_vm4  ;;  %v6870_v4 = vld [vmem:[#allocation109_spill] sm:$0xff]  ;;  %v6874_v22 = vld [vmem:[#allocation108_spill] sm:$0xff] }
 0x1f7   : > { %v2105_v44 = vadd.f32 %v2063_v20, %v1984_v26  ;;  %2576 = vst.msk [vmem:[%s5603_s19 + $0x10] sm:$0xff] %vm6856_vm0, %v5813_v2  ;;  %3184 = vrcp.f32 %v5703_v59  ;;  %v5843_v61 = vmul.f32 %v2391_v8, %v5615_v15  ;;  %vm6857_vm8 = vmmov %vm6856_vm0  ;;  %v5850_v21 = vmul.f32 %v6628_v19, %v5591_v42  ;;  %v6873_v10 = vld [vmem:[#allocation97_spill] sm:$0xff] }
 0x1f8   : > { %2577 = vst.msk [vmem:[%s5603_s19 + $0x18] sm:$0xff] %vm6857_vm8, %v5830_v63  ;;  %v6859_v29 = vrot.slane %v6858_v62, 2  ;;  %vm6860_vm10 = vmmov %vm6854_vm2  ;;  %v2397_v24 = vadd.f32 %v3183_v41, %v2396_v35  ;;  %vm2398_vm9 = vweird.f32 %v5743_v31  ;;  %v1470_v15 = vadd.f32 %v5691_v55, %v6862_v50  ;;  %v6865_v55 = vld [vmem:[#allocation63_spill] sm:$0xff] }
 0x1f9   : > { %v2226_v14 = vadd.f32 %v6861_v9, %v2105_v44  ;;  %vm2400_vm11 = vmor %vm2398_vm9, %vm2399_vm13  ;;  %v2405_v36 = vor.u32 1.1754944e-38, %v2404_v60  ;;  %v1622_v42 = vadd.f32 %v5728_v5, %v5709_v53  ;;  %v1501_v16 = vadd.f32 %v5698_v57, %v6864_v37 }
 0x1fa   : > { %v2179_v56 = vsel %vm6860_vm10, %v2177_v39, %v6859_v29  ;;  %vm6863_vm14 = vmmov %vm6856_vm0  ;;  %v2401_v25 = vsel %vm2400_vm11, %v3183_v41, %v2397_v24  ;;  %vm2403_vm15 = vcmp.eq.f32.partialorder %v2402_v13, 8.507059e+37  ;;  %v1503_v45 = vadd.f32 %v6865_v55, %v1470_v15  ;;  %v6882_v55 = vld [vmem:[#allocation61_spill] sm:$0xff] }
 0x1fb   : > { %v2224_v51 = vadd.f32 %v2179_v56, %v2103_v17  ;;  %2578 = vst.msk [vmem:[%s5603_s19 + $0x20] sm:$0xff] %vm6863_vm14, %v5843_v61  ;;  %v5865_v23 = vadd.f32 %v5378_v49, %v2226_v14  ;;  %v1504_v26 = vadd.f32 %v6866_v38, %v5658_v58  ;;  %v2406_v12 = vsel %vm2403_vm15, %v2405_v36, %v2401_v25  ;;  %vm6868_vm1 = vmmov %vm6856_vm0  ;;  %v6878_v14 = vld [vmem:[#allocation31_spill] sm:$0xff]  ;;  %v6883_v38 = vld [vmem:[#allocation41_spill] sm:$0xff] }
 0x1fc   : > { %v5878_v5 = vmul.f32 %v3880_v18, %v5666_v43  ;;  %v5881_v57 = vmul.f32 %v2406_v12, %v5621_v28  ;;  %v1945_v13 = vrot.slane %v5850_v21, 2  ;;  %v1623_v3 = vadd.f32 %v6867_v48, %v1501_v16  ;;  %v6879_v36 = vld [vmem:[#allocation119_spill] sm:$0xff]  ;;  %vm6890_vm4 = vmmov %vm6860_vm10 }
 0x1fd   : > { %v5870_v31 = vadd.f32 %v5378_v49, %v2224_v51  ;;  %v2903_v53 = vmul.f32 -1.442695, %v5865_v23  ;;  %v3185_v40 = vpop.eup %3184  ;;  %vm982_vm3 = vweird.f32 %v5703_v59  ;;  %v5893_v28 = vadd.f32 %v6869_v52, %v1503_v45  ;;  %vm6900_vm9 = vmmov %vm6890_vm4 }
 0x1fe   : > { %v978_v58 = vmul.f32 %v3185_v40, %v5703_v59  ;;  %v1592_v1 = vrot.slane %v5878_v5, 1  ;;  %2579 = vst.msk [vmem:[%s5603_s19 + $0x28] sm:$0xff] %vm6868_vm1, %v5881_v57  ;;  %v5897_v60 = vmul.f32 %v6626_v6, %v5666_v43  ;;  %v1743_v27 = vadd.f32 %v6870_v4, %v1622_v42  ;;  %vm6902_vm11 = vmmov %vm6890_vm4 }
 0x1ff   : > { %v2901_v41 = vmul.f32 -1.442695, %v5870_v31  ;;  %3186 = vpow2.f32 %v2903_v53  ;;  %v6871_v33 = vrot.slane %v6811_v47, 1  ;;  %vm6872_vm5 = vcmask 1046528   ;;  %vm6904_vm14 = vmmov %vm6890_vm4 }
 0x200   : > { %v979_v7 = vsub.f32 1.0, %v978_v58  ;;  %v5906_v54 = vadd.f32 %v6873_v10, %v1623_v3  ;;  %v5910_v20 = vmul.f32 %v3956_v34, %v5666_v43  ;;  %v986_v17 = vand.u32 2147483647, %v5703_v59  ;;  %vm6876_vm6 = vmmov %vm6872_vm5  ;;  %v6886_v58 = vld [vmem:[#allocation65_spill] sm:$0xff]  ;;  %v1404_v10 = vld [vmem:[#allocation2 + $0xe8] sm:$0xff] }
 0x201   : > { %3188 = vpow2.f32 %v2901_v41  ;;  %v1593_v46 = vsel %vm6872_vm5, %v6871_v33, %v1592_v1  ;;  %v1624_v44 = vadd.f32 %v6874_v22, %v5670_v11  ;;  %v1708_v8 = vrot.slane %v5897_v60, 1  ;;  %v6877_v11 = vld [vmem:[#allocation64_spill] sm:$0xff]  ;;  %vm6881_vm12 = vmmov %vm6872_vm5  ;;  %v6887_v33 = vld [vmem:[#allocation70_spill] sm:$0xff] }
 0x202   : > { %v1626_v39 = vadd.f32 %v1593_v46, %v1504_v26  ;;  %v980_v35 = vmul.f32 %v3185_v40, %v979_v7  ;;  %vm983_vm7 = vweird.f32 %v3185_v40  ;;  %v1824_v47 = vrot.slane %v5910_v20, 1  ;;  %v6888_v22 = vld [vmem:[#allocation26_spill] sm:$0xff]  ;;  %vm6905_vm15 = vmmov %vm6868_vm1 }
 0x203   : > { %v5919_v21 = vmul.f32 %v6628_v19, %v5666_v43  ;;  %v988_v62 = vand.u32 2147483648, %v5703_v59  ;;  %v6875_v29 = vrot.slane %v6812_v30, 1  ;;  %v5930_v24 = vmul.f32 %v6878_v14, %v5666_v43  ;;  %v5940_v30 = vld [vmem:[%s6420_s3 + $0x8] ss:$0 sm:$0xff]  ;;  %vm5954_vm2 = vmor %vm982_vm3, %vm983_vm7 }
 0x204   : > { %v1747_v9 = vadd.f32 %v6877_v11, %v1626_v39  ;;  %v981_v50 = vadd.f32 %v3185_v40, %v980_v35  ;;  %v6880_v42 = vrot.slane %v6879_v36, 1  ;;  %v5944_v16 = vmul.f32 %v5940_v30, %v5666_v43  ;;  %v6891_v39 = vld [vmem:[#allocation92_spill] sm:$0xff]  ;;  %v6893_v11 = vld [vmem:[#allocation19_spill] sm:$0xff] }
 0x205   : > { %v1709_v56 = vsel %vm6876_vm6, %v6875_v29, %v1708_v8  ;;  %v3187_v51 = vpop.eup %3186  ;;  %v1955_v45 = vrot.slane %v6882_v55, 2  ;;  %v2129_v26 = vmul.f32 %v5940_v30, %v6883_v38  ;;  %v1956_v4 = vrot.slane %v5919_v21, 2  ;;  %v6892_v29 = vld [vmem:[#allocation29_spill] sm:$0xff]  ;;  %v6903_v38 = vld [vmem:[#allocation24_spill] sm:$0xff] }
 0x206   : > { %v1745_v15 = vadd.f32 %v1709_v56, %v1624_v44  ;;  %v1825_v37 = vsel %vm6881_vm12, %v6880_v42, %v1824_v47  ;;  %v5949_v12 = vadd.f32 1.0, %v3187_v51  ;;  %v985_v3 = vsel %vm5954_vm2, %v3185_v40, %v981_v50  ;;  %v6901_v42 = vld [vmem:[#allocation32_spill] sm:$0xff] }
 0x207   : > { %v3189_v25 = vpop.eup %3188  ;;  %v1864_v41 = vadd.f32 %v1825_v37, %v1743_v27  ;;  %v989_v7 = vor.u32 1.1754944e-38, %v988_v62  ;;  %v1868_v46 = vadd.f32 %v6887_v33, %v1747_v9  ;;  %v2072_v59 = vrot.slane %v5930_v24, 2  ;;  %v6895_v9 = vld [vmem:[#allocation103_spill] sm:$0xff] }
 0x208   : > { %v5958_v48 = vadd.f32 1.0, %v3189_v25  ;;  %v1866_v52 = vadd.f32 %v6886_v58, %v1745_v15  ;;  %3190 = vrcp.f32 %v5949_v12  ;;  %v6889_v44 = vrot.slane %v6888_v22, 2  ;;  %v6899_v15 = vld [vmem:[#allocation55_spill] sm:$0xff] }
 0x209   : > { %vm987_vm13 = vcmp.eq.f32.partialorder %v986_v17, 8.507059e+37  ;;  %v2188_v40 = vrot.slane %v5944_v16, 2  ;;  %v2071_v35 = vrot.slane %v6891_v39, 2  ;;  %v1423_v56 = vmul.f32 %v6892_v29, %v5666_v43 }
 0x20a   : > { %v1947_v27 = vsel %vm6890_vm4, %v1945_v13, %v6889_v44  ;;  %3192 = vrcp.f32 %v5958_v48  ;;  %v990_v62 = vsel %vm987_vm13, %v989_v7, %v985_v3  ;;  %vm6894_vm0 = vcmp.lt.s32.totalorder %v6893_v11, 17  ;;  %v6906_v7 = vld [vmem:[#allocation62_spill] sm:$0xff] }
 0x20b   : > { %vm6896_vm8 = vnez %v6895_v9  ;;  %v1986_v13 = vadd.f32 %v1947_v27, %v1864_v41  ;;  %v2187_v50 = vrot.slane %v2129_v26, 2  ;;  %v1105_v17 = vmul.f32 %v990_v62, %v6899_v15  ;;  %v6909_v9 = vld [vmem:[#allocation40_spill] sm:$0xff] }
 0x20c   : > { %vm5979_vm10 = vmand %vm6896_vm8, %vm6894_vm0  ;;  %v1957_v36 = vsel %vm6900_vm9, %v1955_v45, %v1956_v4  ;;  %v1988_v37 = vadd.f32 %v6901_v42, %v1866_v52  ;;  %v5989_v43 = vmul.f32 %v3956_v34, %v1404_v10  ;;  %v2073_v55 = vsel %vm6902_vm11, %v2071_v35, %v2072_v59  ;;  %v6908_v35 = vld [vmem:[#allocation67_spill] sm:$0xff] }
 0x20d   : > { %v1990_v25 = vadd.f32 %v1957_v36, %v1868_v46  ;;  %v2107_v53 = vadd.f32 %v6903_v38, %v1986_v13  ;;  %v5996_v26 = vmul.f32 %v5940_v30, %v1404_v10  ;;  %v1337_v41 = vsel %vm5979_vm10, %v1105_v17, 0.0  ;;  %v6907_v46 = vld [vmem:[#allocation66_spill] sm:$0xff]  ;;  %vm6917_vm8 = vmmov %vm6905_vm15 }
 0x20e   : > { %v2109_v3 = vadd.f32 %v2073_v55, %v1988_v37  ;;  %v2189_v45 = vsel %vm6904_vm14, %v2187_v50, %v2188_v40  ;;  %v3191_v58 = vpop.eup %3190  ;;  %v2447_v52 = vand.u32 2147483647, %v5949_v12  ;;  %1368 = vst.msk [vmem:[#allocation2 + $0xb8] sm:$0xff] %vm6905_vm15, %v1337_v41  ;;  %v1472_v33 = vadd.f32 %v6906_v7, %v1423_v56  ;;  %vm6919_vm9 = vmmov %vm6917_vm8 }
 0x20f   : > { %v2111_v22 = vadd.f32 %v6907_v46, %v1990_v25  ;;  %v2228_v44 = vadd.f32 %v2189_v45, %v2107_v53  ;;  %v2439_v27 = vmul.f32 %v3191_v58, %v5949_v12  ;;  %vm2443_vm3 = vweird.f32 %v5949_v12  ;;  %vm6929_vm15 = vmmov %vm6904_vm14 }
 0x210   : > { %v3193_v10 = vpop.eup %3192  ;;  %v2449_v39 = vand.u32 2147483648, %v5949_v12  ;;  %v2230_v29 = vadd.f32 %v6908_v35, %v2109_v3  ;;  %v2417_v11 = vand.u32 2147483647, %v5958_v48  ;;  %vm2413_vm1 = vweird.f32 %v5958_v48 }
 0x211   : > { %v2409_v62 = vmul.f32 %v3193_v10, %v5958_v48  ;;  %v2232_v51 = vadd.f32 %v6909_v9, %v2111_v22  ;;  %v6015_v56 = vadd.f32 %v5378_v49, %v2228_v44  ;;  %v2419_v13 = vand.u32 2147483648, %v5958_v48  ;;  %v6914_v48 = vld [vmem:[#allocation21_spill] sm:$0xff] }
 0x212   : > { %v2440_v50 = vsub.f32 1.0, %v2439_v27  ;;  %v6020_v15 = vadd.f32 %v5378_v49, %v2230_v29  ;;  %vm6022_vm5 = vcmp.eq.f32.partialorder %v2447_v52, 8.507059e+37  ;;  %vm2444_vm7 = vweird.f32 %v3191_v58 }
 0x213   : > { %v2410_v17 = vsub.f32 1.0, %v2409_v62  ;;  %v6027_v42 = vadd.f32 %v5378_v49, %v2232_v51  ;;  %v2905_v37 = vmul.f32 -1.442695, %v6015_v56  ;;  %v2450_v55 = vor.u32 1.1754944e-38, %v2449_v39  ;;  %vm2445_vm2 = vmor %vm2443_vm3, %vm2444_vm7 }
 0x214   : > { %v2441_v25 = vmul.f32 %v3191_v58, %v2440_v50  ;;  %v2907_v38 = vmul.f32 -1.442695, %v6020_v15  ;;  %vm2414_vm6 = vweird.f32 %v3193_v10  ;;  %vm6031_vm12 = vcmp.eq.f32.partialorder %v2417_v11, 8.507059e+37  ;;  %vm6931_vm3 = vmmov %vm6904_vm14 }
 0x215   : > { %v2411_v53 = vmul.f32 %v3193_v10, %v2410_v17  ;;  %3194 = vpow2.f32 %v2905_v37  ;;  %v2420_v3 = vor.u32 1.1754944e-38, %v2419_v13  ;;  %v1398_v52 = vld [vmem:[#allocation2 + $0xb8] sm:$0xff]  ;;  %v2909_v49 = vmul.f32 -1.442695, %v6027_v42  ;;  %vm2415_vm4 = vmor %vm2413_vm1, %vm2414_vm6  ;;  %v6921_v17 = vld [vmem:[#allocation91_spill] sm:$0xff] }
 0x216   : > { %v2442_v45 = vadd.f32 %v3191_v58, %v2441_v25  ;;  %3196 = vpow2.f32 %v2907_v38  ;;  %v1530_v46 = vmul.f32 %v3880_v18, %v1398_v52  ;;  %v1649_v22 = vmul.f32 %v6626_v6, %v1398_v52  ;;  %v6924_v38 = vld [vmem:[#allocation110_spill] sm:$0xff]  ;;  %vm6934_vm1 = vmmov %vm6931_vm3 }
 0x217   : > { %v2412_v7 = vadd.f32 %v3193_v10, %v2411_v53  ;;  %v1767_v44 = vmul.f32 %v3956_v34, %v1398_v52  ;;  %v1894_v39 = vmul.f32 %v6628_v19, %v1398_v52  ;;  %v2013_v35 = vmul.f32 %v6878_v14, %v1398_v52  ;;  %vm6940_vm7 = vmmov %vm6934_vm1 }
 0x218   : > { %v2446_v27 = vsel %vm2445_vm2, %v3191_v58, %v2442_v45  ;;  %v2131_v29 = vmul.f32 %v5940_v30, %v1398_v52  ;;  %v1594_v18 = vrot.slane %v1530_v46, 1  ;;  %v1710_v11 = vrot.slane %v1649_v22, 1 }
 0x219   : > { %v2416_v62 = vsel %vm2415_vm4, %v3193_v10, %v2412_v7  ;;  %v2451_v12 = vsel %vm6022_vm5, %v2450_v55, %v2446_v27  ;;  %v1505_v19 = vadd.f32 %v6914_v48, %v1472_v33  ;;  %v1826_v58 = vrot.slane %v1767_v44, 1  ;;  %v6923_v55 = vld [vmem:[#allocation90_spill] sm:$0xff]  ;;  %v6930_v44 = vld [vmem:[#allocation99_spill] sm:$0xff]  ;;  %vm6937_vm5 = vmmov %vm6934_vm1 }
 0x21a   : > { %v2421_v34 = vsel %vm6031_vm12, %v2420_v3, %v2416_v62  ;;  %v6051_v6 = vmul.f32 %v2451_v12, %v5865_v23  ;;  %v1836_v9 = vrot.slane %v5989_v43, 1  ;;  %vm6915_vm13 = vcmask 1046528   ;;  %v6927_v3 = vld [vmem:[#allocation28_spill] sm:$0xff] }
 0x21b   : > { %v3195_v14 = vpop.eup %3194  ;;  %v6056_v30 = vmul.f32 %v2421_v34, %v5870_v31  ;;  %v1595_v10 = vsel %vm6915_vm13, %v1592_v1, %v1594_v18  ;;  %vm6916_vm0 = vmmov %vm6915_vm13  ;;  %v1958_v43 = vrot.slane %v1894_v39, 2  ;;  %v2074_v1 = vrot.slane %v2013_v35, 2  ;;  %v6932_v62 = vld [vmem:[#allocation56_spill] sm:$0xff] }
 0x21c   : > { %v1711_v51 = vsel %vm6916_vm0, %v1708_v8, %v1710_v11  ;;  %v3197_v13 = vpop.eup %3196  ;;  %2582 = vst.msk [vmem:[%s5603_s19 + $0x40] sm:$0xff] %vm6917_vm8, %v6051_v6  ;;  %v1627_v23 = vadd.f32 %v1595_v10, %v1505_v19  ;;  %vm6918_vm10 = vmmov %vm6916_vm0  ;;  %v2190_v60 = vrot.slane %v2131_v29, 2  ;;  %3198 = vpow2.f32 %v2909_v49  ;;  %v6920_v8 = vld [vmem:[#allocation88_spill] sm:$0xff]  ;;  %v6928_v49 = vld [vmem:[#allocation98_spill] sm:$0xff] }
 0x21d   : > { %v1746_v33 = vadd.f32 %v1711_v51, %v5893_v28  ;;  %v1827_v31 = vsel %vm6918_vm10, %v1824_v47, %v1826_v58  ;;  %2580 = vst.msk [vmem:[%s5603_s19 + $0x30] sm:$0xff] %vm6919_vm9, %v6056_v30  ;;  %v2312_v37 = vadd.f32 1.0, %v3195_v14  ;;  %v6077_v25 = vadd.f32 1.0, %v3197_v13  ;;  %v6922_v28 = vld [vmem:[#allocation89_spill] sm:$0xff]  ;;  %vm6926_vm11 = vmmov %vm6916_vm0  ;;  %v6938_v19 = vld [vmem:[#allocation111_spill] sm:$0xff] }
 0x21e   : > { %v1865_v5 = vadd.f32 %v1827_v31, %v5906_v54  ;;  %v1748_v50 = vadd.f32 %v6920_v8, %v1627_v23  ;;  %v2079_v20 = vrot.slane %v6922_v28, 2  ;;  %v2195_v47 = vrot.slane %v6923_v55, 2 }
 0x21f   : > { %v1867_v36 = vadd.f32 %v6921_v17, %v1746_v33  ;;  %v6925_v53 = vrot.slane %v6924_v38, 1  ;;  %v2200_v45 = vrot.slane %v5996_v26, 2  ;;  %3200 = vrcp.f32 %v2312_v37 }
 0x220   : > { %v1987_v54 = vadd.f32 %v6927_v3, %v1865_v5  ;;  %v1959_v46 = vsel %vm6904_vm14, %v1956_v4, %v1958_v43  ;;  %v2075_v22 = vsel %vm6929_vm15, %v2072_v59, %v2074_v1  ;;  %3202 = vrcp.f32 %v6077_v25  ;;  %v6935_v4 = vld [vmem:[#allocation59_spill] sm:$0xff] }
 0x221   : > { %v1837_v41 = vsel %vm6926_vm11, %v6925_v53, %v1836_v9  ;;  %v1989_v7 = vadd.f32 %v6928_v49, %v1867_v36  ;;  %v2191_v26 = vsel %vm6931_vm3, %v2188_v40, %v2190_v60  ;;  %v6933_v12 = vrot.slane %v6932_v62, 2  ;;  %v3222_v40 = vld [vmem:[%s6734_s4] ss:$0 sm:$0xff] }
 0x222   : > { %v1869_v52 = vadd.f32 %v1837_v41, %v1748_v50  ;;  %v2108_v27 = vadd.f32 %v6930_v44, %v1987_v54  ;;  %v3199_v29 = vpop.eup %3198  ;;  %v6936_v18 = vrot.slane %v6935_v4, 2  ;;  %v6939_v58 = vrot.slane %v6938_v19, 2 }
 0x223   : > { %v2110_v35 = vadd.f32 %v2075_v22, %v1989_v7  ;;  %v2080_v21 = vsel %vm6934_vm1, %v6933_v12, %v2079_v20  ;;  %v6104_v48 = vadd.f32 1.0, %v3199_v29  ;;  %v2479_v8 = vand.u32 2147483648, %v2312_v37 }
 0x224   : > { %v1991_v39 = vadd.f32 %v1959_v46, %v1869_v52  ;;  %v2196_v24 = vsel %vm6937_vm5, %v6936_v18, %v2195_v47  ;;  %v2229_v59 = vadd.f32 %v2191_v26, %v2108_v27  ;;  %v2201_v16 = vsel %vm6940_vm7, %v6939_v58, %v2200_v45 }
 0x225   : > { %v2231_v34 = vadd.f32 %v2196_v24, %v2110_v35  ;;  %v3201_v9 = vpop.eup %3200  ;;  %3204 = vrcp.f32 %v6104_v48  ;;  %v2477_v36 = vand.u32 2147483647, %v2312_v37  ;;  %v2509_v55 = vand.u32 2147483648, %v6077_v25 }
 0x226   : > { %v2112_v11 = vadd.f32 %v2080_v21, %v1991_v39  ;;  %v6112_v14 = vadd.f32 %v3222_v40, %v2229_v59  ;;  %v3203_v13 = vpop.eup %3202  ;;  %v2469_v33 = vmul.f32 %v3201_v9, %v2312_v37  ;;  %vm2474_vm6 = vweird.f32 %v3201_v9 }
 0x227   : > { %v6114_v51 = vadd.f32 %v3222_v40, %v2231_v34  ;;  %v2499_v5 = vmul.f32 %v3203_v13, %v6077_v25  ;;  %vm2504_vm12 = vweird.f32 %v3203_v13  ;;  %vm2473_vm2 = vweird.f32 %v2312_v37 }
 0x228   : > { %v2233_v10 = vadd.f32 %v2201_v16, %v2112_v11  ;;  %v2906_v23 = vmul.f32 -1.442695, %v6112_v14  ;;  %v2470_v1 = vsub.f32 1.0, %v2469_v33  ;;  %vm2475_vm4 = vmor %vm2473_vm2, %vm2474_vm6  ;;  %v2480_v53 = vor.u32 1.1754944e-38, %v2479_v8 }
 0x229   : > { %v2908_v43 = vmul.f32 -1.442695, %v6114_v51  ;;  %v2500_v50 = vsub.f32 1.0, %v2499_v5  ;;  %vm2503_vm13 = vweird.f32 %v6077_v25  ;;  %v2507_v3 = vand.u32 2147483647, %v6077_v25 }
 0x22a   : > { %v6118_v31 = vadd.f32 %v3222_v40, %v2233_v10  ;;  %3206 = vpow2.f32 %v2906_v23  ;;  %v2471_v17 = vmul.f32 %v3201_v9, %v2470_v1  ;;  %vm2478_vm0 = vcmp.eq.f32.partialorder %v2477_v36, 8.507059e+37  ;;  %vm6127_vm8 = vmor %vm2503_vm13, %vm2504_vm12 }
 0x22b   : > { %3208 = vpow2.f32 %v2908_v43  ;;  %v3205_v28 = vpop.eup %3204  ;;  %v2501_v20 = vmul.f32 %v3203_v13, %v2500_v50  ;;  %v2510_v44 = vor.u32 1.1754944e-38, %v2509_v55  ;;  %v2539_v25 = vand.u32 2147483648, %v6104_v48 }
 0x22c   : > { %v2910_v60 = vmul.f32 -1.442695, %v6118_v31  ;;  %v2472_v47 = vadd.f32 %v3201_v9, %v2471_v17  ;;  %v2529_v38 = vmul.f32 %v3205_v28, %v6104_v48  ;;  %vm2508_vm10 = vcmp.eq.f32.partialorder %v2507_v3, 8.507059e+37 }
 0x22d   : > { %v2502_v41 = vadd.f32 %v3203_v13, %v2501_v20  ;;  %vm2534_vm9 = vweird.f32 %v3205_v28  ;;  %v2537_v29 = vand.u32 2147483647, %v6104_v48  ;;  %vm6943_vm11 = vcmask 523264  }
 0x22e   : > { %3210 = vpow2.f32 %v2910_v60  ;;  %v2476_v45 = vsel %vm2475_vm4, %v3201_v9, %v2472_v47  ;;  %v2530_v49 = vsub.f32 1.0, %v2529_v38  ;;  %vm2533_vm14 = vweird.f32 %v6104_v48  ;;  %vm6944_vm1 = vmmov %vm6943_vm11 }
 0x22f   : > { %v2481_v37 = vsel %vm2478_vm0, %v2480_v53, %v2476_v45  ;;  %v2506_v22 = vsel %vm6127_vm8, %v3203_v13, %v2502_v41  ;;  %vm2535_vm15 = vmor %vm2533_vm14, %vm2534_vm9  ;;  %vm2538_vm3 = vcmp.eq.f32.partialorder %v2537_v29, 8.507059e+37 }
 0x230   : > { %v3207_v54 = vpop.eup %3206  ;;  %v2531_v39 = vmul.f32 %v3205_v28, %v2530_v49  ;;  %v6135_v35 = vmul.f32 %v2481_v37, %v6015_v56  ;;  %v2511_v12 = vsel %vm2508_vm10, %v2510_v44, %v2506_v22  ;;  %v2540_v56 = vor.u32 1.1754944e-38, %v2539_v25  ;;  %vm6945_vm5 = vmmov %vm6944_vm1 }
 0x231   : > { %v3209_v7 = vpop.eup %3208  ;;  %v2313_v46 = vadd.f32 1.0, %v3207_v54  ;;  %v6143_v18 = vmul.f32 %v2511_v12, %v6020_v15 }
 0x232   : > { %v2315_v27 = vadd.f32 1.0, %v3209_v7  ;;  %2584 = vst.msk [vmem:[%s5603_s19 + $0x50] sm:$0xff] %vm6943_vm11, %v6135_v35  ;;  %v2532_v21 = vadd.f32 %v3205_v28, %v2531_v39 }
 0x233   : > { %3212 = vrcp.f32 %v2313_v46  ;;  %2586 = vst.msk [vmem:[%s5603_s19 + $0x60] sm:$0xff] %vm6944_vm1, %v6143_v18  ;;  %v2494_v40 = vand.u32 2147483648, %v2313_v46  ;;  %v2492_v9 = vand.u32 2147483647, %v2313_v46  ;;  %vm2488_vm6 = vweird.f32 %v2313_v46 }
 0x234   : > { %v3211_v26 = vpop.eup %3210  ;;  %3214 = vrcp.f32 %v2315_v27  ;;  %v2536_v4 = vsel %vm2535_vm15, %v3205_v28, %v2532_v21  ;;  %v2522_v23 = vand.u32 2147483647, %v2315_v27  ;;  %vm2518_vm2 = vweird.f32 %v2315_v27  ;;  %vm6946_vm15 = vmmov %vm6944_vm1 }
 0x235   : > { %v2317_v62 = vadd.f32 1.0, %v3211_v26  ;;  %v2541_v24 = vsel %vm2538_vm3, %v2540_v56, %v2536_v4  ;;  %v2495_v1 = vor.u32 1.1754944e-38, %v2494_v40  ;;  %vm2493_vm0 = vcmp.eq.f32.partialorder %v2492_v9, 8.507059e+37  ;;  %vm6947_vm3 = vmmov %vm6944_vm1 }
 0x236   : > { %v6146_v11 = vmul.f32 %v2541_v24, %v6027_v42  ;;  %v2524_v42 = vand.u32 2147483648, %v2315_v27  ;;  %vm2523_vm10 = vcmp.eq.f32.partialorder %v2522_v23, 8.507059e+37 }
 0x237   : > { %3216 = vrcp.f32 %v2317_v62  ;;  %v2554_v60 = vand.u32 2147483648, %v2317_v62  ;;  %v2552_v17 = vand.u32 2147483647, %v2317_v62  ;;  %vm2548_vm9 = vweird.f32 %v2317_v62 }
 0x238   : > { %2588 = vst.msk [vmem:[%s5603_s19 + $0x70] sm:$0xff] %vm6945_vm5, %v6146_v11  ;;  %v2525_v28 = vor.u32 1.1754944e-38, %v2524_v42 }
 0x239   : > { %v3213_v59 = vpop.eup %3212  ;;  %v2555_v53 = vor.u32 1.1754944e-38, %v2554_v60  ;;  %vm2553_vm14 = vcmp.eq.f32.partialorder %v2552_v17, 8.507059e+37 }
 0x23a   : > { %v3215_v34 = vpop.eup %3214  ;;  %v2484_v19 = vmul.f32 %v3213_v59, %v2313_v46  ;;  %vm2489_vm7 = vweird.f32 %v3213_v59 }
 0x23b   : > { %v2514_v58 = vmul.f32 %v3215_v34, %v2315_v27  ;;  %vm2519_vm12 = vweird.f32 %v3215_v34  ;;  %vm2490_vm4 = vmor %vm2488_vm6, %vm2489_vm7 }
 0x23c   : > { %v2485_v16 = vsub.f32 1.0, %v2484_v19  ;;  %vm2520_vm8 = vmor %vm2518_vm2, %vm2519_vm12 }
 0x23d   : > { %v3217_v48 = vpop.eup %3216  ;;  %v2515_v15 = vsub.f32 1.0, %v2514_v58 }
 0x23e   : > { %v2544_v10 = vmul.f32 %v3217_v48, %v2317_v62  ;;  %v2486_v13 = vmul.f32 %v3213_v59, %v2485_v16  ;;  %vm2549_vm13 = vweird.f32 %v3217_v48 }
 0x23f   : > { %v2516_v33 = vmul.f32 %v3215_v34, %v2515_v15  ;;  %vm2550_vm11 = vmor %vm2548_vm9, %vm2549_vm13 }
 0x240   : > { %v2545_v43 = vsub.f32 1.0, %v2544_v10  ;;  %v2487_v5 = vadd.f32 %v3213_v59, %v2486_v13 }
 0x241   : > { %v2517_v8 = vadd.f32 %v3215_v34, %v2516_v33 }
 0x242   : > { %v2546_v50 = vmul.f32 %v3217_v48, %v2545_v43  ;;  %v2491_v36 = vsel %vm2490_vm4, %v3213_v59, %v2487_v5 }
 0x243   : > { %v2496_v20 = vsel %vm2493_vm0, %v2495_v1, %v2491_v36  ;;  %v2521_v55 = vsel %vm2520_vm8, %v3215_v34, %v2517_v8 }
 0x244   : > { %v2547_v47 = vadd.f32 %v3217_v48, %v2546_v50  ;;  %v2526_v38 = vsel %vm2523_vm10, %v2525_v28, %v2521_v55  ;;  %v2569_v41 = vmul.f32 %v2496_v20, %v6112_v14 }
 0x245   : > { %v2571_v54 = vmul.f32 %v2526_v38, %v6114_v51 }
 0x246   : > { %v2551_v3 = vsel %vm2550_vm11, %v3217_v48, %v2547_v47  ;;  %2585 = vst.msk [vmem:[%s5603_s19 + $0x58] sm:$0xff] %vm6946_vm15, %v2569_v41  ;;  %2593 = sbr.rel (%p2911_p5) target bundleno = 589 (0x24d), region = 44 }
 0x247   : > { %v2556_v45 = vsel %vm2553_vm14, %v2555_v53, %v2551_v3  ;;  %2587 = vst.msk [vmem:[%s5603_s19 + $0x68] sm:$0xff] %vm6947_vm3, %v2571_v54 }
 0x248   : > { %v2573_v52 = vmul.f32 %v2556_v45, %v6118_v31 }
 0x24a   : > { %2589 = vst.msk [vmem:[%s5603_s19 + $0x78] sm:$0xff] %vm6944_vm1, %v2573_v52 }
 0x24b   : > { %vm2594_vm5 = vcmask 516096   ;;  %v3375_v14 = vmov 0.0  }
 0x24c   : > { %2595 = vst.msk [vmem:[#allocation3] sm:$0x1] %vm2594_vm5, %v3375_v14 }
 0x24d PF: > { %v6949_v51 = vld [vmem:[#allocation17_spill] sm:$0xff]  ;;  %v6950_v49 = vld [vmem:[#allocation44_spill] sm:$0xff]  ;;  %v6951_v37 = vld [vmem:[#allocation18_spill] sm:$0xff]  ;;  %vm6952_vm2 = vcmask 523264   ;;  %p2912_p6 = scmp.ne.s32.totalorder %s3357_s27, 1 }
 0x24e   : > { %vm2596_vm7 = vcmp.lt.s32.totalorder %v6949_v51, 16  ;;  %vm2597_vm6 = vcmp.lt.s32.totalorder %v6950_v49, 16  ;;  %vm2598_vm12 = vcmp.lt.s32.totalorder %v6951_v37, 16  ;;  %vm6953_vm4 = vmmov %vm6952_vm2  ;;  %v6955_v29 = vld [vmem:[#allocation23_spill] sm:$0xff]  ;;  %v6960_v4 = vld [vmem:[#allocation58_spill] sm:$0xff] }
 0x24f   : > { %v2620_v31 = vsel %vm2596_vm7, %v5807_v32, 0.0  ;;  %v2621_v7 = vsel %vm2596_vm7, %v5810_v0, 0.0  ;;  %v2622_v46 = vsel %vm2597_vm6, %v5813_v2, 0.0  ;;  %v2623_v22 = vsel %vm2597_vm6, %v5830_v63, 0.0  ;;  %vm6954_vm13 = vmmov %vm6952_vm2  ;;  %v6958_v21 = vld [vmem:[#allocation79_spill] sm:$0xff]  ;;  %v6962_v58 = vld [vmem:[#allocation20_spill] sm:$0xff] }
 0x250   : > { %v2637_v44 = vsel %vm6952_vm2, %v2620_v31, 0.0  ;;  %v2638_v27 = vsel %vm6953_vm4, %v2621_v7, 0.0  ;;  %v2640_v39 = vsel %vm6954_vm13, %v2622_v46, 0.0  ;;  %v2624_v25 = vsel %vm2598_vm12, %v5843_v61, 0.0  ;;  %vm6956_vm8 = vmmov %vm6952_vm2  ;;  %v6964_v48 = vld [vmem:[#allocation60_spill] sm:$0xff]  ;;  %v6966_v10 = vld [vmem:[#allocation39_spill] sm:$0xff] }
 0x251   : > { %v2639_v26 = vadd.f32 %v2638_v27, %v2637_v44  ;;  %vm2599_vm0 = vcmp.lt.s32.totalorder %v6955_v29, 16  ;;  %v2642_v32 = vsel %vm6956_vm8, %v2623_v22, 0.0  ;;  %v2625_v0 = vsel %vm2598_vm12, %v5881_v57, 0.0  ;;  %vm6957_vm10 = vmmov %vm6952_vm2  ;;  %v6969_v5 = vld [vmem:[#allocation100_spill] sm:$0xff] }
 0x252   : > { %v2644_v62 = vsel %vm6957_vm10, %v2624_v25, 0.0  ;;  %v2626_v63 = vsel %vm2599_vm0, %v6056_v30, 0.0  ;;  %vm2600_vm9 = vcmp.lt.s32.totalorder %v6958_v21, 16  ;;  %vm6959_vm11 = vmmov %vm6952_vm2  ;;  %v2627_v24 = vsel %vm2599_vm0, %v6960_v4, 0.0 }
 0x253   : > { %v2641_v2 = vadd.f32 %v2640_v39, %v2639_v26  ;;  %v2646_v56 = vsel %vm6959_vm11, %v2625_v0, 0.0  ;;  %vm6961_vm14 = vmmov %vm6952_vm2  ;;  %v2628_v34 = vsel %vm2600_vm9, %v6051_v6, 0.0  ;;  %vm2601_vm15 = vcmp.lt.s32.totalorder %v6962_v58, 16  ;;  %v2636_v51 = vld [vmem:[#allocation3] sm:$0x1] }
 0x254   : > { %v2648_v59 = vsel %vm6961_vm14, %v2626_v63, 0.0  ;;  %vm6963_vm3 = vmmov %vm6952_vm2  ;;  %v2629_v16 = vsel %vm2600_vm9, %v6964_v48, 0.0  ;;  %v2630_v9 = vsel %vm2601_vm15, %v6135_v35, 0.0  ;;  %vm2602_vm5 = vcmp.lt.s32.totalorder %v6966_v10, 16 }
 0x255   : > { %v2643_v12 = vadd.f32 %v2642_v32, %v2641_v2  ;;  %v2650_v57 = vsel %vm6963_vm3, %v2627_v24, 0.0  ;;  %vm6965_vm1 = vmmov %vm6952_vm2  ;;  %v2631_v23 = vsel %vm2601_vm15, %v2569_v41, 0.0  ;;  %v2632_v33 = vsel %vm2602_vm5, %v6143_v18, 0.0 }
 0x256   : > { %v2652_v40 = vsel %vm6965_vm1, %v2628_v34, 0.0  ;;  %vm6967_vm7 = vmmov %vm6965_vm1  ;;  %vm2603_vm12 = vcmp.lt.s32.totalorder %v6969_v5, 16  ;;  %v2633_v60 = vsel %vm2602_vm5, %v2571_v54, 0.0  ;;  %vm2675_vm10 = vcmask 516096  }
 0x257   : > { %v2645_v61 = vadd.f32 %v2644_v62, %v2643_v12  ;;  %v2654_v13 = vsel %vm6967_vm7, %v2629_v16, 0.0  ;;  %vm6968_vm6 = vmmov %vm6965_vm1  ;;  %v2634_v50 = vsel %vm2603_vm12, %v6146_v11, 0.0  ;;  %v2635_v28 = vsel %vm2603_vm12, %v2573_v52, 0.0 }
 0x258   : > { %v2656_v6 = vsel %vm6968_vm6, %v2630_v9, 0.0  ;;  %vm6970_vm2 = vmmov %vm6965_vm1 }
 0x259   : > { %v2647_v19 = vadd.f32 %v2646_v56, %v2645_v61  ;;  %v2658_v1 = vsel %vm6970_vm2, %v2631_v23, 0.0  ;;  %vm6971_vm4 = vmmov %vm6965_vm1 }
 0x25a   : > { %v2660_v35 = vsel %vm6971_vm4, %v2632_v33, 0.0  ;;  %vm6972_vm13 = vmmov %vm6965_vm1 }
 0x25b   : > { %v2649_v30 = vadd.f32 %v2648_v59, %v2647_v19  ;;  %v2662_v36 = vsel %vm6972_vm13, %v2633_v60, 0.0  ;;  %vm6973_vm0 = vmmov %vm6965_vm1 }
 0x25c   : > { %v2664_v55 = vsel %vm6973_vm0, %v2634_v50, 0.0  ;;  %vm6974_vm8 = vmmov %vm6973_vm0 }
 0x25d   : > { %v2651_v15 = vadd.f32 %v2650_v57, %v2649_v30  ;;  %v2666_v18 = vsel %vm6974_vm8, %v2635_v28, 0.0 }
 0x25f   : > { %v2653_v42 = vadd.f32 %v2652_v40, %v2651_v15 }
 0x261   : > { %v2655_v43 = vadd.f32 %v2654_v13, %v2653_v42 }
 0x263   : > { %v2657_v8 = vadd.f32 %v2656_v6, %v2655_v43 }
 0x265   : > { %v2659_v17 = vadd.f32 %v2658_v1, %v2657_v8 }
 0x267   : > { %v2661_v20 = vadd.f32 %v2660_v35, %v2659_v17 }
 0x269   : > { %v2663_v47 = vadd.f32 %v2662_v36, %v2661_v20 }
 0x26b   : > { %v2665_v38 = vadd.f32 %v2664_v55, %v2663_v47 }
 0x26d   : > { %v2667_v53 = vadd.f32 %v2666_v18, %v2665_v38 }
 0x26f   : > { %v2668_v41 = vrot.slane %v2667_v53, 4 }
 0x271   : > { %v2669_v3 = vadd.f32 %v2668_v41, %v2667_v53 }
 0x273   : > { %v2670_v54 = vrot.slane %v2669_v3, 2 }
 0x275   : > { %v2671_v45 = vadd.f32 %v2670_v54, %v2669_v3 }
 0x277   : > { %v2672_v14 = vrot.slane %v2671_v45, 1 }
 0x279   : > { %v2673_v49 = vadd.f32 %v2672_v14, %v2671_v45  ;;  %2680 = sbr.rel (%p2912_p6) target bundleno = 648 (0x288), region = 48 }
 0x27b   : > { %v2674_v11 = vadd.f32 %v2673_v49, %v2636_v51 }
 0x27d   : > { %2676 = vst.msk [vmem:[#allocation3] sm:$0x1] %vm2675_vm10, %v2674_v11 }
 0x284   : > { %v2681_v52 = vld [vmem:[#allocation3] sm:$0x1] }
 0x285   : > { %v2682_v31 = vmul.f32 0.00390625, %v2681_v52 }
 0x287   : > { %2683 = vst.msk [vmem:[%s6165_s16] sm:$0x1] %vm2675_vm10, %v2682_v31 }
 0x288 PF: > { %s2920_s14 = sshll.u32 %s3357_s27, 4  ;;  %s2916_s30 = sshll.u32 %s3361_s28, 5 }
 0x289   : > { %s2704_s11 = sshll.u32 %s5603_s19, 4  ;;  %s2701_s13 = sadd.s32 %s2920_s14, %s2916_s30  ;;  %s2705_s11 = int_to_ptr.vmem [resolvable:$true] %s2704_s11 }
 0x28a   : > { %s2917_s12 = sshll.u32 %s2701_s13, 3  ;;  %s2718_s4 = scalar_lea.hbm %s6288_s6, %s3361_s28 }
 0x28b   : > { %s2703_s0 = scalar_lea.hbm %s6287_s5, %s2917_s12  ;;  %s6975_s10 = sand.u32 1, %s3349_s25  }
 0x28c   : > { %s2706_s1 = sshll.u32 %s2703_s0, 4  ;;  %s2685_s26 = scalar_lea.sflag [#allocation5], %s6975_s10  ;;  %s2707_s1 = int_to_ptr.hbm [resolvable:$true] %s2706_s1 }
 0x28d   : > { %s3237_s9 = sshra.s32 %s2707_s1, 4  ;;  %s3243_s20 = scalar_lea.hbm %s6287_s5, 512  ;;  %s3238_s9 = int_to_ptr.hbm [resolvable:$true] %s3237_s9 }
 0x28e   : > { %s3239_s27 = scalar_lea.hbm %s3238_s9, 128  ;;  %p3244_p11 = scmp.lt.s32.totalorder %s3238_s9, %s6287_s5 }
 0x28f   : > { %p3240_p8 = scmp.ne.s32.totalorder %s3238_s9, %s3239_s27  ;;  %p3245_p0 = scmp.lt.s32.totalorder %s3243_s20, %s3239_s27 }
 0x291   : > { %p3241_p9 = pnand %p3240_p8, %p3486_p3  ;;  %p3246_p1 = por %p3245_p0, %p3244_p11 }
 0x293   : > { %p3242_p10 = pneg %p3241_p9 }
 0x295   : > { %p3247_p4 = pnand %p3246_p1, %p3242_p10 }
 0x297   : > { %3250 = shalt.err (!%p3247_p4)
}
 0x298   : > { %s3376_s2 = smov 128   ;;  %s3377_s3 = smov 8  }
 0x299   : > { %2928 = dma.vmem_to_hbm [thread:$0]  (%p3486_p3), %s2705_s11, 2048, %s2707_s1, %s2685_s26, %s3376_s2, %s3376_s2, %s3377_s3  }
 0x29a   : > { %s2720_s28 = sshll.u32 %s6165_s16, 4  ;;  %s2722_s10 = sshll.u32 %s2718_s4, 4  ;;  %s2721_s28 = int_to_ptr.vmem [resolvable:$true] %s2720_s28  ;;  %s2723_s10 = int_to_ptr.hbm [resolvable:$true] %s2722_s10 }
 0x29b   : > { %s6976_s13 = sand.u32 1, %s3337_s22   ;;  %s3265_s17 = sshra.s32 %s2723_s10, 4  ;;  %s3266_s17 = int_to_ptr.hbm [resolvable:$true] %s3265_s17 }
 0x29c   : > { %s2690_s12 = scalar_lea.sflag [#allocation7], %s6976_s13  ;;  %s3267_s9 = scalar_lea.hbm %s3266_s17, 1 }
 0x29d   : > { %p3268_p2 = scmp.ne.s32.totalorder %s3266_s17, %s3267_s9  ;;  %s3271_s14 = scalar_lea.hbm %s6288_s6, 2 }
 0x29e   : > { %p3272_p3 = scmp.lt.s32.totalorder %s3266_s17, %s6288_s6  ;;  %p3273_p8 = scmp.lt.s32.totalorder %s3271_s14, %s3267_s9 }
 0x29f   : > { %p3269_p5 = pnand %p3268_p2, %p3513_p12 }
 0x2a0   : > { %p3274_p9 = por %p3273_p8, %p3272_p3 }
 0x2a1   : > { %p3270_p6 = pneg %p3269_p5 }
 0x2a3   : > { %p3275_p10 = pnand %p3274_p9, %p3270_p6 }
 0x2a5   : > { %3278 = shalt.err (!%p3275_p10)
}
 0x2a6   : > { %2929 = dma.vmem_to_hbm [thread:$0]  (%p3513_p12), %s2721_s28, 16, %s2723_s10, %s2690_s12  }
 0x2a7 PF: > { %p2939_p11 = scmp.ge.s32.totalorder %s3373_s7, 2  ;;  %s2734_s1 = sand.u32 1, %s3345_s24  }
 0x2a8   : > { %s2735_s4 = scalar_lea.sflag [#allocation5], %s2734_s1 }
 0x2a9   : > { %p2933_p0 = pnand %p2939_p11, %p3501_p7 }
 0x2ab   : > { %p2934_p1 = pneg %p2933_p0 }
 0x2ad   : > { %3324 = dma.done.wait (%p2934_p1), %s2735_s4, 2048  }
 0x2ae   : > { %3326 = vsyncadd (%p2934_p1), %s2735_s4, 4294965248  ;;  %s2744_s26 = sand.u32 1, %s3333_s21   ;;  %p2936_p4 = pnand %p2939_p11, %p3525_p13 }
 0x2af   : > { %s2745_s8 = scalar_lea.sflag [#allocation7], %s2744_s26 }
 0x2b0   : > { %p2937_p2 = pneg %p2936_p4 }
 0x2b2   : > { %3328 = dma.done.wait (%p2937_p2), %s2745_s8, 16  }
 0x2b3   : > { %3330 = vsyncadd (%p2937_p2), %s2745_s8, 4294967280  ;;  %s23_s7 = sadd.s32 1, %s3373_s7   ;;  %s6977_s24 = sld [smem:[#allocation15_spill]] }
 0x2b4   : > { %p20_p12 = scmp.ge.s32.totalorder %s23_s7, 6   ;;  %s6978_s18 = sld [smem:[#allocation10_spill]] }
 0x2b5   : > { %s6979_s26 = sld [smem:[#allocation16_spill]]  ;;  %s6984_s21 = smov %s3337_s22 }
 0x2b6   : > { %s6980_s27 = sld [smem:[#allocation11_spill]]  ;;  %s6985_s22 = smov %s3341_s23 }
 0x2b7   : > { %s6981_s28 = sld [smem:[#allocation12_spill]]  ;;  %22 = sbr.rel (!%p20_p12) target bundleno = 15 (0xf), region = 101 }
 0x2b8   : > { %s6982_s29 = sld [smem:[#allocation13_spill]] }
 0x2b9   : > { %s6983_s30 = sld [smem:[#allocation14_spill]]  ;;  %s6986_s23 = smov %s6977_s24 }
 0x2ba   : > { %s6987_s24 = smov %s3349_s25  ;;  %s6988_s25 = smov %s6978_s18 }
 0x2bc   :  { %2750 = vsyncpa [#allocation5], 1 }
 0x2bd   :  { %2752 = vsyncpa [#allocation5 + $0x1], 1 }
 0x2be   :  { %2753 = vsyncpa [#allocation7], 1 }
 0x2bf   :  { %2755 = vsyncpa [#allocation7 + $0x1], 1 }

</bundles_post_ra>
